<compile_context>
chip_gen: v7x
topology: tpu7x:2x2x1
jax: 0.10.0
libtpu: 0.0.40
codegen_flags: <defaults>
</compile_context>

<pallas_src>
import functools

import jax
import jax.numpy as jnp
import numpy as np
from jax import lax
from jax.experimental import pallas as pl
from jax.experimental.pallas import tpu as pltpu

_NUM_CAMS = 6


# ----------------------------------------------------------------------------
# scale_intrinsics — few hundred bytes of work; plain jnp (XLA fuses it for free).
# ----------------------------------------------------------------------------
def scale_intrinsics(K, x_scale, y_scale):
    K = K.astype(jnp.float32)
    fx = K[..., 0, 0] * x_scale
    fy = K[..., 1, 1] * y_scale
    cx = (K[..., 0, 2] + 0.5) * x_scale - 0.5
    cy = (K[..., 1, 2] + 0.5) * y_scale - 0.5
    K = K.at[..., 0, 0].set(fx)
    K = K.at[..., 1, 1].set(fy)
    K = K.at[..., 0, 2].set(cx)
    K = K.at[..., 1, 2].set(cy)
    return K


# ----------------------------------------------------------------------------
# Fused loss kernel.
# Grid: (cdiv(H, TH),) — one step per row tile, fully parallel, last tile masked.
# Inputs (per step):
#   18 image blocks  (1, C, TH, W)  storage dtype (bf16), 6 prev / 6 now / 6 next
#    6 depth blocks  (1, TH, W)     storage dtype ground-truth depth (0 = invalid)
#    1 inv-depth     (6, 1, TH, W)  storage dtype predicted inverse depth
# Output (per step): (1, 8, 128) f32 lane-dense partial sums
#   row 0: sum over valid pixels of min_t( sum_c |ref_t - now| )   (/C folded in wrapper)
#   row 1: sum(|depth_gt - depth_pred| * mask)
#   row 2: sum(mask)
# ----------------------------------------------------------------------------
def _loss_kernel(*refs, total_h, needs_row_mask):
    prev_refs = refs[0:_NUM_CAMS]
    now_refs = refs[_NUM_CAMS:2 * _NUM_CAMS]
    next_refs = refs[2 * _NUM_CAMS:3 * _NUM_CAMS]
    depth_refs = refs[3 * _NUM_CAMS:4 * _NUM_CAMS]
    invd_ref = refs[4 * _NUM_CAMS]
    out_ref = refs[4 * _NUM_CAMS + 1]

    th, w = depth_refs[0].shape[1], depth_refs[0].shape[2]

    if needs_row_mask:
        # mask rows of the (possibly partial) last tile; jnp.where blocks NaN leakage
        row0 = pl.program_id(0) * th
        row_idx = lax.broadcasted_iota(jnp.int32, (th, w), 0) + row0
        row_valid = row_idx < total_h
    else:
        row_valid = None

    temp_acc = jnp.zeros((th, w), jnp.float32)
    dsup_acc = jnp.zeros((th, w), jnp.float32)
    mask_acc = jnp.zeros((th, w), jnp.float32)

    for i in range(_NUM_CAMS):
        now = now_refs[i][0].astype(jnp.float32)     # (C, TH, W)
        prev = prev_refs[i][0].astype(jnp.float32)
        nxt = next_refs[i][0].astype(jnp.float32)

        # channel SUM of |diff| (the /C channel-mean is folded into the wrapper);
        # min over the two temporal residuals.
        # TODO(synk): warp_ref_image_temporal is undefined in the reference, so the two
        # warped-reconstruction residual maps of the original 4-way min are omitted.
        diff_prev = jnp.sum(jnp.abs(prev - now), axis=0)   # (TH, W)
        diff_next = jnp.sum(jnp.abs(nxt - now), axis=0)
        tdiff = jnp.minimum(diff_prev, diff_next)
        if row_valid is not None:
            tdiff = jnp.where(row_valid, tdiff, 0.0)
        temp_acc = temp_acc + tdiff

        depth = depth_refs[i][0].astype(jnp.float32)        # (TH, W)
        invd = invd_ref[i, 0].astype(jnp.float32)           # (TH, W)
        # exact reciprocal to match reference 1/clamp; approx=True (EUP) is available
        # if loss tolerance allows.
        depth_pred = pl.reciprocal(jnp.maximum(invd, 1e-6), approx=False)
        valid = depth > 0.0
        if row_valid is not None:
            valid = jnp.logical_and(valid, row_valid)
        mask_f = valid.astype(jnp.float32)
        dsup_acc = dsup_acc + jnp.where(valid, jnp.abs(depth - depth_pred), 0.0)
        mask_acc = mask_acc + mask_f

    # one reduction per statistic per tile (amortized over all 6 cameras)
    temp_s = jnp.sum(temp_acc)
    dsup_s = jnp.sum(dsup_acc)
    mask_s = jnp.sum(mask_acc)

    row = lax.broadcasted_iota(jnp.int32, (8, 128), 0)
    vals = jnp.where(row == 0, temp_s,
                     jnp.where(row == 1, dsup_s,
                               jnp.where(row == 2, mask_s, 0.0)))
    out_ref[0] = vals                                      # lane-dense (8,128) store


def _vmem_limit_bytes():
    """Per-generation scoped-VMEM limit: half of physical VMEM, capped at 96 MiB.

    v5e/v6e (128 MiB physical) -> 64 MiB; v7x (64 MiB per TC) -> 32 MiB.
    """
    try:
        cap = int(pltpu.get_tpu_info().vmem_capacity_bytes)
    except Exception:  # e.g. interpret mode / info unavailable
        cap = 64 * 1024 * 1024
    return min(cap // 2, 96 * 1024 * 1024)


def _pick_tile_h(H, W, img_itemsize, depth_itemsize, invd_itemsize, vmem_limit):
    """Largest multiple-of-8 row count whose working set fits the VMEM budget.

    Does NOT require TH to divide H — the grid uses cdiv and the kernel masks the
    partial last tile.
    """
    # per-row operand bytes (DMA'd and double-buffered by the auto-pipeliner)
    operand_row = (3 * _NUM_CAMS * 3 * W * img_itemsize    # 18 images, C=3
                   + _NUM_CAMS * W * depth_itemsize        # 6 GT depth rows
                   + _NUM_CAMS * W * invd_itemsize)        # 6 pred inv-depth rows
    # per-row f32 intermediates inside the kernel: one camera's 3 cast image blocks
    # (C=3) live at a time, plus accumulators / masks (~4 (TH,W) f32 maps)
    interm_row = 3 * 3 * W * 4 + 4 * W * 4
    row_bytes = 2 * operand_row + interm_row
    budget = int(vmem_limit * 0.75)
    max_rows = max(8, (budget // max(row_bytes, 1)) // 8 * 8)

    if H < 8:
        return H                       # block equals full dim (allowed)
    th_cap = (H // 8) * 8              # largest multiple of 8 not exceeding H
    return max(8, min(max_rows, th_cap))


def _run_loss_kernel(prev_list, now_list, next_list, depth_list, now_inv_depth,
                     tile_h=None):
    C, H, W = now_list[0].shape[1], now_list[0].shape[2], now_list[0].shape[3]
    img_itemsize = jnp.dtype(now_list[0].dtype).itemsize
    dep_itemsize = jnp.dtype(depth_list[0].dtype).itemsize
    invd_itemsize = jnp.dtype(now_inv_depth.dtype).itemsize
    vmem_limit = _vmem_limit_bytes()

    if tile_h is not None:
        TH = tile_h
        assert TH == H or TH % 8 == 0, "tile_h must be a multiple of 8 (or equal H)"
    else:
        TH = _pick_tile_h(H, W, img_itemsize, dep_itemsize, invd_itemsize, vmem_limit)

    num_tiles = pl.cdiv(H, TH)
    needs_mask = (H % TH) != 0

    img_spec = pl.BlockSpec((1, C, TH, W), lambda h: (0, 0, h, 0))
    dep_spec = pl.BlockSpec((1, TH, W), lambda h: (0, h, 0))
    invd_spec = pl.BlockSpec((_NUM_CAMS, 1, TH, W), lambda h: (0, 0, h, 0))
    out_spec = pl.BlockSpec((1, 8, 128), lambda h: (h, 0, 0))

    kernel = functools.partial(_loss_kernel, total_h=H, needs_row_mask=needs_mask)

    partials = pl.pallas_call(
        kernel,
        out_shape=jax.ShapeDtypeStruct((num_tiles, 8, 128), jnp.float32),
        grid=(num_tiles,),
        in_specs=[img_spec] * (3 * _NUM_CAMS) + [dep_spec] * _NUM_CAMS + [invd_spec],
        out_specs=out_spec,
        compiler_params=pltpu.CompilerParams(
            # TODO(synk): on v7x verify both TensorCores run; use pltpu.CORE_PARALLEL
            # on this axis if the trace shows a single core.
            dimension_semantics=("parallel",),
            vmem_limit_bytes=vmem_limit,
        ),
    )(*prev_list, *now_list, *next_list, *depth_list, now_inv_depth)

    temp_sum = jnp.sum(partials[:, 0, 0])
    dsup_sum = jnp.sum(partials[:, 1, 0])
    mask_sum = jnp.sum(partials[:, 2, 0])
    return temp_sum, dsup_sum, mask_sum


# ----------------------------------------------------------------------------
# Forward wrapper (semantics of SpatialTempNet.forward_train for the terms that
# are fully specified by the reference).
# ----------------------------------------------------------------------------
@functools.partial(jax.jit,
                   static_argnames=("rgb_consis", "depth_supervision_ratio", "tile_h"))
def spatial_temp_net_forward(data, now_inv_depth,
                             rgb_consis=1.0, depth_supervision_ratio=1.0,
                             tile_h=None):
    # per-camera arrays are passed straight into the kernel — no HBM concat copies,
    # no wrapper-side dtype casts (casts happen inside the kernel after the DMA)
    prev_list = [data["img{}".format(i)] for i in range(0, 6)]
    now_list = [data["img{}".format(i)] for i in range(6, 12)]
    next_list = [data["img{}".format(i)] for i in range(12, 18)]
    depth_list = [data["depth_map{}".format(i)] for i in range(6, 12)]

    _, C, H, W = now_list[0].shape
    B = _NUM_CAMS

    # ---- intrinsics rescaling (plain jnp; tiny) ----
    scale_x = W / 1600.0
    scale_y = H / 900.0
    camera_intrinsic = scale_intrinsics(data["cam_intrinsic"], scale_x, scale_y)
    now_cam_intrin = camera_intrinsic[:, 6:12, ...].reshape(-1, 3, 3)
    now_cam_pose = data["cam_pose"].astype(jnp.float32)[:, 6:12, ...].reshape(-1, 4, 4)

    # TODO(synk): PackNetSlim01 / SFNet and the warp/stereo/consistency/smoothness helpers
    # are undefined in the reference; the predicted inverse depth is taken as an input
    # (now_inv_depth) and those loss terms are omitted.

    # ---- fused loss hot path (Pallas kernel) ----
    temp_sum, dsup_sum, mask_sum = _run_loss_kernel(
        prev_list, now_list, next_list, depth_list, now_inv_depth, tile_h=tile_h)

    n_pix = float(B * H * W)
    temp_rec_loss = temp_sum / (float(C) * n_pix)      # channel-mean /C folded here
    sparsity = mask_sum / n_pix
    depth_sup_loss = dsup_sum / jnp.maximum(mask_sum, 1.0)

    loss = rgb_consis * temp_rec_loss + depth_supervision_ratio * depth_sup_loss

    log_vars = {
        "loss": loss,
        "temp_rec_loss": temp_rec_loss,
        "depth_sup_loss": depth_sup_loss,
        "sparsity": sparsity,
    }
    return loss, log_vars, now_cam_intrin, now_cam_pose


# ----------------------------------------------------------------------------
# Pure-JAX reference for the fused statistics (numerics check only).
# ----------------------------------------------------------------------------
def _ref_stats(prev_list, now_list, next_list, depth_list, invd):
    temp = 0.0
    dsup = 0.0
    msum = 0.0
    for i in range(_NUM_CAMS):
        now = jnp.asarray(now_list[i][0], jnp.float32)
        prev = jnp.asarray(prev_list[i][0], jnp.float32)
        nxt = jnp.asarray(next_list[i][0], jnp.float32)
        dp = jnp.sum(jnp.abs(prev - now), axis=0)
        dn = jnp.sum(jnp.abs(nxt - now), axis=0)
        temp = temp + jnp.sum(jnp.minimum(dp, dn))
        depth = jnp.asarray(depth_list[i][0], jnp.float32)
        pred = 1.0 / jnp.maximum(jnp.asarray(invd[i, 0], jnp.float32), 1e-6)
        m = (depth > 0.0).astype(jnp.float32)
        dsup = dsup + jnp.sum(jnp.abs(depth - pred) * m)
        msum = msum + jnp.sum(m)
    return temp, dsup, msum


# ----------------------------------------------------------------------------
if __name__ == "__main__":
    key = jax.random.PRNGKey(0)
    # H deliberately NOT a multiple of 8 to exercise the cdiv grid + masked last tile
    H, W = 20, 32          # small test size (original uses 1600x900-derived sizes)

    data = {}
    for i in range(18):
        key, k = jax.random.split(key)
        # images stay in their narrow (bf16) storage dtype all the way into the kernel
        data["img{}".format(i)] = jax.random.uniform(
            k, (1, 3, H, W), jnp.float32).astype(jnp.bfloat16)
    for i in range(6, 12):
        key, k1 = jax.random.split(key)
        key, k2 = jax.random.split(key)
        d = jax.random.uniform(k1, (1, H, W), jnp.float32) * 10.0
        keep = jax.random.uniform(k2, (1, H, W), jnp.float32) > 0.3
        data["depth_map{}".format(i)] = jnp.where(keep, d, 0.0)    # sparse GT depth
        key, k3 = jax.random.split(key)
        data["sf_map{}".format(i)] = jax.random.normal(k3, (1, H, W, 3), jnp.float32)

    key, k = jax.random.split(key)
    eye3 = jnp.broadcast_to(jnp.eye(3, dtype=jnp.float32), (1, 18, 3, 3))
    data["cam_intrinsic"] = eye3 * 800.0 + jax.random.uniform(k, (1, 18, 3, 3)) * 5.0
    key, k = jax.random.split(key)
    data["cam_pose"] = (jnp.broadcast_to(jnp.eye(4, dtype=jnp.float32), (1, 18, 4, 4))
                        + 0.01 * jax.random.normal(k, (1, 18, 4, 4), jnp.float32))

    # deterministic stand-in for the depth network output (positive inverse depths)
    key, k = jax.random.split(key)
    now_inv_depth = 0.05 + jax.random.uniform(k, (6, 1, H, W), jnp.float32) * 0.5

    loss, log_vars, now_K, now_pose = spatial_temp_net_forward(
        data, now_inv_depth, rgb_consis=1.0, depth_supervision_ratio=1.0)
    jax.block_until_ready(loss)
    jax.block_until_ready(log_vars["sparsity"])

    # numerics check against a pure-JAX reference (same dtype flow)
    prev_l = [data["img{}".format(i)] for i in range(0, 6)]
    now_l = [data["img{}".format(i)] for i in range(6, 12)]
    next_l = [data["img{}".format(i)] for i in range(12, 18)]
    dep_l = [data["depth_map{}".format(i)] for i in range(6, 12)]
    rtemp, rdsup, rmask = _ref_stats(prev_l, now_l, next_l, dep_l, now_inv_depth)
    n_pix = float(_NUM_CAMS * H * W)
    ref_temp_loss = rtemp / (3.0 * n_pix)
    ref_dsup_loss = rdsup / jnp.maximum(rmask, 1.0)
    ref_sparsity = rmask / n_pix
    np.testing.assert_allclose(np.asarray(log_vars["temp_rec_loss"]),
                               np.asarray(ref_temp_loss), rtol=1e-3, atol=1e-5)
    np.testing.assert_allclose(np.asarray(log_vars["depth_sup_loss"]),
                               np.asarray(ref_dsup_loss), rtol=1e-3, atol=1e-5)
    np.testing.assert_allclose(np.asarray(log_vars["sparsity"]),
                               np.asarray(ref_sparsity), rtol=1e-3, atol=1e-5)

    print("KERNEL_OK")
</pallas_src>

<mosaic_0001>
module attributes {stable_mosaic.version = 11 : i64} {
  func.func @_loss_kernel(%arg0: i32, %arg1: memref<1x3x16x32xbf16, #tpu.memory_space<vmem>>, %arg2: memref<1x3x16x32xbf16, #tpu.memory_space<vmem>>, %arg3: memref<1x3x16x32xbf16, #tpu.memory_space<vmem>>, %arg4: memref<1x3x16x32xbf16, #tpu.memory_space<vmem>>, %arg5: memref<1x3x16x32xbf16, #tpu.memory_space<vmem>>, %arg6: memref<1x3x16x32xbf16, #tpu.memory_space<vmem>>, %arg7: memref<1x3x16x32xbf16, #tpu.memory_space<vmem>>, %arg8: memref<1x3x16x32xbf16, #tpu.memory_space<vmem>>, %arg9: memref<1x3x16x32xbf16, #tpu.memory_space<vmem>>, %arg10: memref<1x3x16x32xbf16, #tpu.memory_space<vmem>>, %arg11: memref<1x3x16x32xbf16, #tpu.memory_space<vmem>>, %arg12: memref<1x3x16x32xbf16, #tpu.memory_space<vmem>>, %arg13: memref<1x3x16x32xbf16, #tpu.memory_space<vmem>>, %arg14: memref<1x3x16x32xbf16, #tpu.memory_space<vmem>>, %arg15: memref<1x3x16x32xbf16, #tpu.memory_space<vmem>>, %arg16: memref<1x3x16x32xbf16, #tpu.memory_space<vmem>>, %arg17: memref<1x3x16x32xbf16, #tpu.memory_space<vmem>>, %arg18: memref<1x3x16x32xbf16, #tpu.memory_space<vmem>>, %arg19: memref<1x16x32xf32, #tpu.memory_space<vmem>>, %arg20: memref<1x16x32xf32, #tpu.memory_space<vmem>>, %arg21: memref<1x16x32xf32, #tpu.memory_space<vmem>>, %arg22: memref<1x16x32xf32, #tpu.memory_space<vmem>>, %arg23: memref<1x16x32xf32, #tpu.memory_space<vmem>>, %arg24: memref<1x16x32xf32, #tpu.memory_space<vmem>>, %arg25: memref<6x1x16x32xf32, #tpu.memory_space<vmem>>, %arg26: memref<1x8x128xf32, #tpu.memory_space<vmem>>) attributes {dimension_semantics = [#tpu.dimension_semantics<parallel>], iteration_bounds = array<i64: 2>, scalar_prefetch = 0 : i64, scratch_operands = 0 : i64, tpu.core_type = #tpu.core_type<tc>, window_params = [{transform_indices = @transform_0, window_bounds = array<i64: 1, 3, 16, 32>}, {transform_indices = @transform_1, window_bounds = array<i64: 1, 3, 16, 32>}, {transform_indices = @transform_2, window_bounds = array<i64: 1, 3, 16, 32>}, {transform_indices = @transform_3, window_bounds = array<i64: 1, 3, 16, 32>}, {transform_indices = @transform_4, window_bounds = array<i64: 1, 3, 16, 32>}, {transform_indices = @transform_5, window_bounds = array<i64: 1, 3, 16, 32>}, {transform_indices = @transform_6, window_bounds = array<i64: 1, 3, 16, 32>}, {transform_indices = @transform_7, window_bounds = array<i64: 1, 3, 16, 32>}, {transform_indices = @transform_8, window_bounds = array<i64: 1, 3, 16, 32>}, {transform_indices = @transform_9, window_bounds = array<i64: 1, 3, 16, 32>}, {transform_indices = @transform_10, window_bounds = array<i64: 1, 3, 16, 32>}, {transform_indices = @transform_11, window_bounds = array<i64: 1, 3, 16, 32>}, {transform_indices = @transform_12, window_bounds = array<i64: 1, 3, 16, 32>}, {transform_indices = @transform_13, window_bounds = array<i64: 1, 3, 16, 32>}, {transform_indices = @transform_14, window_bounds = array<i64: 1, 3, 16, 32>}, {transform_indices = @transform_15, window_bounds = array<i64: 1, 3, 16, 32>}, {transform_indices = @transform_16, window_bounds = array<i64: 1, 3, 16, 32>}, {transform_indices = @transform_17, window_bounds = array<i64: 1, 3, 16, 32>}, {transform_indices = @transform_18, window_bounds = array<i64: 1, 16, 32>}, {transform_indices = @transform_19, window_bounds = array<i64: 1, 16, 32>}, {transform_indices = @transform_20, window_bounds = array<i64: 1, 16, 32>}, {transform_indices = @transform_21, window_bounds = array<i64: 1, 16, 32>}, {transform_indices = @transform_22, window_bounds = array<i64: 1, 16, 32>}, {transform_indices = @transform_23, window_bounds = array<i64: 1, 16, 32>}, {transform_indices = @transform_24, window_bounds = array<i64: 6, 1, 16, 32>}, {transform_indices = @transform_25, window_bounds = array<i64: 1, 8, 128>}]} {
    %c16_i32 = arith.constant 16 : i32
    %0 = arith.muli %arg0, %c16_i32 : i32
    %1 = tpu.iota {dimensions = array<i32: 0>} : vector<16x32xi32>
    %2 = vector.broadcast %0 : i32 to vector<16x32xi32>
    %3 = arith.addi %1, %2 : vector<16x32xi32>
    %c20_i32 = arith.constant 20 : i32
    %4 = vector.broadcast %c20_i32 : i32 to vector<16x32xi32>
    %5 = arith.cmpi slt, %3, %4 : vector<16x32xi32>
    %cst = arith.constant 0.000000e+00 : f32
    %6 = vector.broadcast %cst : f32 to vector<16x32xf32>
    %cst_0 = arith.constant 0.000000e+00 : f32
    %7 = vector.broadcast %cst_0 : f32 to vector<16x32xf32>
    %cst_1 = arith.constant 0.000000e+00 : f32
    %8 = vector.broadcast %cst_1 : f32 to vector<16x32xf32>
    %c0 = arith.constant 0 : index
    %c0_2 = arith.constant 0 : index
    %c0_3 = arith.constant 0 : index
    %c0_4 = arith.constant 0 : index
    %9 = vector.load %arg7[%c0, %c0_2, %c0_3, %c0_4] : memref<1x3x16x32xbf16, #tpu.memory_space<vmem>>, vector<1x3x16x32xbf16>
    %10 = vector.shape_cast %9 : vector<1x3x16x32xbf16> to vector<3x16x32xbf16>
    %11 = arith.extf %10 : vector<3x16x32xbf16> to vector<3x16x32xf32>
    %c0_5 = arith.constant 0 : index
    %c0_6 = arith.constant 0 : index
    %c0_7 = arith.constant 0 : index
    %c0_8 = arith.constant 0 : index
    %12 = vector.load %arg1[%c0_5, %c0_6, %c0_7, %c0_8] : memref<1x3x16x32xbf16, #tpu.memory_space<vmem>>, vector<1x3x16x32xbf16>
    %13 = vector.shape_cast %12 : vector<1x3x16x32xbf16> to vector<3x16x32xbf16>
    %14 = arith.extf %13 : vector<3x16x32xbf16> to vector<3x16x32xf32>
    %c0_9 = arith.constant 0 : index
    %c0_10 = arith.constant 0 : index
    %c0_11 = arith.constant 0 : index
    %c0_12 = arith.constant 0 : index
    %15 = vector.load %arg13[%c0_9, %c0_10, %c0_11, %c0_12] : memref<1x3x16x32xbf16, #tpu.memory_space<vmem>>, vector<1x3x16x32xbf16>
    %16 = vector.shape_cast %15 : vector<1x3x16x32xbf16> to vector<3x16x32xbf16>
    %17 = arith.extf %16 : vector<3x16x32xbf16> to vector<3x16x32xf32>
    %18 = arith.subf %14, %11 : vector<3x16x32xf32>
    %19 = math.absf %18 : vector<3x16x32xf32>
    %cst_13 = arith.constant dense<0.000000e+00> : vector<16x32xf32>
    %20 = vector.multi_reduction <add>, %19, %cst_13 [0] : vector<3x16x32xf32> to vector<16x32xf32>
    %21 = arith.subf %17, %11 : vector<3x16x32xf32>
    %22 = math.absf %21 : vector<3x16x32xf32>
    %cst_14 = arith.constant dense<0.000000e+00> : vector<16x32xf32>
    %23 = vector.multi_reduction <add>, %22, %cst_14 [0] : vector<3x16x32xf32> to vector<16x32xf32>
    %24 = arith.minimumf %20, %23 : vector<16x32xf32>
    %cst_15 = arith.constant 0.000000e+00 : f32
    %25 = vector.broadcast %cst_15 : f32 to vector<16x32xf32>
    %26 = arith.select %5, %24, %25 : vector<16x32xi1>, vector<16x32xf32>
    %27 = arith.addf %6, %26 : vector<16x32xf32>
    %c0_16 = arith.constant 0 : index
    %c0_17 = arith.constant 0 : index
    %c0_18 = arith.constant 0 : index
    %28 = vector.load %arg19[%c0_16, %c0_17, %c0_18] : memref<1x16x32xf32, #tpu.memory_space<vmem>>, vector<1x16x32xf32>
    %29 = vector.shape_cast %28 : vector<1x16x32xf32> to vector<16x32xf32>
    %c0_19 = arith.constant 0 : index
    %c0_20 = arith.constant 0 : index
    %c0_21 = arith.constant 0 : index
    %c0_22 = arith.constant 0 : index
    %30 = vector.load %arg25[%c0_19, %c0_20, %c0_21, %c0_22] : memref<6x1x16x32xf32, #tpu.memory_space<vmem>>, vector<1x1x16x32xf32>
    %31 = vector.shape_cast %30 : vector<1x1x16x32xf32> to vector<16x32xf32>
    %cst_23 = arith.constant 9.99999997E-7 : f32
    %32 = vector.broadcast %cst_23 : f32 to vector<16x32xf32>
    %33 = arith.maximumf %31, %32 : vector<16x32xf32>
    %34 = tpu.reciprocal %33 : vector<16x32xf32> -> vector<16x32xf32>
    %cst_24 = arith.constant 0.000000e+00 : f32
    %35 = vector.broadcast %cst_24 : f32 to vector<16x32xf32>
    %36 = arith.cmpf ogt, %29, %35 : vector<16x32xf32>
    %37 = arith.andi %36, %5 : vector<16x32xi1>
    %38 = arith.extui %37 : vector<16x32xi1> to vector<16x32xi32>
    %39 = arith.sitofp %38 : vector<16x32xi32> to vector<16x32xf32>
    %40 = arith.subf %29, %34 : vector<16x32xf32>
    %41 = math.absf %40 : vector<16x32xf32>
    %cst_25 = arith.constant 0.000000e+00 : f32
    %42 = vector.broadcast %cst_25 : f32 to vector<16x32xf32>
    %43 = arith.select %37, %41, %42 : vector<16x32xi1>, vector<16x32xf32>
    %44 = arith.addf %7, %43 : vector<16x32xf32>
    %45 = arith.addf %8, %39 : vector<16x32xf32>
    %c0_26 = arith.constant 0 : index
    %c0_27 = arith.constant 0 : index
    %c0_28 = arith.constant 0 : index
    %c0_29 = arith.constant 0 : index
    %46 = vector.load %arg8[%c0_26, %c0_27, %c0_28, %c0_29] : memref<1x3x16x32xbf16, #tpu.memory_space<vmem>>, vector<1x3x16x32xbf16>
    %47 = vector.shape_cast %46 : vector<1x3x16x32xbf16> to vector<3x16x32xbf16>
    %48 = arith.extf %47 : vector<3x16x32xbf16> to vector<3x16x32xf32>
    %c0_30 = arith.constant 0 : index
    %c0_31 = arith.constant 0 : index
    %c0_32 = arith.constant 0 : index
    %c0_33 = arith.constant 0 : index
    %49 = vector.load %arg2[%c0_30, %c0_31, %c0_32, %c0_33] : memref<1x3x16x32xbf16, #tpu.memory_space<vmem>>, vector<1x3x16x32xbf16>
    %50 = vector.shape_cast %49 : vector<1x3x16x32xbf16> to vector<3x16x32xbf16>
    %51 = arith.extf %50 : vector<3x16x32xbf16> to vector<3x16x32xf32>
    %c0_34 = arith.constant 0 : index
    %c0_35 = arith.constant 0 : index
    %c0_36 = arith.constant 0 : index
    %c0_37 = arith.constant 0 : index
    %52 = vector.load %arg14[%c0_34, %c0_35, %c0_36, %c0_37] : memref<1x3x16x32xbf16, #tpu.memory_space<vmem>>, vector<1x3x16x32xbf16>
    %53 = vector.shape_cast %52 : vector<1x3x16x32xbf16> to vector<3x16x32xbf16>
    %54 = arith.extf %53 : vector<3x16x32xbf16> to vector<3x16x32xf32>
    %55 = arith.subf %51, %48 : vector<3x16x32xf32>
    %56 = math.absf %55 : vector<3x16x32xf32>
    %cst_38 = arith.constant dense<0.000000e+00> : vector<16x32xf32>
    %57 = vector.multi_reduction <add>, %56, %cst_38 [0] : vector<3x16x32xf32> to vector<16x32xf32>
    %58 = arith.subf %54, %48 : vector<3x16x32xf32>
    %59 = math.absf %58 : vector<3x16x32xf32>
    %cst_39 = arith.constant dense<0.000000e+00> : vector<16x32xf32>
    %60 = vector.multi_reduction <add>, %59, %cst_39 [0] : vector<3x16x32xf32> to vector<16x32xf32>
    %61 = arith.minimumf %57, %60 : vector<16x32xf32>
    %cst_40 = arith.constant 0.000000e+00 : f32
    %62 = vector.broadcast %cst_40 : f32 to vector<16x32xf32>
    %63 = arith.select %5, %61, %62 : vector<16x32xi1>, vector<16x32xf32>
    %64 = arith.addf %27, %63 : vector<16x32xf32>
    %c0_41 = arith.constant 0 : index
    %c0_42 = arith.constant 0 : index
    %c0_43 = arith.constant 0 : index
    %65 = vector.load %arg20[%c0_41, %c0_42, %c0_43] : memref<1x16x32xf32, #tpu.memory_space<vmem>>, vector<1x16x32xf32>
    %66 = vector.shape_cast %65 : vector<1x16x32xf32> to vector<16x32xf32>
    %c1 = arith.constant 1 : index
    %c0_44 = arith.constant 0 : index
    %c0_45 = arith.constant 0 : index
    %c0_46 = arith.constant 0 : index
    %67 = vector.load %arg25[%c1, %c0_44, %c0_45, %c0_46] : memref<6x1x16x32xf32, #tpu.memory_space<vmem>>, vector<1x1x16x32xf32>
    %68 = vector.shape_cast %67 : vector<1x1x16x32xf32> to vector<16x32xf32>
    %cst_47 = arith.constant 9.99999997E-7 : f32
    %69 = vector.broadcast %cst_47 : f32 to vector<16x32xf32>
    %70 = arith.maximumf %68, %69 : vector<16x32xf32>
    %71 = tpu.reciprocal %70 : vector<16x32xf32> -> vector<16x32xf32>
    %cst_48 = arith.constant 0.000000e+00 : f32
    %72 = vector.broadcast %cst_48 : f32 to vector<16x32xf32>
    %73 = arith.cmpf ogt, %66, %72 : vector<16x32xf32>
    %74 = arith.andi %73, %5 : vector<16x32xi1>
    %75 = arith.extui %74 : vector<16x32xi1> to vector<16x32xi32>
    %76 = arith.sitofp %75 : vector<16x32xi32> to vector<16x32xf32>
    %77 = arith.subf %66, %71 : vector<16x32xf32>
    %78 = math.absf %77 : vector<16x32xf32>
    %cst_49 = arith.constant 0.000000e+00 : f32
    %79 = vector.broadcast %cst_49 : f32 to vector<16x32xf32>
    %80 = arith.select %74, %78, %79 : vector<16x32xi1>, vector<16x32xf32>
    %81 = arith.addf %44, %80 : vector<16x32xf32>
    %82 = arith.addf %45, %76 : vector<16x32xf32>
    %c0_50 = arith.constant 0 : index
    %c0_51 = arith.constant 0 : index
    %c0_52 = arith.constant 0 : index
    %c0_53 = arith.constant 0 : index
    %83 = vector.load %arg9[%c0_50, %c0_51, %c0_52, %c0_53] : memref<1x3x16x32xbf16, #tpu.memory_space<vmem>>, vector<1x3x16x32xbf16>
    %84 = vector.shape_cast %83 : vector<1x3x16x32xbf16> to vector<3x16x32xbf16>
    %85 = arith.extf %84 : vector<3x16x32xbf16> to vector<3x16x32xf32>
    %c0_54 = arith.constant 0 : index
    %c0_55 = arith.constant 0 : index
    %c0_56 = arith.constant 0 : index
    %c0_57 = arith.constant 0 : index
    %86 = vector.load %arg3[%c0_54, %c0_55, %c0_56, %c0_57] : memref<1x3x16x32xbf16, #tpu.memory_space<vmem>>, vector<1x3x16x32xbf16>
    %87 = vector.shape_cast %86 : vector<1x3x16x32xbf16> to vector<3x16x32xbf16>
    %88 = arith.extf %87 : vector<3x16x32xbf16> to vector<3x16x32xf32>
    %c0_58 = arith.constant 0 : index
    %c0_59 = arith.constant 0 : index
    %c0_60 = arith.constant 0 : index
    %c0_61 = arith.constant 0 : index
    %89 = vector.load %arg15[%c0_58, %c0_59, %c0_60, %c0_61] : memref<1x3x16x32xbf16, #tpu.memory_space<vmem>>, vector<1x3x16x32xbf16>
    %90 = vector.shape_cast %89 : vector<1x3x16x32xbf16> to vector<3x16x32xbf16>
    %91 = arith.extf %90 : vector<3x16x32xbf16> to vector<3x16x32xf32>
    %92 = arith.subf %88, %85 : vector<3x16x32xf32>
    %93 = math.absf %92 : vector<3x16x32xf32>
    %cst_62 = arith.constant dense<0.000000e+00> : vector<16x32xf32>
    %94 = vector.multi_reduction <add>, %93, %cst_62 [0] : vector<3x16x32xf32> to vector<16x32xf32>
    %95 = arith.subf %91, %85 : vector<3x16x32xf32>
    %96 = math.absf %95 : vector<3x16x32xf32>
    %cst_63 = arith.constant dense<0.000000e+00> : vector<16x32xf32>
    %97 = vector.multi_reduction <add>, %96, %cst_63 [0] : vector<3x16x32xf32> to vector<16x32xf32>
    %98 = arith.minimumf %94, %97 : vector<16x32xf32>
    %cst_64 = arith.constant 0.000000e+00 : f32
    %99 = vector.broadcast %cst_64 : f32 to vector<16x32xf32>
    %100 = arith.select %5, %98, %99 : vector<16x32xi1>, vector<16x32xf32>
    %101 = arith.addf %64, %100 : vector<16x32xf32>
    %c0_65 = arith.constant 0 : index
    %c0_66 = arith.constant 0 : index
    %c0_67 = arith.constant 0 : index
    %102 = vector.load %arg21[%c0_65, %c0_66, %c0_67] : memref<1x16x32xf32, #tpu.memory_space<vmem>>, vector<1x16x32xf32>
    %103 = vector.shape_cast %102 : vector<1x16x32xf32> to vector<16x32xf32>
    %c2 = arith.constant 2 : index
    %c0_68 = arith.constant 0 : index
    %c0_69 = arith.constant 0 : index
    %c0_70 = arith.constant 0 : index
    %104 = vector.load %arg25[%c2, %c0_68, %c0_69, %c0_70] : memref<6x1x16x32xf32, #tpu.memory_space<vmem>>, vector<1x1x16x32xf32>
    %105 = vector.shape_cast %104 : vector<1x1x16x32xf32> to vector<16x32xf32>
    %cst_71 = arith.constant 9.99999997E-7 : f32
    %106 = vector.broadcast %cst_71 : f32 to vector<16x32xf32>
    %107 = arith.maximumf %105, %106 : vector<16x32xf32>
    %108 = tpu.reciprocal %107 : vector<16x32xf32> -> vector<16x32xf32>
    %cst_72 = arith.constant 0.000000e+00 : f32
    %109 = vector.broadcast %cst_72 : f32 to vector<16x32xf32>
    %110 = arith.cmpf ogt, %103, %109 : vector<16x32xf32>
    %111 = arith.andi %110, %5 : vector<16x32xi1>
    %112 = arith.extui %111 : vector<16x32xi1> to vector<16x32xi32>
    %113 = arith.sitofp %112 : vector<16x32xi32> to vector<16x32xf32>
    %114 = arith.subf %103, %108 : vector<16x32xf32>
    %115 = math.absf %114 : vector<16x32xf32>
    %cst_73 = arith.constant 0.000000e+00 : f32
    %116 = vector.broadcast %cst_73 : f32 to vector<16x32xf32>
    %117 = arith.select %111, %115, %116 : vector<16x32xi1>, vector<16x32xf32>
    %118 = arith.addf %81, %117 : vector<16x32xf32>
    %119 = arith.addf %82, %113 : vector<16x32xf32>
    %c0_74 = arith.constant 0 : index
    %c0_75 = arith.constant 0 : index
    %c0_76 = arith.constant 0 : index
    %c0_77 = arith.constant 0 : index
    %120 = vector.load %arg10[%c0_74, %c0_75, %c0_76, %c0_77] : memref<1x3x16x32xbf16, #tpu.memory_space<vmem>>, vector<1x3x16x32xbf16>
    %121 = vector.shape_cast %120 : vector<1x3x16x32xbf16> to vector<3x16x32xbf16>
    %122 = arith.extf %121 : vector<3x16x32xbf16> to vector<3x16x32xf32>
    %c0_78 = arith.constant 0 : index
    %c0_79 = arith.constant 0 : index
    %c0_80 = arith.constant 0 : index
    %c0_81 = arith.constant 0 : index
    %123 = vector.load %arg4[%c0_78, %c0_79, %c0_80, %c0_81] : memref<1x3x16x32xbf16, #tpu.memory_space<vmem>>, vector<1x3x16x32xbf16>
    %124 = vector.shape_cast %123 : vector<1x3x16x32xbf16> to vector<3x16x32xbf16>
    %125 = arith.extf %124 : vector<3x16x32xbf16> to vector<3x16x32xf32>
    %c0_82 = arith.constant 0 : index
    %c0_83 = arith.constant 0 : index
    %c0_84 = arith.constant 0 : index
    %c0_85 = arith.constant 0 : index
    %126 = vector.load %arg16[%c0_82, %c0_83, %c0_84, %c0_85] : memref<1x3x16x32xbf16, #tpu.memory_space<vmem>>, vector<1x3x16x32xbf16>
    %127 = vector.shape_cast %126 : vector<1x3x16x32xbf16> to vector<3x16x32xbf16>
    %128 = arith.extf %127 : vector<3x16x32xbf16> to vector<3x16x32xf32>
    %129 = arith.subf %125, %122 : vector<3x16x32xf32>
    %130 = math.absf %129 : vector<3x16x32xf32>
    %cst_86 = arith.constant dense<0.000000e+00> : vector<16x32xf32>
    %131 = vector.multi_reduction <add>, %130, %cst_86 [0] : vector<3x16x32xf32> to vector<16x32xf32>
    %132 = arith.subf %128, %122 : vector<3x16x32xf32>
    %133 = math.absf %132 : vector<3x16x32xf32>
    %cst_87 = arith.constant dense<0.000000e+00> : vector<16x32xf32>
    %134 = vector.multi_reduction <add>, %133, %cst_87 [0] : vector<3x16x32xf32> to vector<16x32xf32>
    %135 = arith.minimumf %131, %134 : vector<16x32xf32>
    %cst_88 = arith.constant 0.000000e+00 : f32
    %136 = vector.broadcast %cst_88 : f32 to vector<16x32xf32>
    %137 = arith.select %5, %135, %136 : vector<16x32xi1>, vector<16x32xf32>
    %138 = arith.addf %101, %137 : vector<16x32xf32>
    %c0_89 = arith.constant 0 : index
    %c0_90 = arith.constant 0 : index
    %c0_91 = arith.constant 0 : index
    %139 = vector.load %arg22[%c0_89, %c0_90, %c0_91] : memref<1x16x32xf32, #tpu.memory_space<vmem>>, vector<1x16x32xf32>
    %140 = vector.shape_cast %139 : vector<1x16x32xf32> to vector<16x32xf32>
    %c3 = arith.constant 3 : index
    %c0_92 = arith.constant 0 : index
    %c0_93 = arith.constant 0 : index
    %c0_94 = arith.constant 0 : index
    %141 = vector.load %arg25[%c3, %c0_92, %c0_93, %c0_94] : memref<6x1x16x32xf32, #tpu.memory_space<vmem>>, vector<1x1x16x32xf32>
    %142 = vector.shape_cast %141 : vector<1x1x16x32xf32> to vector<16x32xf32>
    %cst_95 = arith.constant 9.99999997E-7 : f32
    %143 = vector.broadcast %cst_95 : f32 to vector<16x32xf32>
    %144 = arith.maximumf %142, %143 : vector<16x32xf32>
    %145 = tpu.reciprocal %144 : vector<16x32xf32> -> vector<16x32xf32>
    %cst_96 = arith.constant 0.000000e+00 : f32
    %146 = vector.broadcast %cst_96 : f32 to vector<16x32xf32>
    %147 = arith.cmpf ogt, %140, %146 : vector<16x32xf32>
    %148 = arith.andi %147, %5 : vector<16x32xi1>
    %149 = arith.extui %148 : vector<16x32xi1> to vector<16x32xi32>
    %150 = arith.sitofp %149 : vector<16x32xi32> to vector<16x32xf32>
    %151 = arith.subf %140, %145 : vector<16x32xf32>
    %152 = math.absf %151 : vector<16x32xf32>
    %cst_97 = arith.constant 0.000000e+00 : f32
    %153 = vector.broadcast %cst_97 : f32 to vector<16x32xf32>
    %154 = arith.select %148, %152, %153 : vector<16x32xi1>, vector<16x32xf32>
    %155 = arith.addf %118, %154 : vector<16x32xf32>
    %156 = arith.addf %119, %150 : vector<16x32xf32>
    %c0_98 = arith.constant 0 : index
    %c0_99 = arith.constant 0 : index
    %c0_100 = arith.constant 0 : index
    %c0_101 = arith.constant 0 : index
    %157 = vector.load %arg11[%c0_98, %c0_99, %c0_100, %c0_101] : memref<1x3x16x32xbf16, #tpu.memory_space<vmem>>, vector<1x3x16x32xbf16>
    %158 = vector.shape_cast %157 : vector<1x3x16x32xbf16> to vector<3x16x32xbf16>
    %159 = arith.extf %158 : vector<3x16x32xbf16> to vector<3x16x32xf32>
    %c0_102 = arith.constant 0 : index
    %c0_103 = arith.constant 0 : index
    %c0_104 = arith.constant 0 : index
    %c0_105 = arith.constant 0 : index
    %160 = vector.load %arg5[%c0_102, %c0_103, %c0_104, %c0_105] : memref<1x3x16x32xbf16, #tpu.memory_space<vmem>>, vector<1x3x16x32xbf16>
    %161 = vector.shape_cast %160 : vector<1x3x16x32xbf16> to vector<3x16x32xbf16>
    %162 = arith.extf %161 : vector<3x16x32xbf16> to vector<3x16x32xf32>
    %c0_106 = arith.constant 0 : index
    %c0_107 = arith.constant 0 : index
    %c0_108 = arith.constant 0 : index
    %c0_109 = arith.constant 0 : index
    %163 = vector.load %arg17[%c0_106, %c0_107, %c0_108, %c0_109] : memref<1x3x16x32xbf16, #tpu.memory_space<vmem>>, vector<1x3x16x32xbf16>
    %164 = vector.shape_cast %163 : vector<1x3x16x32xbf16> to vector<3x16x32xbf16>
    %165 = arith.extf %164 : vector<3x16x32xbf16> to vector<3x16x32xf32>
    %166 = arith.subf %162, %159 : vector<3x16x32xf32>
    %167 = math.absf %166 : vector<3x16x32xf32>
    %cst_110 = arith.constant dense<0.000000e+00> : vector<16x32xf32>
    %168 = vector.multi_reduction <add>, %167, %cst_110 [0] : vector<3x16x32xf32> to vector<16x32xf32>
    %169 = arith.subf %165, %159 : vector<3x16x32xf32>
    %170 = math.absf %169 : vector<3x16x32xf32>
    %cst_111 = arith.constant dense<0.000000e+00> : vector<16x32xf32>
    %171 = vector.multi_reduction <add>, %170, %cst_111 [0] : vector<3x16x32xf32> to vector<16x32xf32>
    %172 = arith.minimumf %168, %171 : vector<16x32xf32>
    %cst_112 = arith.constant 0.000000e+00 : f32
    %173 = vector.broadcast %cst_112 : f32 to vector<16x32xf32>
    %174 = arith.select %5, %172, %173 : vector<16x32xi1>, vector<16x32xf32>
    %175 = arith.addf %138, %174 : vector<16x32xf32>
    %c0_113 = arith.constant 0 : index
    %c0_114 = arith.constant 0 : index
    %c0_115 = arith.constant 0 : index
    %176 = vector.load %arg23[%c0_113, %c0_114, %c0_115] : memref<1x16x32xf32, #tpu.memory_space<vmem>>, vector<1x16x32xf32>
    %177 = vector.shape_cast %176 : vector<1x16x32xf32> to vector<16x32xf32>
    %c4 = arith.constant 4 : index
    %c0_116 = arith.constant 0 : index
    %c0_117 = arith.constant 0 : index
    %c0_118 = arith.constant 0 : index
    %178 = vector.load %arg25[%c4, %c0_116, %c0_117, %c0_118] : memref<6x1x16x32xf32, #tpu.memory_space<vmem>>, vector<1x1x16x32xf32>
    %179 = vector.shape_cast %178 : vector<1x1x16x32xf32> to vector<16x32xf32>
    %cst_119 = arith.constant 9.99999997E-7 : f32
    %180 = vector.broadcast %cst_119 : f32 to vector<16x32xf32>
    %181 = arith.maximumf %179, %180 : vector<16x32xf32>
    %182 = tpu.reciprocal %181 : vector<16x32xf32> -> vector<16x32xf32>
    %cst_120 = arith.constant 0.000000e+00 : f32
    %183 = vector.broadcast %cst_120 : f32 to vector<16x32xf32>
    %184 = arith.cmpf ogt, %177, %183 : vector<16x32xf32>
    %185 = arith.andi %184, %5 : vector<16x32xi1>
    %186 = arith.extui %185 : vector<16x32xi1> to vector<16x32xi32>
    %187 = arith.sitofp %186 : vector<16x32xi32> to vector<16x32xf32>
    %188 = arith.subf %177, %182 : vector<16x32xf32>
    %189 = math.absf %188 : vector<16x32xf32>
    %cst_121 = arith.constant 0.000000e+00 : f32
    %190 = vector.broadcast %cst_121 : f32 to vector<16x32xf32>
    %191 = arith.select %185, %189, %190 : vector<16x32xi1>, vector<16x32xf32>
    %192 = arith.addf %155, %191 : vector<16x32xf32>
    %193 = arith.addf %156, %187 : vector<16x32xf32>
    %c0_122 = arith.constant 0 : index
    %c0_123 = arith.constant 0 : index
    %c0_124 = arith.constant 0 : index
    %c0_125 = arith.constant 0 : index
    %194 = vector.load %arg12[%c0_122, %c0_123, %c0_124, %c0_125] : memref<1x3x16x32xbf16, #tpu.memory_space<vmem>>, vector<1x3x16x32xbf16>
    %195 = vector.shape_cast %194 : vector<1x3x16x32xbf16> to vector<3x16x32xbf16>
    %196 = arith.extf %195 : vector<3x16x32xbf16> to vector<3x16x32xf32>
    %c0_126 = arith.constant 0 : index
    %c0_127 = arith.constant 0 : index
    %c0_128 = arith.constant 0 : index
    %c0_129 = arith.constant 0 : index
    %197 = vector.load %arg6[%c0_126, %c0_127, %c0_128, %c0_129] : memref<1x3x16x32xbf16, #tpu.memory_space<vmem>>, vector<1x3x16x32xbf16>
    %198 = vector.shape_cast %197 : vector<1x3x16x32xbf16> to vector<3x16x32xbf16>
    %199 = arith.extf %198 : vector<3x16x32xbf16> to vector<3x16x32xf32>
    %c0_130 = arith.constant 0 : index
    %c0_131 = arith.constant 0 : index
    %c0_132 = arith.constant 0 : index
    %c0_133 = arith.constant 0 : index
    %200 = vector.load %arg18[%c0_130, %c0_131, %c0_132, %c0_133] : memref<1x3x16x32xbf16, #tpu.memory_space<vmem>>, vector<1x3x16x32xbf16>
    %201 = vector.shape_cast %200 : vector<1x3x16x32xbf16> to vector<3x16x32xbf16>
    %202 = arith.extf %201 : vector<3x16x32xbf16> to vector<3x16x32xf32>
    %203 = arith.subf %199, %196 : vector<3x16x32xf32>
    %204 = math.absf %203 : vector<3x16x32xf32>
    %cst_134 = arith.constant dense<0.000000e+00> : vector<16x32xf32>
    %205 = vector.multi_reduction <add>, %204, %cst_134 [0] : vector<3x16x32xf32> to vector<16x32xf32>
    %206 = arith.subf %202, %196 : vector<3x16x32xf32>
    %207 = math.absf %206 : vector<3x16x32xf32>
    %cst_135 = arith.constant dense<0.000000e+00> : vector<16x32xf32>
    %208 = vector.multi_reduction <add>, %207, %cst_135 [0] : vector<3x16x32xf32> to vector<16x32xf32>
    %209 = arith.minimumf %205, %208 : vector<16x32xf32>
    %cst_136 = arith.constant 0.000000e+00 : f32
    %210 = vector.broadcast %cst_136 : f32 to vector<16x32xf32>
    %211 = arith.select %5, %209, %210 : vector<16x32xi1>, vector<16x32xf32>
    %212 = arith.addf %175, %211 : vector<16x32xf32>
    %c0_137 = arith.constant 0 : index
    %c0_138 = arith.constant 0 : index
    %c0_139 = arith.constant 0 : index
    %213 = vector.load %arg24[%c0_137, %c0_138, %c0_139] : memref<1x16x32xf32, #tpu.memory_space<vmem>>, vector<1x16x32xf32>
    %214 = vector.shape_cast %213 : vector<1x16x32xf32> to vector<16x32xf32>
    %c5 = arith.constant 5 : index
    %c0_140 = arith.constant 0 : index
    %c0_141 = arith.constant 0 : index
    %c0_142 = arith.constant 0 : index
    %215 = vector.load %arg25[%c5, %c0_140, %c0_141, %c0_142] : memref<6x1x16x32xf32, #tpu.memory_space<vmem>>, vector<1x1x16x32xf32>
    %216 = vector.shape_cast %215 : vector<1x1x16x32xf32> to vector<16x32xf32>
    %cst_143 = arith.constant 9.99999997E-7 : f32
    %217 = vector.broadcast %cst_143 : f32 to vector<16x32xf32>
    %218 = arith.maximumf %216, %217 : vector<16x32xf32>
    %219 = tpu.reciprocal %218 : vector<16x32xf32> -> vector<16x32xf32>
    %cst_144 = arith.constant 0.000000e+00 : f32
    %220 = vector.broadcast %cst_144 : f32 to vector<16x32xf32>
    %221 = arith.cmpf ogt, %214, %220 : vector<16x32xf32>
    %222 = arith.andi %221, %5 : vector<16x32xi1>
    %223 = arith.extui %222 : vector<16x32xi1> to vector<16x32xi32>
    %224 = arith.sitofp %223 : vector<16x32xi32> to vector<16x32xf32>
    %225 = arith.subf %214, %219 : vector<16x32xf32>
    %226 = math.absf %225 : vector<16x32xf32>
    %cst_145 = arith.constant 0.000000e+00 : f32
    %227 = vector.broadcast %cst_145 : f32 to vector<16x32xf32>
    %228 = arith.select %222, %226, %227 : vector<16x32xi1>, vector<16x32xf32>
    %229 = arith.addf %192, %228 : vector<16x32xf32>
    %230 = arith.addf %193, %224 : vector<16x32xf32>
    %231 = vector.shape_cast %212 : vector<16x32xf32> to vector<1x16x32xf32>
    %cst_146 = arith.constant dense<0.000000e+00> : vector<1xf32>
    %232 = vector.multi_reduction <add>, %231, %cst_146 [1, 2] : vector<1x16x32xf32> to vector<1xf32>
    %233 = vector.shape_cast %232 : vector<1xf32> to vector<1x1x1xf32>
    %234 = vector.extract %233[0, 0, 0] : f32 from vector<1x1x1xf32>
    %235 = vector.shape_cast %229 : vector<16x32xf32> to vector<1x16x32xf32>
    %cst_147 = arith.constant dense<0.000000e+00> : vector<1xf32>
    %236 = vector.multi_reduction <add>, %235, %cst_147 [1, 2] : vector<1x16x32xf32> to vector<1xf32>
    %237 = vector.shape_cast %236 : vector<1xf32> to vector<1x1x1xf32>
    %238 = vector.extract %237[0, 0, 0] : f32 from vector<1x1x1xf32>
    %239 = vector.shape_cast %230 : vector<16x32xf32> to vector<1x16x32xf32>
    %cst_148 = arith.constant dense<0.000000e+00> : vector<1xf32>
    %240 = vector.multi_reduction <add>, %239, %cst_148 [1, 2] : vector<1x16x32xf32> to vector<1xf32>
    %241 = vector.shape_cast %240 : vector<1xf32> to vector<1x1x1xf32>
    %242 = vector.extract %241[0, 0, 0] : f32 from vector<1x1x1xf32>
    %243 = tpu.iota {dimensions = array<i32: 0>} : vector<8x128xi32>
    %c0_i32 = arith.constant 0 : i32
    %244 = vector.broadcast %c0_i32 : i32 to vector<8x128xi32>
    %245 = arith.cmpi eq, %243, %244 : vector<8x128xi32>
    %c1_i32 = arith.constant 1 : i32
    %246 = vector.broadcast %c1_i32 : i32 to vector<8x128xi32>
    %247 = arith.cmpi eq, %243, %246 : vector<8x128xi32>
    %c2_i32 = arith.constant 2 : i32
    %248 = vector.broadcast %c2_i32 : i32 to vector<8x128xi32>
    %249 = arith.cmpi eq, %243, %248 : vector<8x128xi32>
    %cst_149 = arith.constant 0.000000e+00 : f32
    %250 = vector.broadcast %242 : f32 to vector<8x128xf32>
    %251 = vector.broadcast %cst_149 : f32 to vector<8x128xf32>
    %252 = arith.select %249, %250, %251 : vector<8x128xi1>, vector<8x128xf32>
    %253 = vector.broadcast %238 : f32 to vector<8x128xf32>
    %254 = arith.select %247, %253, %252 : vector<8x128xi1>, vector<8x128xf32>
    %255 = vector.broadcast %234 : f32 to vector<8x128xf32>
    %256 = arith.select %245, %255, %254 : vector<8x128xi1>, vector<8x128xf32>
    %c0_150 = arith.constant 0 : index
    %c0_151 = arith.constant 0 : index
    %c0_152 = arith.constant 0 : index
    %257 = vector.load %arg26[%c0_150, %c0_151, %c0_152] : memref<1x8x128xf32, #tpu.memory_space<vmem>>, vector<1x8x128xf32>
    %258 = vector.shape_cast %257 : vector<1x8x128xf32> to vector<8x128xf32>
    %259 = vector.shape_cast %256 : vector<8x128xf32> to vector<1x8x128xf32>
    tpu.vector_store %arg26[%c0_150, %c0_151, %c0_152], %259 {strides = array<i32>} : memref<1x8x128xf32, #tpu.memory_space<vmem>>, vector<1x8x128xf32>,
    return
  }
  func.func @transform_0(%arg0: i32) -> (i32, i32, i32, i32) {
    %c0_i32 = arith.constant 0 : i32
    %c0_i32_0 = arith.constant 0 : i32
    %c0_i32_1 = arith.constant 0 : i32
    %c0_i32_2 = arith.constant 0 : i32
    return %c0_i32, %c0_i32_0, %arg0, %c0_i32_1 : i32, i32, i32, i32
  }
  func.func @transform_1(%arg0: i32) -> (i32, i32, i32, i32) {
    %c0_i32 = arith.constant 0 : i32
    %c0_i32_0 = arith.constant 0 : i32
    %c0_i32_1 = arith.constant 0 : i32
    %c0_i32_2 = arith.constant 0 : i32
    return %c0_i32, %c0_i32_0, %arg0, %c0_i32_1 : i32, i32, i32, i32
  }
  func.func @transform_2(%arg0: i32) -> (i32, i32, i32, i32) {
    %c0_i32 = arith.constant 0 : i32
    %c0_i32_0 = arith.constant 0 : i32
    %c0_i32_1 = arith.constant 0 : i32
    %c0_i32_2 = arith.constant 0 : i32
    return %c0_i32, %c0_i32_0, %arg0, %c0_i32_1 : i32, i32, i32, i32
  }
  func.func @transform_3(%arg0: i32) -> (i32, i32, i32, i32) {
    %c0_i32 = arith.constant 0 : i32
    %c0_i32_0 = arith.constant 0 : i32
    %c0_i32_1 = arith.constant 0 : i32
    %c0_i32_2 = arith.constant 0 : i32
    return %c0_i32, %c0_i32_0, %arg0, %c0_i32_1 : i32, i32, i32, i32
  }
  func.func @transform_4(%arg0: i32) -> (i32, i32, i32, i32) {
    %c0_i32 = arith.constant 0 : i32
    %c0_i32_0 = arith.constant 0 : i32
    %c0_i32_1 = arith.constant 0 : i32
    %c0_i32_2 = arith.constant 0 : i32
    return %c0_i32, %c0_i32_0, %arg0, %c0_i32_1 : i32, i32, i32, i32
  }
  func.func @transform_5(%arg0: i32) -> (i32, i32, i32, i32) {
    %c0_i32 = arith.constant 0 : i32
    %c0_i32_0 = arith.constant 0 : i32
    %c0_i32_1 = arith.constant 0 : i32
    %c0_i32_2 = arith.constant 0 : i32
    return %c0_i32, %c0_i32_0, %arg0, %c0_i32_1 : i32, i32, i32, i32
  }
  func.func @transform_6(%arg0: i32) -> (i32, i32, i32, i32) {
    %c0_i32 = arith.constant 0 : i32
    %c0_i32_0 = arith.constant 0 : i32
    %c0_i32_1 = arith.constant 0 : i32
    %c0_i32_2 = arith.constant 0 : i32
    return %c0_i32, %c0_i32_0, %arg0, %c0_i32_1 : i32, i32, i32, i32
  }
  func.func @transform_7(%arg0: i32) -> (i32, i32, i32, i32) {
    %c0_i32 = arith.constant 0 : i32
    %c0_i32_0 = arith.constant 0 : i32
    %c0_i32_1 = arith.constant 0 : i32
    %c0_i32_2 = arith.constant 0 : i32
    return %c0_i32, %c0_i32_0, %arg0, %c0_i32_1 : i32, i32, i32, i32
  }
  func.func @transform_8(%arg0: i32) -> (i32, i32, i32, i32) {
    %c0_i32 = arith.constant 0 : i32
    %c0_i32_0 = arith.constant 0 : i32
    %c0_i32_1 = arith.constant 0 : i32
    %c0_i32_2 = arith.constant 0 : i32
    return %c0_i32, %c0_i32_0, %arg0, %c0_i32_1 : i32, i32, i32, i32
  }
  func.func @transform_9(%arg0: i32) -> (i32, i32, i32, i32) {
    %c0_i32 = arith.constant 0 : i32
    %c0_i32_0 = arith.constant 0 : i32
    %c0_i32_1 = arith.constant 0 : i32
    %c0_i32_2 = arith.constant 0 : i32
    return %c0_i32, %c0_i32_0, %arg0, %c0_i32_1 : i32, i32, i32, i32
  }
  func.func @transform_10(%arg0: i32) -> (i32, i32, i32, i32) {
    %c0_i32 = arith.constant 0 : i32
    %c0_i32_0 = arith.constant 0 : i32
    %c0_i32_1 = arith.constant 0 : i32
    %c0_i32_2 = arith.constant 0 : i32
    return %c0_i32, %c0_i32_0, %arg0, %c0_i32_1 : i32, i32, i32, i32
  }
  func.func @transform_11(%arg0: i32) -> (i32, i32, i32, i32) {
    %c0_i32 = arith.constant 0 : i32
    %c0_i32_0 = arith.constant 0 : i32
    %c0_i32_1 = arith.constant 0 : i32
    %c0_i32_2 = arith.constant 0 : i32
    return %c0_i32, %c0_i32_0, %arg0, %c0_i32_1 : i32, i32, i32, i32
  }
  func.func @transform_12(%arg0: i32) -> (i32, i32, i32, i32) {
    %c0_i32 = arith.constant 0 : i32
    %c0_i32_0 = arith.constant 0 : i32
    %c0_i32_1 = arith.constant 0 : i32
    %c0_i32_2 = arith.constant 0 : i32
    return %c0_i32, %c0_i32_0, %arg0, %c0_i32_1 : i32, i32, i32, i32
  }
  func.func @transform_13(%arg0: i32) -> (i32, i32, i32, i32) {
    %c0_i32 = arith.constant 0 : i32
    %c0_i32_0 = arith.constant 0 : i32
    %c0_i32_1 = arith.constant 0 : i32
    %c0_i32_2 = arith.constant 0 : i32
    return %c0_i32, %c0_i32_0, %arg0, %c0_i32_1 : i32, i32, i32, i32
  }
  func.func @transform_14(%arg0: i32) -> (i32, i32, i32, i32) {
    %c0_i32 = arith.constant 0 : i32
    %c0_i32_0 = arith.constant 0 : i32
    %c0_i32_1 = arith.constant 0 : i32
    %c0_i32_2 = arith.constant 0 : i32
    return %c0_i32, %c0_i32_0, %arg0, %c0_i32_1 : i32, i32, i32, i32
  }
  func.func @transform_15(%arg0: i32) -> (i32, i32, i32, i32) {
    %c0_i32 = arith.constant 0 : i32
    %c0_i32_0 = arith.constant 0 : i32
    %c0_i32_1 = arith.constant 0 : i32
    %c0_i32_2 = arith.constant 0 : i32
    return %c0_i32, %c0_i32_0, %arg0, %c0_i32_1 : i32, i32, i32, i32
  }
  func.func @transform_16(%arg0: i32) -> (i32, i32, i32, i32) {
    %c0_i32 = arith.constant 0 : i32
    %c0_i32_0 = arith.constant 0 : i32
    %c0_i32_1 = arith.constant 0 : i32
    %c0_i32_2 = arith.constant 0 : i32
    return %c0_i32, %c0_i32_0, %arg0, %c0_i32_1 : i32, i32, i32, i32
  }
  func.func @transform_17(%arg0: i32) -> (i32, i32, i32, i32) {
    %c0_i32 = arith.constant 0 : i32
    %c0_i32_0 = arith.constant 0 : i32
    %c0_i32_1 = arith.constant 0 : i32
    %c0_i32_2 = arith.constant 0 : i32
    return %c0_i32, %c0_i32_0, %arg0, %c0_i32_1 : i32, i32, i32, i32
  }
  func.func @transform_18(%arg0: i32) -> (i32, i32, i32) {
    %c0_i32 = arith.constant 0 : i32
    %c0_i32_0 = arith.constant 0 : i32
    %c0_i32_1 = arith.constant 0 : i32
    return %c0_i32, %arg0, %c0_i32_0 : i32, i32, i32
  }
  func.func @transform_19(%arg0: i32) -> (i32, i32, i32) {
    %c0_i32 = arith.constant 0 : i32
    %c0_i32_0 = arith.constant 0 : i32
    %c0_i32_1 = arith.constant 0 : i32
    return %c0_i32, %arg0, %c0_i32_0 : i32, i32, i32
  }
  func.func @transform_20(%arg0: i32) -> (i32, i32, i32) {
    %c0_i32 = arith.constant 0 : i32
    %c0_i32_0 = arith.constant 0 : i32
    %c0_i32_1 = arith.constant 0 : i32
    return %c0_i32, %arg0, %c0_i32_0 : i32, i32, i32
  }
  func.func @transform_21(%arg0: i32) -> (i32, i32, i32) {
    %c0_i32 = arith.constant 0 : i32
    %c0_i32_0 = arith.constant 0 : i32
    %c0_i32_1 = arith.constant 0 : i32
    return %c0_i32, %arg0, %c0_i32_0 : i32, i32, i32
  }
  func.func @transform_22(%arg0: i32) -> (i32, i32, i32) {
    %c0_i32 = arith.constant 0 : i32
    %c0_i32_0 = arith.constant 0 : i32
    %c0_i32_1 = arith.constant 0 : i32
    return %c0_i32, %arg0, %c0_i32_0 : i32, i32, i32
  }
  func.func @transform_23(%arg0: i32) -> (i32, i32, i32) {
    %c0_i32 = arith.constant 0 : i32
    %c0_i32_0 = arith.constant 0 : i32
    %c0_i32_1 = arith.constant 0 : i32
    return %c0_i32, %arg0, %c0_i32_0 : i32, i32, i32
  }
  func.func @transform_24(%arg0: i32) -> (i32, i32, i32, i32) {
    %c0_i32 = arith.constant 0 : i32
    %c0_i32_0 = arith.constant 0 : i32
    %c0_i32_1 = arith.constant 0 : i32
    %c0_i32_2 = arith.constant 0 : i32
    return %c0_i32, %c0_i32_0, %arg0, %c0_i32_1 : i32, i32, i32, i32
  }
  func.func @transform_25(%arg0: i32) -> (i32, i32, i32) {
    %c0_i32 = arith.constant 0 : i32
    %c0_i32_0 = arith.constant 0 : i32
    %c0_i32_1 = arith.constant 0 : i32
    return %arg0, %c0_i32, %c0_i32_0 : i32, i32, i32
  }
}

</mosaic_0001>

<bundles_post_ra>
// kernel: spatial_temp_net_forward.1
= control target key start
LH: loop header
LB: loop body
LE: loop exit
PB: predicated region body
PF: predicated region fallthrough
CT: control target
= control target key end

     0   :  { %s11218_s0 = inlined_call_operand.vmem [shape: bf16[1,3,20,32], index: 0, kind: input, shape index: {}]   ;;  %s11219_s1 = inlined_call_operand.vmem [shape: bf16[1,3,20,32], index: 1, kind: input, shape index: {}]   ;;  %s11220_s2 = inlined_call_operand.vmem [shape: bf16[1,3,20,32], index: 2, kind: input, shape index: {}]   ;;  %s11221_s3 = inlined_call_operand.vmem [shape: bf16[1,3,20,32], index: 3, kind: input, shape index: {}]   ;;  %s11222_s4 = inlined_call_operand.vmem [shape: bf16[1,3,20,32], index: 4, kind: input, shape index: {}]   ;;  %s11223_s5 = inlined_call_operand.vmem [shape: bf16[1,3,20,32], index: 5, kind: input, shape index: {}]   ;;  %s11224_s6 = inlined_call_operand.vmem [shape: bf16[1,3,20,32], index: 6, kind: input, shape index: {}]   ;;  %s11225_s7 = inlined_call_operand.vmem [shape: bf16[1,3,20,32], index: 7, kind: input, shape index: {}]   ;;  %s11226_s8 = inlined_call_operand.vmem [shape: bf16[1,3,20,32], index: 8, kind: input, shape index: {}]   ;;  %s11227_s9 = inlined_call_operand.vmem [shape: bf16[1,3,20,32], index: 9, kind: input, shape index: {}]   ;;  %s11228_s10 = inlined_call_operand.vmem [shape: bf16[1,3,20,32], index: 10, kind: input, shape index: {}]   ;;  %s11229_s11 = inlined_call_operand.vmem [shape: bf16[1,3,20,32], index: 11, kind: input, shape index: {}]   ;;  %s11230_s12 = inlined_call_operand.vmem [shape: bf16[1,3,20,32], index: 12, kind: input, shape index: {}]   ;;  %s11231_s13 = inlined_call_operand.vmem [shape: bf16[1,3,20,32], index: 13, kind: input, shape index: {}]   ;;  %s11232_s14 = inlined_call_operand.vmem [shape: bf16[1,3,20,32], index: 14, kind: input, shape index: {}]   ;;  %s11233_s15 = inlined_call_operand.hbm [shape: bf16[1,3,20,32], index: 15, kind: input, shape index: {}]   ;;  %s11234_s16 = inlined_call_operand.hbm [shape: bf16[1,3,20,32], index: 16, kind: input, shape index: {}]   ;;  %s11235_s17 = inlined_call_operand.hbm [shape: bf16[1,3,20,32], index: 17, kind: input, shape index: {}]   ;;  %s11236_s18 = inlined_call_operand.vmem [shape: f32[1,20,32], index: 18, kind: input, shape index: {}]   ;;  %s11237_s19 = inlined_call_operand.vmem [shape: f32[1,20,32], index: 19, kind: input, shape index: {}]   ;;  %s11238_s20 = inlined_call_operand.vmem [shape: f32[1,20,32], index: 20, kind: input, shape index: {}]   ;;  %s11239_s21 = inlined_call_operand.vmem [shape: f32[1,20,32], index: 21, kind: input, shape index: {}]   ;;  %s11240_s22 = inlined_call_operand.vmem [shape: f32[1,20,32], index: 22, kind: input, shape index: {}]   ;;  %s11241_s23 = inlined_call_operand.vmem [shape: f32[1,20,32], index: 23, kind: input, shape index: {}]   ;;  %s11242_s24 = inlined_call_operand.vmem [shape: f32[6,1,20,32], index: 24, kind: input, shape index: {}]   ;;  %s11243_s25 = inlined_call_operand.vmem [shape: f32[2,8,128], index: 25, kind: output, shape index: {}]  }
   0x1   :  { %11259 = sst [smem:[#allocation40_spill]] %s11218_s0 }
   0x2   :  { %11260 = sst [smem:[#allocation41_spill]] %s11219_s1 }
   0x3   :  { %11261 = sst [smem:[#allocation42_spill]] %s11220_s2 }
   0x4   :  { %11262 = sst [smem:[#allocation43_spill]] %s11221_s3 }
   0x5   :  { %11263 = sst [smem:[#allocation44_spill]] %s11222_s4 }
   0x6   :  { %11264 = sst [smem:[#allocation45_spill]] %s11223_s5 }
   0x7   :  { %11265 = sst [smem:[#allocation46_spill]] %s11224_s6 }
   0x8   :  { %11266 = sst [smem:[#allocation47_spill]] %s11225_s7 }
   0x9   :  { %11267 = sst [smem:[#allocation48_spill]] %s11226_s8 }
   0xa   :  { %11268 = sst [smem:[#allocation49_spill]] %s11227_s9 }
   0xb   :  { %11269 = sst [smem:[#allocation50_spill]] %s11228_s10 }
   0xc   :  { %11270 = sst [smem:[#allocation51_spill]] %s11229_s11 }
   0xd   :  { %11271 = sst [smem:[#allocation52_spill]] %s11230_s12 }
   0xe   :  { %11272 = sst [smem:[#allocation53_spill]] %s11231_s13 }
   0xf   :  { %11273 = sst [smem:[#allocation54_spill]] %s11232_s14 }
  0x10   :  { %11274 = sst [smem:[#allocation55_spill]] %s11233_s15 }
  0x11   :  { %11275 = sst [smem:[#allocation56_spill]] %s11234_s16 }
  0x12   :  { %11276 = sst [smem:[#allocation57_spill]] %s11235_s17 }
  0x13   :  { %11277 = sst [smem:[#allocation58_spill]] %s11236_s18 }
  0x14   :  { %11278 = sst [smem:[#allocation59_spill]] %s11237_s19 }
  0x15   :  { %11279 = sst [smem:[#allocation60_spill]] %s11238_s20 }
  0x16   :  { %11280 = sst [smem:[#allocation61_spill]] %s11239_s21 }
  0x17   :  { %11281 = sst [smem:[#allocation62_spill]] %s11240_s22 }
  0x18   :  { %11282 = sst [smem:[#allocation63_spill]] %s11241_s23 }
  0x19   :  { %11283 = sst [smem:[#allocation64_spill]] %s11242_s24 }
  0x1a   :  { %11284 = sst [smem:[#allocation65_spill]] %s11243_s25 }
  0x1b   :  { %30 = vsyncpa [#allocation18], 0 }
  0x1c   :  { %32 = vsyncpa [#allocation18 + $0x1], 0 }
  0x1d   :  { %33 = vsyncpa [#allocation20], 0 }
  0x1e   :  { %35 = vsyncpa [#allocation20 + $0x1], 0  ;;  %s9510_s29 = smov 0   ;;  %s9512_s2 = smov 0  }
  0x1f   :  { %s9514_s6 = smov 0   ;;  %s9516_s30 = smov 0  }
  0x20 LB: > { %11285 = sst [smem:[#allocation31_spill]] %s8842_s2  ;;  %s9529_s7 = sadd.s32 4294967295, %s8850_s30   ;;  %s8850_s30 = sphi %s9516_s30, %s11496_s30   ;;  %s8846_s6 = sphi %s9514_s6, %s11499_s6   ;;  %s8842_s2 = sphi %s9512_s2, %s11498_s2   ;;  %s8838_s29 = sphi %s9510_s29, %s11497_s29  }
  0x21   : > { %11286 = sst [smem:[#allocation32_spill]] %s8846_s6  ;;  %s9532_s3 = sadd.s32 1, %s8850_s30  }
  0x22   : > { %11287 = sst [smem:[#allocation33_spill]] %s9529_s7  ;;  %s45_s26 = ssub.s32 %s8850_s30, %s9532_s3 }
  0x23   : > { %11288 = sst [smem:[#allocation34_spill]] %s9532_s3  ;;  %s48_s1 = sadd.s32 1, %s8846_s6 }
  0x24   : > { %p46_p0 = scmp.eq.s32.totalorder %s45_s26, 0  ;;  %p55_p1 = scmp.ne.s32.totalorder %s8846_s6, %s8842_s2 }
  0x25   : > { %p56_p2 = scmp.eq.s32.totalorder %s8850_s30, 0  ;;  %p451_p3 = scmp.ne.s32.totalorder %s8842_s2, %s8838_s29 }
  0x26   : > { %s9542_s8 = scalar_select %p46_p0, %s8846_s6, %s48_s1  }
  0x27   : > { %p9544_p4 = por %p56_p2, %p55_p1  ;;  %p452_p5 = scmp.eq.s32.totalorder %s9529_s7, 0 }
  0x28   : > { %11289 = sst [smem:[#allocation35_spill]] %s9542_s8  ;;  %p6587_p7 = scmp.ge.s32.totalorder %s8850_s30, 2 }
  0x29   : > { %p9549_p6 = por %p452_p5, %p451_p3 }
  0x2a   : > { %731 = sbr.rel (%p6587_p7) target bundleno = 1116 (0x45c), region = 16 }
  0x31   : > { %734 = sbr.rel (!%p9544_p4) target bundleno = 111 (0x6f), region = 20  ;;  %s736_s28 = sand.u32 (%p9544_p4), 1, %s8846_s6  }
  0x32   : > { %s6588_s9 = sshll.u32 (%p9544_p4), %s8850_s30, 1  ;;  %s7162_s5 = smul.u32 (%p9544_p4), 24, %s736_s28 }
  0x33   : > { %s740_s0 = ssub.s32 (%p9544_p4), 3, %s6588_s9  ;;  %s6859_s29 = sshll.u32 (%p9544_p4), %s8850_s30, 3 }
  0x34   : > { %p741_p8 = scmp.lt.s32.totalorder (%p9544_p4), %s740_s0, 2  ;;  %s11292_s8 = sld [smem:[#allocation40_spill]] (%p9544_p4) }
  0x35   : > { %s9567_s23 = scalar_lea.vmem (%p9544_p4), [#allocation2], %s7162_s5  }
  0x38   : > { %s11501_s0 = smov (!%p741_p8, %s740_s0), 2 }
  0x39   : > { %s743_s25 = smul.u32 192, %s11501_s0 }
  0x3a   : > { %s9562_s3 = scalar_lea.vmem %s11292_s8, %s6859_s29  }
  0x3b   : > { %p6591_p9 = scmp.eq.s32.totalorder %s743_s25, 0 }
  0x3c   : > { %s9570_s22 = sshrl.u32 (!%p6591_p9), %s11501_s0, 1 }
  0x3d   : > { %749 = sbr.rel (%p6591_p9) target bundleno = 111 (0x6f), region = 24  ;;  %p6592_p10 = scmp.le.s32.totalorder (!%p6591_p9), %s9570_s22, 0 }
  0x44   : > { %5968 = sbr.rel (%p6592_p10) target bundleno = 89 (0x59), region = 1544  ;;  %s11293_s28 = smov (!%p6592_p10), %s9567_s23 }
  0x45   : > { %s11294_s8 = smov (!%p6592_p10), %s9562_s3  ;;  %s9579_s9 = smov (!%p6592_p10), 0  }
  0x46   : > { %s9581_s29 = smov (!%p6592_p10), 0  }
  0x4b LB: >> { %v765_v0 = vld [vmem:[%s8858_s8] sm:$0xf]  ;;  %v767_v1 = vld [vmem:[%s8858_s8 + $0x4] sm:$0xf]  ;;  %v769_v2 = vld [vmem:[%s8858_s8 + $0xc] sm:$0xf]  ;;  %s8866_s29 = sphi %s9581_s29, %s759_s29   ;;  %s8862_s9 = sphi %s9579_s9, %s11295_s9   ;;  %s8858_s8 = sphi %s11294_s8, %s782_s8   ;;  %s8854_s28 = sphi %s11293_s28, %s783_s28  }
  0x4c   : >> { %766 = vst [vmem:[%s8854_s28] sm:$0xf] %v765_v0  ;;  %768 = vst [vmem:[%s8854_s28 + $0x4] sm:$0xf] %v767_v1  ;;  %v771_v3 = vld [vmem:[%s8858_s8 + $0x10] sm:$0xf]  ;;  %s777_s25 = sadd.s32 1, %s8862_s9 }
  0x4d   : >> { %770 = vst [vmem:[%s8854_s28 + $0x8] sm:$0xf] %v769_v2  ;;  %v773_v4 = vld [vmem:[%s8858_s8 + $0x18] sm:$0xf]  ;;  %v775_v5 = vld [vmem:[%s8858_s8 + $0x1c] sm:$0xf]  ;;  %p778_p11 = scmp.ge.s32.totalorder %s777_s25, %s9570_s22 }
  0x4e   : >> { %772 = vst [vmem:[%s8854_s28 + $0xc] sm:$0xf] %v771_v3  ;;  %774 = vst [vmem:[%s8854_s28 + $0x10] sm:$0xf] %v773_v4  ;;  %s759_s29 = sadd.s32 1, %s8866_s29  }
  0x4f   : >> { %776 = vst [vmem:[%s8854_s28 + $0x14] sm:$0xf] %v775_v5  ;;  %s11503_s25 = smov (%p778_p11, %s777_s25), 0  ;;  %p758_p12 = scmp.ge.s32.totalorder %s759_s29, %s9570_s22 }
  0x50   : >> { %s6593_s5 = sshll.u32 %s11503_s25, 3  ;;  %s11295_s9 = smov %s11503_s25 }
  0x51   : >> { %s782_s8 = scalar_lea.vmem %s9562_s3, %s6593_s5   ;;  %s783_s28 = scalar_lea.vmem %s9567_s23, %s6593_s5 [#allocation2]  }
  0x52   : > { %761 = sbr.rel (!%p758_p12) target bundleno = 75 (0x4b), region = 1550 }
  0x59 PF: > { %s9600_s26 = sand.u32 1, %s11501_s0   ;;  %s6860_s1 = sshll.u32 %s9570_s22, 3 }
  0x5a   : > { %s9604_s5 = scalar_lea.vmem %s9562_s3, %s6860_s1   ;;  %s9607_s21 = scalar_lea.vmem %s9567_s23, %s6860_s1 [#allocation2]  }
  0x5b   : > { %p6598_p13 = scmp.le.s32.totalorder %s9600_s26, 0 }
  0x5c   : > { %s11296_s29 = smov (!%p6598_p13), %s9607_s21  ;;  %s8872_s25 = smov (!%p6598_p13), %s9604_s5  }
  0x5d   : > { %5982 = sbr.rel (%p6598_p13) target bundleno = 111 (0x6f), region = 1555  ;;  %s8876_s28 = smov (!%p6598_p13), 0  }
  0x5e   : > { %s8880_s8 = smov (!%p6598_p13), 0  }
  0x64 LB: >> { %v800_v6 = vld [vmem:[%s8874_s25] sm:$0xf]  ;;  %v802_v7 = vld [vmem:[%s8874_s25 + $0xc] sm:$0xf]  ;;  %v804_v8 = vld [vmem:[%s8874_s25 + $0x18] sm:$0xf]  ;;  %s8882_s8 = sphi %s8880_s8, %s794_s8   ;;  %s8878_s28 = sphi %s8876_s28, %s8877_s28   ;;  %s8874_s25 = sphi %s8872_s25, %s811_s25   ;;  %s8870_s29 = sphi %s11296_s29, %s812_s29  }
  0x65   : >> { %801 = vst [vmem:[%s8870_s29] sm:$0xf] %v800_v6  ;;  %803 = vst [vmem:[%s8870_s29 + $0x8] sm:$0xf] %v802_v7  ;;  %s806_s22 = sadd.s32 1, %s8878_s28  ;;  %s794_s8 = sadd.s32 1, %s8882_s8  }
  0x66   : >> { %805 = vst [vmem:[%s8870_s29 + $0x10] sm:$0xf] %v804_v8  ;;  %p807_p0 = scmp.ge.s32.totalorder %s806_s22, %s9600_s26  ;;  %p793_p1 = scmp.ge.s32.totalorder %s794_s8, %s9600_s26 }
  0x68   : >> { %s11505_s22 = smov (%p807_p0, %s806_s22), 0  ;;  %796 = sbr.rel (!%p793_p1) target bundleno = 100 (0x64), region = 1561 }
  0x69   : >> { %s6599_s23 = sshll.u32 %s11505_s22, 2  ;;  %s8877_s28 = smov %s11505_s22  }
  0x6a   : >> { %s811_s25 = scalar_lea.vmem %s9604_s5, %s6599_s23   ;;  %s812_s29 = scalar_lea.vmem %s9607_s21, %s6599_s23 [#allocation2]  }
  0x6f PF: > { %917 = sbr.rel (!%p9544_p4) target bundleno = 173 (0xad), region = 82  ;;  %s919_s3 = sand.u32 (%p9544_p4), 1, %s8846_s6  }
  0x70   : > { %s6601_s0 = sshll.u32 (%p9544_p4), %s8850_s30, 1  ;;  %s7163_s9 = smul.u32 (%p9544_p4), 24, %s919_s3 }
  0x71   : > { %s923_s1 = ssub.s32 (%p9544_p4), 3, %s6601_s0  ;;  %s6862_s28 = sshll.u32 (%p9544_p4), %s8850_s30, 3 }
  0x72   : > { %p924_p2 = scmp.lt.s32.totalorder (%p9544_p4), %s923_s1, 2  ;;  %s11297_s22 = sld [smem:[#allocation41_spill]] (%p9544_p4) }
  0x73   : > { %s9634_s26 = scalar_lea.vmem (%p9544_p4), [#allocation3], %s7163_s9  }
  0x76   : > { %s11507_s1 = smov (!%p924_p2, %s923_s1), 2 }
  0x77   : > { %s926_s21 = smul.u32 192, %s11507_s1 }
  0x78   : > { %s9629_s8 = scalar_lea.vmem %s11297_s22, %s6862_s28  }
  0x79   : > { %p6604_p3 = scmp.eq.s32.totalorder %s926_s21, 0 }
  0x7a   : > { %s9637_s5 = sshrl.u32 (!%p6604_p3), %s11507_s1, 1 }
  0x7b   : > { %932 = sbr.rel (%p6604_p3) target bundleno = 173 (0xad), region = 86  ;;  %p6605_p5 = scmp.le.s32.totalorder (!%p6604_p3), %s9637_s5, 0 }
  0x82   : > { %5996 = sbr.rel (%p6605_p5) target bundleno = 151 (0x97), region = 1566  ;;  %s11298_s23 = smov (!%p6605_p5), %s9634_s26 }
  0x83   : > { %s11299_s3 = smov (!%p6605_p5), %s9629_s8  ;;  %s9646_s0 = smov (!%p6605_p5), 0  }
  0x84   : > { %s9648_s28 = smov (!%p6605_p5), 0  }
  0x89 LB: >> { %v948_v9 = vld [vmem:[%s8890_s3] sm:$0xf]  ;;  %v950_v10 = vld [vmem:[%s8890_s3 + $0x4] sm:$0xf]  ;;  %v952_v11 = vld [vmem:[%s8890_s3 + $0xc] sm:$0xf]  ;;  %s8898_s28 = sphi %s9648_s28, %s942_s28   ;;  %s8894_s0 = sphi %s9646_s0, %s11300_s0   ;;  %s8890_s3 = sphi %s11299_s3, %s965_s3   ;;  %s8886_s23 = sphi %s11298_s23, %s966_s23  }
  0x8a   : >> { %949 = vst [vmem:[%s8886_s23] sm:$0xf] %v948_v9  ;;  %951 = vst [vmem:[%s8886_s23 + $0x4] sm:$0xf] %v950_v10  ;;  %v954_v12 = vld [vmem:[%s8890_s3 + $0x10] sm:$0xf]  ;;  %s960_s9 = sadd.s32 1, %s8894_s0 }
  0x8b   : >> { %953 = vst [vmem:[%s8886_s23 + $0x8] sm:$0xf] %v952_v11  ;;  %v956_v13 = vld [vmem:[%s8890_s3 + $0x18] sm:$0xf]  ;;  %v958_v14 = vld [vmem:[%s8890_s3 + $0x1c] sm:$0xf]  ;;  %p961_p7 = scmp.ge.s32.totalorder %s960_s9, %s9637_s5 }
  0x8c   : >> { %955 = vst [vmem:[%s8886_s23 + $0xc] sm:$0xf] %v954_v12  ;;  %957 = vst [vmem:[%s8886_s23 + $0x10] sm:$0xf] %v956_v13  ;;  %s942_s28 = sadd.s32 1, %s8898_s28  }
  0x8d   : >> { %959 = vst [vmem:[%s8886_s23 + $0x14] sm:$0xf] %v958_v14  ;;  %s11509_s9 = smov (%p961_p7, %s960_s9), 0  ;;  %p941_p8 = scmp.ge.s32.totalorder %s942_s28, %s9637_s5 }
  0x8e   : >> { %s6606_s29 = sshll.u32 %s11509_s9, 3  ;;  %s11300_s0 = smov %s11509_s9 }
  0x8f   : >> { %s965_s3 = scalar_lea.vmem %s9629_s8, %s6606_s29   ;;  %s966_s23 = scalar_lea.vmem %s9634_s26, %s6606_s29 [#allocation3]  }
  0x90   : > { %944 = sbr.rel (!%p941_p8) target bundleno = 137 (0x89), region = 1572 }
  0x97 PF: > { %s9667_s25 = sand.u32 1, %s11507_s1   ;;  %s6863_s22 = sshll.u32 %s9637_s5, 3 }
  0x98   : > { %s9671_s21 = scalar_lea.vmem %s9629_s8, %s6863_s22   ;;  %s9674_s29 = scalar_lea.vmem %s9634_s26, %s6863_s22 [#allocation3]  }
  0x99   : > { %p6611_p9 = scmp.le.s32.totalorder %s9667_s25, 0 }
  0x9a   : > { %s11301_s28 = smov (!%p6611_p9), %s9674_s29  ;;  %s8904_s9 = smov (!%p6611_p9), %s9671_s21  }
  0x9b   : > { %6010 = sbr.rel (%p6611_p9) target bundleno = 173 (0xad), region = 1577  ;;  %s8908_s23 = smov (!%p6611_p9), 0  }
  0x9c   : > { %s8912_s3 = smov (!%p6611_p9), 0  }
  0xa2 LB: >> { %v983_v15 = vld [vmem:[%s8906_s9] sm:$0xf]  ;;  %v985_v16 = vld [vmem:[%s8906_s9 + $0xc] sm:$0xf]  ;;  %v987_v17 = vld [vmem:[%s8906_s9 + $0x18] sm:$0xf]  ;;  %s8914_s3 = sphi %s8912_s3, %s977_s3   ;;  %s8910_s23 = sphi %s8908_s23, %s8909_s23   ;;  %s8906_s9 = sphi %s8904_s9, %s994_s9   ;;  %s8902_s28 = sphi %s11301_s28, %s995_s28  }
  0xa3   : >> { %984 = vst [vmem:[%s8902_s28] sm:$0xf] %v983_v15  ;;  %986 = vst [vmem:[%s8902_s28 + $0x8] sm:$0xf] %v985_v16  ;;  %s989_s1 = sadd.s32 1, %s8910_s23  ;;  %s977_s3 = sadd.s32 1, %s8914_s3  }
  0xa4   : >> { %988 = vst [vmem:[%s8902_s28 + $0x10] sm:$0xf] %v987_v17  ;;  %p990_p10 = scmp.ge.s32.totalorder %s989_s1, %s9667_s25  ;;  %p976_p11 = scmp.ge.s32.totalorder %s977_s3, %s9667_s25 }
  0xa6   : >> { %s11511_s1 = smov (%p990_p10, %s989_s1), 0  ;;  %979 = sbr.rel (!%p976_p11) target bundleno = 162 (0xa2), region = 1583 }
  0xa7   : >> { %s6612_s8 = sshll.u32 %s11511_s1, 2  ;;  %s8909_s23 = smov %s11511_s1  }
  0xa8   : >> { %s994_s9 = scalar_lea.vmem %s9671_s21, %s6612_s8   ;;  %s995_s28 = scalar_lea.vmem %s9674_s29, %s6612_s8 [#allocation3]  }
  0xad PF: > { %1100 = sbr.rel (!%p9544_p4) target bundleno = 235 (0xeb), region = 144  ;;  %s1102_s26 = sand.u32 (%p9544_p4), 1, %s8846_s6  }
  0xae   : > { %s6614_s5 = sshll.u32 (%p9544_p4), %s8850_s30, 1  ;;  %s7164_s0 = smul.u32 (%p9544_p4), 24, %s1102_s26 }
  0xaf   : > { %s1106_s22 = ssub.s32 (%p9544_p4), 3, %s6614_s5  ;;  %s6865_s23 = sshll.u32 (%p9544_p4), %s8850_s30, 3 }
  0xb0   : > { %p1107_p12 = scmp.lt.s32.totalorder (%p9544_p4), %s1106_s22, 2  ;;  %s11302_s1 = sld [smem:[#allocation42_spill]] (%p9544_p4) }
  0xb1   : > { %s9701_s21 = scalar_lea.vmem (%p9544_p4), [#allocation4], %s7164_s0  }
  0xb4   : > { %s11513_s22 = smov (!%p1107_p12, %s1106_s22), 2 }
  0xb5   : > { %s1109_s25 = smul.u32 192, %s11513_s22 }
  0xb6   : > { %s9696_s3 = scalar_lea.vmem %s11302_s1, %s6865_s23  }
  0xb7   : > { %p6617_p13 = scmp.eq.s32.totalorder %s1109_s25, 0 }
  0xb8   : > { %s9704_s29 = sshrl.u32 (!%p6617_p13), %s11513_s22, 1 }
  0xb9   : > { %1115 = sbr.rel (%p6617_p13) target bundleno = 235 (0xeb), region = 148  ;;  %p6618_p0 = scmp.le.s32.totalorder (!%p6617_p13), %s9704_s29, 0 }
  0xc0   : > { %6024 = sbr.rel (%p6618_p0) target bundleno = 213 (0xd5), region = 1588  ;;  %s11303_s8 = smov (!%p6618_p0), %s9701_s21 }
  0xc1   : > { %s11304_s26 = smov (!%p6618_p0), %s9696_s3  ;;  %s9713_s5 = smov (!%p6618_p0), 0  }
  0xc2   : > { %s9715_s23 = smov (!%p6618_p0), 0  }
  0xc7 LB: >> { %v1131_v18 = vld [vmem:[%s8922_s26] sm:$0xf]  ;;  %v1133_v19 = vld [vmem:[%s8922_s26 + $0x4] sm:$0xf]  ;;  %v1135_v20 = vld [vmem:[%s8922_s26 + $0xc] sm:$0xf]  ;;  %s8930_s23 = sphi %s9715_s23, %s1125_s23   ;;  %s8926_s5 = sphi %s9713_s5, %s11305_s5   ;;  %s8922_s26 = sphi %s11304_s26, %s1148_s26   ;;  %s8918_s8 = sphi %s11303_s8, %s1149_s8  }
  0xc8   : >> { %1132 = vst [vmem:[%s8918_s8] sm:$0xf] %v1131_v18  ;;  %1134 = vst [vmem:[%s8918_s8 + $0x4] sm:$0xf] %v1133_v19  ;;  %v1137_v21 = vld [vmem:[%s8922_s26 + $0x10] sm:$0xf]  ;;  %s1143_s0 = sadd.s32 1, %s8926_s5 }
  0xc9   : >> { %1136 = vst [vmem:[%s8918_s8 + $0x8] sm:$0xf] %v1135_v20  ;;  %v1139_v22 = vld [vmem:[%s8922_s26 + $0x18] sm:$0xf]  ;;  %v1141_v23 = vld [vmem:[%s8922_s26 + $0x1c] sm:$0xf]  ;;  %p1144_p1 = scmp.ge.s32.totalorder %s1143_s0, %s9704_s29 }
  0xca   : >> { %1138 = vst [vmem:[%s8918_s8 + $0xc] sm:$0xf] %v1137_v21  ;;  %1140 = vst [vmem:[%s8918_s8 + $0x10] sm:$0xf] %v1139_v22  ;;  %s1125_s23 = sadd.s32 1, %s8930_s23  }
  0xcb   : >> { %1142 = vst [vmem:[%s8918_s8 + $0x14] sm:$0xf] %v1141_v23  ;;  %s11515_s0 = smov (%p1144_p1, %s1143_s0), 0  ;;  %p1124_p2 = scmp.ge.s32.totalorder %s1125_s23, %s9704_s29 }
  0xcc   : >> { %s6619_s28 = sshll.u32 %s11515_s0, 3  ;;  %s11305_s5 = smov %s11515_s0 }
  0xcd   : >> { %s1148_s26 = scalar_lea.vmem %s9696_s3, %s6619_s28   ;;  %s1149_s8 = scalar_lea.vmem %s9701_s21, %s6619_s28 [#allocation4]  }
  0xce   : > { %1127 = sbr.rel (!%p1124_p2) target bundleno = 199 (0xc7), region = 1594 }
  0xd5 PF: > { %s9734_s9 = sand.u32 1, %s11513_s22   ;;  %s6866_s1 = sshll.u32 %s9704_s29, 3 }
  0xd6   : > { %s9738_s25 = scalar_lea.vmem %s9696_s3, %s6866_s1   ;;  %s9741_s28 = scalar_lea.vmem %s9701_s21, %s6866_s1 [#allocation4]  }
  0xd7   : > { %p6624_p3 = scmp.le.s32.totalorder %s9734_s9, 0 }
  0xd8   : > { %s11306_s23 = smov (!%p6624_p3), %s9741_s28  ;;  %s8936_s0 = smov (!%p6624_p3), %s9738_s25  }
  0xd9   : > { %6038 = sbr.rel (%p6624_p3) target bundleno = 235 (0xeb), region = 1599  ;;  %s8940_s8 = smov (!%p6624_p3), 0  }
  0xda   : > { %s8944_s26 = smov (!%p6624_p3), 0  }
  0xe0 LB: >> { %v1166_v24 = vld [vmem:[%s8938_s0] sm:$0xf]  ;;  %v1168_v25 = vld [vmem:[%s8938_s0 + $0xc] sm:$0xf]  ;;  %v1170_v26 = vld [vmem:[%s8938_s0 + $0x18] sm:$0xf]  ;;  %s8946_s26 = sphi %s8944_s26, %s1160_s26   ;;  %s8942_s8 = sphi %s8940_s8, %s8941_s8   ;;  %s8938_s0 = sphi %s8936_s0, %s1177_s0   ;;  %s8934_s23 = sphi %s11306_s23, %s1178_s23  }
  0xe1   : >> { %1167 = vst [vmem:[%s8934_s23] sm:$0xf] %v1166_v24  ;;  %1169 = vst [vmem:[%s8934_s23 + $0x8] sm:$0xf] %v1168_v25  ;;  %s1172_s22 = sadd.s32 1, %s8942_s8  ;;  %s1160_s26 = sadd.s32 1, %s8946_s26  }
  0xe2   : >> { %1171 = vst [vmem:[%s8934_s23 + $0x10] sm:$0xf] %v1170_v26  ;;  %p1173_p5 = scmp.ge.s32.totalorder %s1172_s22, %s9734_s9  ;;  %p1159_p7 = scmp.ge.s32.totalorder %s1160_s26, %s9734_s9 }
  0xe4   : >> { %s11517_s22 = smov (%p1173_p5, %s1172_s22), 0  ;;  %1162 = sbr.rel (!%p1159_p7) target bundleno = 224 (0xe0), region = 1605 }
  0xe5   : >> { %s6625_s3 = sshll.u32 %s11517_s22, 2  ;;  %s8941_s8 = smov %s11517_s22  }
  0xe6   : >> { %s1177_s0 = scalar_lea.vmem %s9738_s25, %s6625_s3   ;;  %s1178_s23 = scalar_lea.vmem %s9741_s28, %s6625_s3 [#allocation4]  }
  0xeb PF: > { %1283 = sbr.rel (!%p9544_p4) target bundleno = 297 (0x129), region = 206  ;;  %s1285_s21 = sand.u32 (%p9544_p4), 1, %s8846_s6  }
  0xec   : > { %s6627_s29 = sshll.u32 (%p9544_p4), %s8850_s30, 1  ;;  %s7165_s5 = smul.u32 (%p9544_p4), 24, %s1285_s21 }
  0xed   : > { %s1289_s1 = ssub.s32 (%p9544_p4), 3, %s6627_s29  ;;  %s6868_s8 = sshll.u32 (%p9544_p4), %s8850_s30, 3 }
  0xee   : > { %p1290_p8 = scmp.lt.s32.totalorder (%p9544_p4), %s1289_s1, 2  ;;  %s11307_s22 = sld [smem:[#allocation43_spill]] (%p9544_p4) }
  0xef   : > { %s9768_s25 = scalar_lea.vmem (%p9544_p4), [#allocation5], %s7165_s5  }
  0xf2   : > { %s11519_s1 = smov (!%p1290_p8, %s1289_s1), 2 }
  0xf3   : > { %s1292_s9 = smul.u32 192, %s11519_s1 }
  0xf4   : > { %s9763_s26 = scalar_lea.vmem %s11307_s22, %s6868_s8  }
  0xf5   : > { %p6630_p9 = scmp.eq.s32.totalorder %s1292_s9, 0 }
  0xf6   : > { %s9771_s28 = sshrl.u32 (!%p6630_p9), %s11519_s1, 1 }
  0xf7   : > { %1298 = sbr.rel (%p6630_p9) target bundleno = 297 (0x129), region = 210  ;;  %p6631_p10 = scmp.le.s32.totalorder (!%p6630_p9), %s9771_s28, 0 }
  0xfe   : > { %6052 = sbr.rel (%p6631_p10) target bundleno = 275 (0x113), region = 1610  ;;  %s11308_s3 = smov (!%p6631_p10), %s9768_s25 }
  0xff   : > { %s11309_s21 = smov (!%p6631_p10), %s9763_s26  ;;  %s9780_s29 = smov (!%p6631_p10), 0  }
 0x100   : > { %s9782_s8 = smov (!%p6631_p10), 0  }
 0x105 LB: >> { %v1314_v27 = vld [vmem:[%s8954_s21] sm:$0xf]  ;;  %v1316_v28 = vld [vmem:[%s8954_s21 + $0x4] sm:$0xf]  ;;  %v1318_v29 = vld [vmem:[%s8954_s21 + $0xc] sm:$0xf]  ;;  %s8962_s8 = sphi %s9782_s8, %s1308_s8   ;;  %s8958_s29 = sphi %s9780_s29, %s11310_s29   ;;  %s8954_s21 = sphi %s11309_s21, %s1331_s21   ;;  %s8950_s3 = sphi %s11308_s3, %s1332_s3  }
 0x106   : >> { %1315 = vst [vmem:[%s8950_s3] sm:$0xf] %v1314_v27  ;;  %1317 = vst [vmem:[%s8950_s3 + $0x4] sm:$0xf] %v1316_v28  ;;  %v1320_v30 = vld [vmem:[%s8954_s21 + $0x10] sm:$0xf]  ;;  %s1326_s5 = sadd.s32 1, %s8958_s29 }
 0x107   : >> { %1319 = vst [vmem:[%s8950_s3 + $0x8] sm:$0xf] %v1318_v29  ;;  %v1322_v31 = vld [vmem:[%s8954_s21 + $0x18] sm:$0xf]  ;;  %v1324_v32 = vld [vmem:[%s8954_s21 + $0x1c] sm:$0xf]  ;;  %p1327_p11 = scmp.ge.s32.totalorder %s1326_s5, %s9771_s28 }
 0x108   : >> { %1321 = vst [vmem:[%s8950_s3 + $0xc] sm:$0xf] %v1320_v30  ;;  %1323 = vst [vmem:[%s8950_s3 + $0x10] sm:$0xf] %v1322_v31  ;;  %s1308_s8 = sadd.s32 1, %s8962_s8  }
 0x109   : >> { %1325 = vst [vmem:[%s8950_s3 + $0x14] sm:$0xf] %v1324_v32  ;;  %s11521_s5 = smov (%p1327_p11, %s1326_s5), 0  ;;  %p1307_p12 = scmp.ge.s32.totalorder %s1308_s8, %s9771_s28 }
 0x10a   : >> { %s6632_s23 = sshll.u32 %s11521_s5, 3  ;;  %s11310_s29 = smov %s11521_s5 }
 0x10b   : >> { %s1331_s21 = scalar_lea.vmem %s9763_s26, %s6632_s23   ;;  %s1332_s3 = scalar_lea.vmem %s9768_s25, %s6632_s23 [#allocation5]  }
 0x10c   : > { %1310 = sbr.rel (!%p1307_p12) target bundleno = 261 (0x105), region = 1616 }
 0x113 PF: > { %s9801_s0 = sand.u32 1, %s11519_s1   ;;  %s6869_s22 = sshll.u32 %s9771_s28, 3 }
 0x114   : > { %s9805_s9 = scalar_lea.vmem %s9763_s26, %s6869_s22   ;;  %s9808_s23 = scalar_lea.vmem %s9768_s25, %s6869_s22 [#allocation5]  }
 0x115   : > { %p6637_p13 = scmp.le.s32.totalorder %s9801_s0, 0 }
 0x116   : > { %s11311_s8 = smov (!%p6637_p13), %s9808_s23  ;;  %s8968_s5 = smov (!%p6637_p13), %s9805_s9  }
 0x117   : > { %6066 = sbr.rel (%p6637_p13) target bundleno = 297 (0x129), region = 1621  ;;  %s8972_s3 = smov (!%p6637_p13), 0  }
 0x118   : > { %s8976_s21 = smov (!%p6637_p13), 0  }
 0x11e LB: >> { %v1349_v33 = vld [vmem:[%s8970_s5] sm:$0xf]  ;;  %v1351_v34 = vld [vmem:[%s8970_s5 + $0xc] sm:$0xf]  ;;  %v1353_v35 = vld [vmem:[%s8970_s5 + $0x18] sm:$0xf]  ;;  %s8978_s21 = sphi %s8976_s21, %s1343_s21   ;;  %s8974_s3 = sphi %s8972_s3, %s8973_s3   ;;  %s8970_s5 = sphi %s8968_s5, %s1360_s5   ;;  %s8966_s8 = sphi %s11311_s8, %s1361_s8  }
 0x11f   : >> { %1350 = vst [vmem:[%s8966_s8] sm:$0xf] %v1349_v33  ;;  %1352 = vst [vmem:[%s8966_s8 + $0x8] sm:$0xf] %v1351_v34  ;;  %s1355_s1 = sadd.s32 1, %s8974_s3  ;;  %s1343_s21 = sadd.s32 1, %s8978_s21  }
 0x120   : >> { %1354 = vst [vmem:[%s8966_s8 + $0x10] sm:$0xf] %v1353_v35  ;;  %p1356_p0 = scmp.ge.s32.totalorder %s1355_s1, %s9801_s0  ;;  %p1342_p1 = scmp.ge.s32.totalorder %s1343_s21, %s9801_s0 }
 0x122   : >> { %s11523_s1 = smov (%p1356_p0, %s1355_s1), 0  ;;  %1345 = sbr.rel (!%p1342_p1) target bundleno = 286 (0x11e), region = 1627 }
 0x123   : >> { %s6638_s26 = sshll.u32 %s11523_s1, 2  ;;  %s8973_s3 = smov %s11523_s1  }
 0x124   : >> { %s1360_s5 = scalar_lea.vmem %s9805_s9, %s6638_s26   ;;  %s1361_s8 = scalar_lea.vmem %s9808_s23, %s6638_s26 [#allocation5]  }
 0x129 PF: > { %1466 = sbr.rel (!%p9544_p4) target bundleno = 359 (0x167), region = 268  ;;  %s1468_s25 = sand.u32 (%p9544_p4), 1, %s8846_s6  }
 0x12a   : > { %s6640_s28 = sshll.u32 (%p9544_p4), %s8850_s30, 1  ;;  %s7166_s29 = smul.u32 (%p9544_p4), 24, %s1468_s25 }
 0x12b   : > { %s1472_s22 = ssub.s32 (%p9544_p4), 3, %s6640_s28  ;;  %s6871_s3 = sshll.u32 (%p9544_p4), %s8850_s30, 3 }
 0x12c   : > { %p1473_p2 = scmp.lt.s32.totalorder (%p9544_p4), %s1472_s22, 2  ;;  %s11312_s1 = sld [smem:[#allocation44_spill]] (%p9544_p4) }
 0x12d   : > { %s9835_s9 = scalar_lea.vmem (%p9544_p4), [#allocation6], %s7166_s29  }
 0x130   : > { %s11525_s22 = smov (!%p1473_p2, %s1472_s22), 2 }
 0x131   : > { %s1475_s0 = smul.u32 192, %s11525_s22 }
 0x132   : > { %s9830_s21 = scalar_lea.vmem %s11312_s1, %s6871_s3  }
 0x133   : > { %p6643_p3 = scmp.eq.s32.totalorder %s1475_s0, 0 }
 0x134   : > { %s9838_s23 = sshrl.u32 (!%p6643_p3), %s11525_s22, 1 }
 0x135   : > { %1481 = sbr.rel (%p6643_p3) target bundleno = 359 (0x167), region = 272  ;;  %p6644_p5 = scmp.le.s32.totalorder (!%p6643_p3), %s9838_s23, 0 }
 0x13c   : > { %6080 = sbr.rel (%p6644_p5) target bundleno = 337 (0x151), region = 1632  ;;  %s11313_s26 = smov (!%p6644_p5), %s9835_s9 }
 0x13d   : > { %s11314_s25 = smov (!%p6644_p5), %s9830_s21  ;;  %s9847_s28 = smov (!%p6644_p5), 0  }
 0x13e   : > { %s9849_s3 = smov (!%p6644_p5), 0  }
 0x143 LB: >> { %v1497_v36 = vld [vmem:[%s8986_s25] sm:$0xf]  ;;  %v1499_v37 = vld [vmem:[%s8986_s25 + $0x4] sm:$0xf]  ;;  %v1501_v38 = vld [vmem:[%s8986_s25 + $0xc] sm:$0xf]  ;;  %s8994_s3 = sphi %s9849_s3, %s1491_s3   ;;  %s8990_s28 = sphi %s9847_s28, %s11315_s28   ;;  %s8986_s25 = sphi %s11314_s25, %s1514_s25   ;;  %s8982_s26 = sphi %s11313_s26, %s1515_s26  }
 0x144   : >> { %1498 = vst [vmem:[%s8982_s26] sm:$0xf] %v1497_v36  ;;  %1500 = vst [vmem:[%s8982_s26 + $0x4] sm:$0xf] %v1499_v37  ;;  %v1503_v39 = vld [vmem:[%s8986_s25 + $0x10] sm:$0xf]  ;;  %s1509_s29 = sadd.s32 1, %s8990_s28 }
 0x145   : >> { %1502 = vst [vmem:[%s8982_s26 + $0x8] sm:$0xf] %v1501_v38  ;;  %v1505_v40 = vld [vmem:[%s8986_s25 + $0x18] sm:$0xf]  ;;  %v1507_v41 = vld [vmem:[%s8986_s25 + $0x1c] sm:$0xf]  ;;  %p1510_p7 = scmp.ge.s32.totalorder %s1509_s29, %s9838_s23 }
 0x146   : >> { %1504 = vst [vmem:[%s8982_s26 + $0xc] sm:$0xf] %v1503_v39  ;;  %1506 = vst [vmem:[%s8982_s26 + $0x10] sm:$0xf] %v1505_v40  ;;  %s1491_s3 = sadd.s32 1, %s8994_s3  }
 0x147   : >> { %1508 = vst [vmem:[%s8982_s26 + $0x14] sm:$0xf] %v1507_v41  ;;  %s11527_s29 = smov (%p1510_p7, %s1509_s29), 0  ;;  %p1490_p8 = scmp.ge.s32.totalorder %s1491_s3, %s9838_s23 }
 0x148   : >> { %s6645_s8 = sshll.u32 %s11527_s29, 3  ;;  %s11315_s28 = smov %s11527_s29 }
 0x149   : >> { %s1514_s25 = scalar_lea.vmem %s9830_s21, %s6645_s8   ;;  %s1515_s26 = scalar_lea.vmem %s9835_s9, %s6645_s8 [#allocation6]  }
 0x14a   : > { %1493 = sbr.rel (!%p1490_p8) target bundleno = 323 (0x143), region = 1638 }
 0x151 PF: > { %s9868_s5 = sand.u32 1, %s11525_s22   ;;  %s6872_s1 = sshll.u32 %s9838_s23, 3 }
 0x152   : > { %s9872_s0 = scalar_lea.vmem %s9830_s21, %s6872_s1   ;;  %s9875_s8 = scalar_lea.vmem %s9835_s9, %s6872_s1 [#allocation6]  }
 0x153   : > { %p6650_p9 = scmp.le.s32.totalorder %s9868_s5, 0 }
 0x154   : > { %s11316_s3 = smov (!%p6650_p9), %s9875_s8  ;;  %s9000_s29 = smov (!%p6650_p9), %s9872_s0  }
 0x155   : > { %6094 = sbr.rel (%p6650_p9) target bundleno = 359 (0x167), region = 1643  ;;  %s9004_s26 = smov (!%p6650_p9), 0  }
 0x156   : > { %s9008_s25 = smov (!%p6650_p9), 0  }
 0x15c LB: >> { %v1532_v42 = vld [vmem:[%s9002_s29] sm:$0xf]  ;;  %v1534_v43 = vld [vmem:[%s9002_s29 + $0xc] sm:$0xf]  ;;  %v1536_v44 = vld [vmem:[%s9002_s29 + $0x18] sm:$0xf]  ;;  %s9010_s25 = sphi %s9008_s25, %s1526_s25   ;;  %s9006_s26 = sphi %s9004_s26, %s9005_s26   ;;  %s9002_s29 = sphi %s9000_s29, %s1543_s29   ;;  %s8998_s3 = sphi %s11316_s3, %s1544_s3  }
 0x15d   : >> { %1533 = vst [vmem:[%s8998_s3] sm:$0xf] %v1532_v42  ;;  %1535 = vst [vmem:[%s8998_s3 + $0x8] sm:$0xf] %v1534_v43  ;;  %s1538_s22 = sadd.s32 1, %s9006_s26  ;;  %s1526_s25 = sadd.s32 1, %s9010_s25  }
 0x15e   : >> { %1537 = vst [vmem:[%s8998_s3 + $0x10] sm:$0xf] %v1536_v44  ;;  %p1539_p10 = scmp.ge.s32.totalorder %s1538_s22, %s9868_s5  ;;  %p1525_p11 = scmp.ge.s32.totalorder %s1526_s25, %s9868_s5 }
 0x160   : >> { %s11529_s22 = smov (%p1539_p10, %s1538_s22), 0  ;;  %1528 = sbr.rel (!%p1525_p11) target bundleno = 348 (0x15c), region = 1649 }
 0x161   : >> { %s6651_s21 = sshll.u32 %s11529_s22, 2  ;;  %s9005_s26 = smov %s11529_s22  }
 0x162   : >> { %s1543_s29 = scalar_lea.vmem %s9872_s0, %s6651_s21   ;;  %s1544_s3 = scalar_lea.vmem %s9875_s8, %s6651_s21 [#allocation6]  }
 0x167 PF: > { %1649 = sbr.rel (!%p9544_p4) target bundleno = 421 (0x1a5), region = 330  ;;  %s1651_s9 = sand.u32 (%p9544_p4), 1, %s8846_s6  }
 0x168   : > { %s6653_s23 = sshll.u32 (%p9544_p4), %s8850_s30, 1  ;;  %s7167_s28 = smul.u32 (%p9544_p4), 24, %s1651_s9 }
 0x169   : > { %s1655_s1 = ssub.s32 (%p9544_p4), 3, %s6653_s23  ;;  %s6874_s26 = sshll.u32 (%p9544_p4), %s8850_s30, 3 }
 0x16a   : > { %p1656_p12 = scmp.lt.s32.totalorder (%p9544_p4), %s1655_s1, 2  ;;  %s11317_s22 = sld [smem:[#allocation45_spill]] (%p9544_p4) }
 0x16b   : > { %s9902_s0 = scalar_lea.vmem (%p9544_p4), [#allocation7], %s7167_s28  }
 0x16e   : > { %s11531_s1 = smov (!%p1656_p12, %s1655_s1), 2 }
 0x16f   : > { %s1658_s5 = smul.u32 192, %s11531_s1 }
 0x170   : > { %s9897_s25 = scalar_lea.vmem %s11317_s22, %s6874_s26  }
 0x171   : > { %p6656_p13 = scmp.eq.s32.totalorder %s1658_s5, 0 }
 0x172   : > { %s9905_s8 = sshrl.u32 (!%p6656_p13), %s11531_s1, 1 }
 0x173   : > { %1664 = sbr.rel (%p6656_p13) target bundleno = 421 (0x1a5), region = 334  ;;  %p6657_p0 = scmp.le.s32.totalorder (!%p6656_p13), %s9905_s8, 0 }
 0x17a   : > { %6108 = sbr.rel (%p6657_p0) target bundleno = 399 (0x18f), region = 1654  ;;  %s11318_s21 = smov (!%p6657_p0), %s9902_s0 }
 0x17b   : > { %s11319_s9 = smov (!%p6657_p0), %s9897_s25  ;;  %s9914_s23 = smov (!%p6657_p0), 0  }
 0x17c   : > { %s9916_s26 = smov (!%p6657_p0), 0  }
 0x181 LB: >> { %v1680_v45 = vld [vmem:[%s9018_s9] sm:$0xf]  ;;  %v1682_v46 = vld [vmem:[%s9018_s9 + $0x4] sm:$0xf]  ;;  %v1684_v47 = vld [vmem:[%s9018_s9 + $0xc] sm:$0xf]  ;;  %s9026_s26 = sphi %s9916_s26, %s1674_s26   ;;  %s9022_s23 = sphi %s9914_s23, %s11320_s23   ;;  %s9018_s9 = sphi %s11319_s9, %s1697_s9   ;;  %s9014_s21 = sphi %s11318_s21, %s1698_s21  }
 0x182   : >> { %1681 = vst [vmem:[%s9014_s21] sm:$0xf] %v1680_v45  ;;  %1683 = vst [vmem:[%s9014_s21 + $0x4] sm:$0xf] %v1682_v46  ;;  %v1686_v48 = vld [vmem:[%s9018_s9 + $0x10] sm:$0xf]  ;;  %s1692_s28 = sadd.s32 1, %s9022_s23 }
 0x183   : >> { %1685 = vst [vmem:[%s9014_s21 + $0x8] sm:$0xf] %v1684_v47  ;;  %v1688_v49 = vld [vmem:[%s9018_s9 + $0x18] sm:$0xf]  ;;  %v1690_v50 = vld [vmem:[%s9018_s9 + $0x1c] sm:$0xf]  ;;  %p1693_p1 = scmp.ge.s32.totalorder %s1692_s28, %s9905_s8 }
 0x184   : >> { %1687 = vst [vmem:[%s9014_s21 + $0xc] sm:$0xf] %v1686_v48  ;;  %1689 = vst [vmem:[%s9014_s21 + $0x10] sm:$0xf] %v1688_v49  ;;  %s1674_s26 = sadd.s32 1, %s9026_s26  }
 0x185   : >> { %1691 = vst [vmem:[%s9014_s21 + $0x14] sm:$0xf] %v1690_v50  ;;  %s11533_s28 = smov (%p1693_p1, %s1692_s28), 0  ;;  %p1673_p2 = scmp.ge.s32.totalorder %s1674_s26, %s9905_s8 }
 0x186   : >> { %s6658_s3 = sshll.u32 %s11533_s28, 3  ;;  %s11320_s23 = smov %s11533_s28 }
 0x187   : >> { %s1697_s9 = scalar_lea.vmem %s9897_s25, %s6658_s3   ;;  %s1698_s21 = scalar_lea.vmem %s9902_s0, %s6658_s3 [#allocation7]  }
 0x188   : > { %1676 = sbr.rel (!%p1673_p2) target bundleno = 385 (0x181), region = 1660 }
 0x18f PF: > { %s9935_s29 = sand.u32 1, %s11531_s1   ;;  %s6875_s22 = sshll.u32 %s9905_s8, 3 }
 0x190   : > { %s9939_s5 = scalar_lea.vmem %s9897_s25, %s6875_s22   ;;  %s9942_s3 = scalar_lea.vmem %s9902_s0, %s6875_s22 [#allocation7]  }
 0x191   : > { %p6663_p3 = scmp.le.s32.totalorder %s9935_s29, 0 }
 0x192   : > { %s11321_s26 = smov (!%p6663_p3), %s9942_s3  ;;  %s9032_s28 = smov (!%p6663_p3), %s9939_s5  }
 0x193   : > { %6122 = sbr.rel (%p6663_p3) target bundleno = 421 (0x1a5), region = 1665  ;;  %s9036_s21 = smov (!%p6663_p3), 0  }
 0x194   : > { %s9040_s9 = smov (!%p6663_p3), 0  }
 0x19a LB: >> { %v1715_v51 = vld [vmem:[%s9034_s28] sm:$0xf]  ;;  %v1717_v52 = vld [vmem:[%s9034_s28 + $0xc] sm:$0xf]  ;;  %v1719_v53 = vld [vmem:[%s9034_s28 + $0x18] sm:$0xf]  ;;  %s9042_s9 = sphi %s9040_s9, %s1709_s9   ;;  %s9038_s21 = sphi %s9036_s21, %s9037_s21   ;;  %s9034_s28 = sphi %s9032_s28, %s1726_s28   ;;  %s9030_s26 = sphi %s11321_s26, %s1727_s26  }
 0x19b   : >> { %1716 = vst [vmem:[%s9030_s26] sm:$0xf] %v1715_v51  ;;  %1718 = vst [vmem:[%s9030_s26 + $0x8] sm:$0xf] %v1717_v52  ;;  %s1721_s1 = sadd.s32 1, %s9038_s21  ;;  %s1709_s9 = sadd.s32 1, %s9042_s9  }
 0x19c   : >> { %1720 = vst [vmem:[%s9030_s26 + $0x10] sm:$0xf] %v1719_v53  ;;  %p1722_p5 = scmp.ge.s32.totalorder %s1721_s1, %s9935_s29  ;;  %p1708_p7 = scmp.ge.s32.totalorder %s1709_s9, %s9935_s29 }
 0x19e   : >> { %s11535_s1 = smov (%p1722_p5, %s1721_s1), 0  ;;  %1711 = sbr.rel (!%p1708_p7) target bundleno = 410 (0x19a), region = 1671 }
 0x19f   : >> { %s6664_s25 = sshll.u32 %s11535_s1, 2  ;;  %s9037_s21 = smov %s11535_s1  }
 0x1a0   : >> { %s1726_s28 = scalar_lea.vmem %s9939_s5, %s6664_s25   ;;  %s1727_s26 = scalar_lea.vmem %s9942_s3, %s6664_s25 [#allocation7]  }
 0x1a5 PF: > { %1832 = sbr.rel (!%p9544_p4) target bundleno = 483 (0x1e3), region = 392  ;;  %s1834_s0 = sand.u32 (%p9544_p4), 1, %s8846_s6  }
 0x1a6   : > { %s6666_s8 = sshll.u32 (%p9544_p4), %s8850_s30, 1  ;;  %s7168_s23 = smul.u32 (%p9544_p4), 24, %s1834_s0 }
 0x1a7   : > { %s1838_s22 = ssub.s32 (%p9544_p4), 3, %s6666_s8  ;;  %s6877_s21 = sshll.u32 (%p9544_p4), %s8850_s30, 3 }
 0x1a8   : > { %p1839_p8 = scmp.lt.s32.totalorder (%p9544_p4), %s1838_s22, 2  ;;  %s11322_s1 = sld [smem:[#allocation46_spill]] (%p9544_p4) }
 0x1a9   : > { %s9969_s5 = scalar_lea.vmem (%p9544_p4), [#allocation8], %s7168_s23  }
 0x1ac   : > { %s11537_s22 = smov (!%p1839_p8, %s1838_s22), 2 }
 0x1ad   : > { %s1841_s29 = smul.u32 192, %s11537_s22 }
 0x1ae   : > { %s9964_s9 = scalar_lea.vmem %s11322_s1, %s6877_s21  }
 0x1af   : > { %p6669_p9 = scmp.eq.s32.totalorder %s1841_s29, 0 }
 0x1b0   : > { %s9972_s3 = sshrl.u32 (!%p6669_p9), %s11537_s22, 1 }
 0x1b1   : > { %1847 = sbr.rel (%p6669_p9) target bundleno = 483 (0x1e3), region = 396  ;;  %p6670_p10 = scmp.le.s32.totalorder (!%p6669_p9), %s9972_s3, 0 }
 0x1b8   : > { %6136 = sbr.rel (%p6670_p10) target bundleno = 461 (0x1cd), region = 1676  ;;  %s11323_s25 = smov (!%p6670_p10), %s9969_s5 }
 0x1b9   : > { %s11324_s0 = smov (!%p6670_p10), %s9964_s9  ;;  %s9981_s8 = smov (!%p6670_p10), 0  }
 0x1ba   : > { %s9983_s21 = smov (!%p6670_p10), 0  }
 0x1bf LB: >> { %v1863_v54 = vld [vmem:[%s9050_s0] sm:$0xf]  ;;  %v1865_v55 = vld [vmem:[%s9050_s0 + $0x4] sm:$0xf]  ;;  %v1867_v56 = vld [vmem:[%s9050_s0 + $0xc] sm:$0xf]  ;;  %s9058_s21 = sphi %s9983_s21, %s1857_s21   ;;  %s9054_s8 = sphi %s9981_s8, %s11325_s8   ;;  %s9050_s0 = sphi %s11324_s0, %s1880_s0   ;;  %s9046_s25 = sphi %s11323_s25, %s1881_s25  }
 0x1c0   : >> { %1864 = vst [vmem:[%s9046_s25] sm:$0xf] %v1863_v54  ;;  %1866 = vst [vmem:[%s9046_s25 + $0x4] sm:$0xf] %v1865_v55  ;;  %v1869_v57 = vld [vmem:[%s9050_s0 + $0x10] sm:$0xf]  ;;  %s1875_s23 = sadd.s32 1, %s9054_s8 }
 0x1c1   : >> { %1868 = vst [vmem:[%s9046_s25 + $0x8] sm:$0xf] %v1867_v56  ;;  %v1871_v58 = vld [vmem:[%s9050_s0 + $0x18] sm:$0xf]  ;;  %v1873_v59 = vld [vmem:[%s9050_s0 + $0x1c] sm:$0xf]  ;;  %p1876_p11 = scmp.ge.s32.totalorder %s1875_s23, %s9972_s3 }
 0x1c2   : >> { %1870 = vst [vmem:[%s9046_s25 + $0xc] sm:$0xf] %v1869_v57  ;;  %1872 = vst [vmem:[%s9046_s25 + $0x10] sm:$0xf] %v1871_v58  ;;  %s1857_s21 = sadd.s32 1, %s9058_s21  }
 0x1c3   : >> { %1874 = vst [vmem:[%s9046_s25 + $0x14] sm:$0xf] %v1873_v59  ;;  %s11539_s23 = smov (%p1876_p11, %s1875_s23), 0  ;;  %p1856_p12 = scmp.ge.s32.totalorder %s1857_s21, %s9972_s3 }
 0x1c4   : >> { %s6671_s26 = sshll.u32 %s11539_s23, 3  ;;  %s11325_s8 = smov %s11539_s23 }
 0x1c5   : >> { %s1880_s0 = scalar_lea.vmem %s9964_s9, %s6671_s26   ;;  %s1881_s25 = scalar_lea.vmem %s9969_s5, %s6671_s26 [#allocation8]  }
 0x1c6   : > { %1859 = sbr.rel (!%p1856_p12) target bundleno = 447 (0x1bf), region = 1682 }
 0x1cd PF: > { %s10002_s28 = sand.u32 1, %s11537_s22   ;;  %s6878_s1 = sshll.u32 %s9972_s3, 3 }
 0x1ce   : > { %s10006_s29 = scalar_lea.vmem %s9964_s9, %s6878_s1   ;;  %s10009_s26 = scalar_lea.vmem %s9969_s5, %s6878_s1 [#allocation8]  }
 0x1cf   : > { %p6676_p13 = scmp.le.s32.totalorder %s10002_s28, 0 }
 0x1d0   : > { %s11326_s21 = smov (!%p6676_p13), %s10009_s26  ;;  %s9064_s23 = smov (!%p6676_p13), %s10006_s29  }
 0x1d1   : > { %6150 = sbr.rel (%p6676_p13) target bundleno = 483 (0x1e3), region = 1687  ;;  %s9068_s25 = smov (!%p6676_p13), 0  }
 0x1d2   : > { %s9072_s0 = smov (!%p6676_p13), 0  }
 0x1d8 LB: >> { %v1898_v60 = vld [vmem:[%s9066_s23] sm:$0xf]  ;;  %v1900_v61 = vld [vmem:[%s9066_s23 + $0xc] sm:$0xf]  ;;  %v1902_v62 = vld [vmem:[%s9066_s23 + $0x18] sm:$0xf]  ;;  %s9074_s0 = sphi %s9072_s0, %s1892_s0   ;;  %s9070_s25 = sphi %s9068_s25, %s9069_s25   ;;  %s9066_s23 = sphi %s9064_s23, %s1909_s23   ;;  %s9062_s21 = sphi %s11326_s21, %s1910_s21  }
 0x1d9   : >> { %1899 = vst [vmem:[%s9062_s21] sm:$0xf] %v1898_v60  ;;  %1901 = vst [vmem:[%s9062_s21 + $0x8] sm:$0xf] %v1900_v61  ;;  %s1904_s22 = sadd.s32 1, %s9070_s25  ;;  %s1892_s0 = sadd.s32 1, %s9074_s0  }
 0x1da   : >> { %1903 = vst [vmem:[%s9062_s21 + $0x10] sm:$0xf] %v1902_v62  ;;  %p1905_p0 = scmp.ge.s32.totalorder %s1904_s22, %s10002_s28  ;;  %p1891_p1 = scmp.ge.s32.totalorder %s1892_s0, %s10002_s28 }
 0x1dc   : >> { %s11541_s22 = smov (%p1905_p0, %s1904_s22), 0  ;;  %1894 = sbr.rel (!%p1891_p1) target bundleno = 472 (0x1d8), region = 1693 }
 0x1dd   : >> { %s6677_s9 = sshll.u32 %s11541_s22, 2  ;;  %s9069_s25 = smov %s11541_s22  }
 0x1de   : >> { %s1909_s23 = scalar_lea.vmem %s10006_s29, %s6677_s9   ;;  %s1910_s21 = scalar_lea.vmem %s10009_s26, %s6677_s9 [#allocation8]  }
 0x1e3 PF: > { %2015 = sbr.rel (!%p9544_p4) target bundleno = 545 (0x221), region = 454  ;;  %s2017_s5 = sand.u32 (%p9544_p4), 1, %s8846_s6  }
 0x1e4   : > { %s6679_s3 = sshll.u32 (%p9544_p4), %s8850_s30, 1  ;;  %s7169_s8 = smul.u32 (%p9544_p4), 24, %s2017_s5 }
 0x1e5   : > { %s2021_s1 = ssub.s32 (%p9544_p4), 3, %s6679_s3  ;;  %s6880_s25 = sshll.u32 (%p9544_p4), %s8850_s30, 3 }
 0x1e6   : > { %p2022_p2 = scmp.lt.s32.totalorder (%p9544_p4), %s2021_s1, 2  ;;  %s11327_s22 = sld [smem:[#allocation47_spill]] (%p9544_p4) }
 0x1e7   : > { %s10036_s29 = scalar_lea.vmem (%p9544_p4), [#allocation9], %s7169_s8  }
 0x1ea   : > { %s11543_s1 = smov (!%p2022_p2, %s2021_s1), 2 }
 0x1eb   : > { %s2024_s28 = smul.u32 192, %s11543_s1 }
 0x1ec   : > { %s10031_s0 = scalar_lea.vmem %s11327_s22, %s6880_s25  }
 0x1ed   : > { %p6682_p3 = scmp.eq.s32.totalorder %s2024_s28, 0 }
 0x1ee   : > { %s10039_s26 = sshrl.u32 (!%p6682_p3), %s11543_s1, 1 }
 0x1ef   : > { %2030 = sbr.rel (%p6682_p3) target bundleno = 545 (0x221), region = 458  ;;  %p6683_p5 = scmp.le.s32.totalorder (!%p6682_p3), %s10039_s26, 0 }
 0x1f6   : > { %6164 = sbr.rel (%p6683_p5) target bundleno = 523 (0x20b), region = 1698  ;;  %s11328_s9 = smov (!%p6683_p5), %s10036_s29 }
 0x1f7   : > { %s11329_s5 = smov (!%p6683_p5), %s10031_s0  ;;  %s10048_s3 = smov (!%p6683_p5), 0  }
 0x1f8   : > { %s10050_s25 = smov (!%p6683_p5), 0  }
 0x1fd LB: >> { %v2046_v63 = vld [vmem:[%s9082_s5] sm:$0xf]  ;;  %v2048_v0 = vld [vmem:[%s9082_s5 + $0x4] sm:$0xf]  ;;  %v2050_v1 = vld [vmem:[%s9082_s5 + $0xc] sm:$0xf]  ;;  %s9090_s25 = sphi %s10050_s25, %s2040_s25   ;;  %s9086_s3 = sphi %s10048_s3, %s11330_s3   ;;  %s9082_s5 = sphi %s11329_s5, %s2063_s5   ;;  %s9078_s9 = sphi %s11328_s9, %s2064_s9  }
 0x1fe   : >> { %2047 = vst [vmem:[%s9078_s9] sm:$0xf] %v2046_v63  ;;  %2049 = vst [vmem:[%s9078_s9 + $0x4] sm:$0xf] %v2048_v0  ;;  %v2052_v2 = vld [vmem:[%s9082_s5 + $0x10] sm:$0xf]  ;;  %s2058_s8 = sadd.s32 1, %s9086_s3 }
 0x1ff   : >> { %2051 = vst [vmem:[%s9078_s9 + $0x8] sm:$0xf] %v2050_v1  ;;  %v2054_v3 = vld [vmem:[%s9082_s5 + $0x18] sm:$0xf]  ;;  %v2056_v4 = vld [vmem:[%s9082_s5 + $0x1c] sm:$0xf]  ;;  %p2059_p7 = scmp.ge.s32.totalorder %s2058_s8, %s10039_s26 }
 0x200   : >> { %2053 = vst [vmem:[%s9078_s9 + $0xc] sm:$0xf] %v2052_v2  ;;  %2055 = vst [vmem:[%s9078_s9 + $0x10] sm:$0xf] %v2054_v3  ;;  %s2040_s25 = sadd.s32 1, %s9090_s25  }
 0x201   : >> { %2057 = vst [vmem:[%s9078_s9 + $0x14] sm:$0xf] %v2056_v4  ;;  %s11545_s8 = smov (%p2059_p7, %s2058_s8), 0  ;;  %p2039_p8 = scmp.ge.s32.totalorder %s2040_s25, %s10039_s26 }
 0x202   : >> { %s6684_s21 = sshll.u32 %s11545_s8, 3  ;;  %s11330_s3 = smov %s11545_s8 }
 0x203   : >> { %s2063_s5 = scalar_lea.vmem %s10031_s0, %s6684_s21   ;;  %s2064_s9 = scalar_lea.vmem %s10036_s29, %s6684_s21 [#allocation9]  }
 0x204   : > { %2042 = sbr.rel (!%p2039_p8) target bundleno = 509 (0x1fd), region = 1704 }
 0x20b PF: > { %s10069_s23 = sand.u32 1, %s11543_s1   ;;  %s6881_s22 = sshll.u32 %s10039_s26, 3 }
 0x20c   : > { %s10073_s28 = scalar_lea.vmem %s10031_s0, %s6881_s22   ;;  %s10076_s21 = scalar_lea.vmem %s10036_s29, %s6881_s22 [#allocation9]  }
 0x20d   : > { %p6689_p9 = scmp.le.s32.totalorder %s10069_s23, 0 }
 0x20e   : > { %s11331_s25 = smov (!%p6689_p9), %s10076_s21  ;;  %s9096_s8 = smov (!%p6689_p9), %s10073_s28  }
 0x20f   : > { %6178 = sbr.rel (%p6689_p9) target bundleno = 545 (0x221), region = 1709  ;;  %s9100_s9 = smov (!%p6689_p9), 0  }
 0x210   : > { %s9104_s5 = smov (!%p6689_p9), 0  }
 0x216 LB: >> { %v2081_v5 = vld [vmem:[%s9098_s8] sm:$0xf]  ;;  %v2083_v6 = vld [vmem:[%s9098_s8 + $0xc] sm:$0xf]  ;;  %v2085_v7 = vld [vmem:[%s9098_s8 + $0x18] sm:$0xf]  ;;  %s9106_s5 = sphi %s9104_s5, %s2075_s5   ;;  %s9102_s9 = sphi %s9100_s9, %s9101_s9   ;;  %s9098_s8 = sphi %s9096_s8, %s2092_s8   ;;  %s9094_s25 = sphi %s11331_s25, %s2093_s25  }
 0x217   : >> { %2082 = vst [vmem:[%s9094_s25] sm:$0xf] %v2081_v5  ;;  %2084 = vst [vmem:[%s9094_s25 + $0x8] sm:$0xf] %v2083_v6  ;;  %s2087_s1 = sadd.s32 1, %s9102_s9  ;;  %s2075_s5 = sadd.s32 1, %s9106_s5  }
 0x218   : >> { %2086 = vst [vmem:[%s9094_s25 + $0x10] sm:$0xf] %v2085_v7  ;;  %p2088_p10 = scmp.ge.s32.totalorder %s2087_s1, %s10069_s23  ;;  %p2074_p11 = scmp.ge.s32.totalorder %s2075_s5, %s10069_s23 }
 0x21a   : >> { %s11547_s1 = smov (%p2088_p10, %s2087_s1), 0  ;;  %2077 = sbr.rel (!%p2074_p11) target bundleno = 534 (0x216), region = 1715 }
 0x21b   : >> { %s6690_s0 = sshll.u32 %s11547_s1, 2  ;;  %s9101_s9 = smov %s11547_s1  }
 0x21c   : >> { %s2092_s8 = scalar_lea.vmem %s10073_s28, %s6690_s0   ;;  %s2093_s25 = scalar_lea.vmem %s10076_s21, %s6690_s0 [#allocation9]  }
 0x221 PF: > { %2198 = sbr.rel (!%p9544_p4) target bundleno = 607 (0x25f), region = 516  ;;  %s2200_s29 = sand.u32 (%p9544_p4), 1, %s8846_s6  }
 0x222   : > { %s6692_s26 = sshll.u32 (%p9544_p4), %s8850_s30, 1  ;;  %s7170_s3 = smul.u32 (%p9544_p4), 24, %s2200_s29 }
 0x223   : > { %s2204_s22 = ssub.s32 (%p9544_p4), 3, %s6692_s26  ;;  %s6883_s9 = sshll.u32 (%p9544_p4), %s8850_s30, 3 }
 0x224   : > { %p2205_p12 = scmp.lt.s32.totalorder (%p9544_p4), %s2204_s22, 2  ;;  %s11332_s1 = sld [smem:[#allocation48_spill]] (%p9544_p4) }
 0x225   : > { %s10103_s28 = scalar_lea.vmem (%p9544_p4), [#allocation10], %s7170_s3  }
 0x228   : > { %s11549_s22 = smov (!%p2205_p12, %s2204_s22), 2 }
 0x229   : > { %s2207_s23 = smul.u32 192, %s11549_s22 }
 0x22a   : > { %s10098_s5 = scalar_lea.vmem %s11332_s1, %s6883_s9  }
 0x22b   : > { %p6695_p13 = scmp.eq.s32.totalorder %s2207_s23, 0 }
 0x22c   : > { %s10106_s21 = sshrl.u32 (!%p6695_p13), %s11549_s22, 1 }
 0x22d   : > { %2213 = sbr.rel (%p6695_p13) target bundleno = 607 (0x25f), region = 520  ;;  %p6696_p0 = scmp.le.s32.totalorder (!%p6695_p13), %s10106_s21, 0 }
 0x234   : > { %6192 = sbr.rel (%p6696_p0) target bundleno = 585 (0x249), region = 1720  ;;  %s11333_s0 = smov (!%p6696_p0), %s10103_s28 }
 0x235   : > { %s11334_s29 = smov (!%p6696_p0), %s10098_s5  ;;  %s10115_s26 = smov (!%p6696_p0), 0  }
 0x236   : > { %s10117_s9 = smov (!%p6696_p0), 0  }
 0x23b LB: >> { %v2229_v8 = vld [vmem:[%s9114_s29] sm:$0xf]  ;;  %v2231_v9 = vld [vmem:[%s9114_s29 + $0x4] sm:$0xf]  ;;  %v2233_v10 = vld [vmem:[%s9114_s29 + $0xc] sm:$0xf]  ;;  %s9122_s9 = sphi %s10117_s9, %s2223_s9   ;;  %s9118_s26 = sphi %s10115_s26, %s11335_s26   ;;  %s9114_s29 = sphi %s11334_s29, %s2246_s29   ;;  %s9110_s0 = sphi %s11333_s0, %s2247_s0  }
 0x23c   : >> { %2230 = vst [vmem:[%s9110_s0] sm:$0xf] %v2229_v8  ;;  %2232 = vst [vmem:[%s9110_s0 + $0x4] sm:$0xf] %v2231_v9  ;;  %v2235_v11 = vld [vmem:[%s9114_s29 + $0x10] sm:$0xf]  ;;  %s2241_s3 = sadd.s32 1, %s9118_s26 }
 0x23d   : >> { %2234 = vst [vmem:[%s9110_s0 + $0x8] sm:$0xf] %v2233_v10  ;;  %v2237_v12 = vld [vmem:[%s9114_s29 + $0x18] sm:$0xf]  ;;  %v2239_v13 = vld [vmem:[%s9114_s29 + $0x1c] sm:$0xf]  ;;  %p2242_p1 = scmp.ge.s32.totalorder %s2241_s3, %s10106_s21 }
 0x23e   : >> { %2236 = vst [vmem:[%s9110_s0 + $0xc] sm:$0xf] %v2235_v11  ;;  %2238 = vst [vmem:[%s9110_s0 + $0x10] sm:$0xf] %v2237_v12  ;;  %s2223_s9 = sadd.s32 1, %s9122_s9  }
 0x23f   : >> { %2240 = vst [vmem:[%s9110_s0 + $0x14] sm:$0xf] %v2239_v13  ;;  %s11551_s3 = smov (%p2242_p1, %s2241_s3), 0  ;;  %p2222_p2 = scmp.ge.s32.totalorder %s2223_s9, %s10106_s21 }
 0x240   : >> { %s6697_s25 = sshll.u32 %s11551_s3, 3  ;;  %s11335_s26 = smov %s11551_s3 }
 0x241   : >> { %s2246_s29 = scalar_lea.vmem %s10098_s5, %s6697_s25   ;;  %s2247_s0 = scalar_lea.vmem %s10103_s28, %s6697_s25 [#allocation10]  }
 0x242   : > { %2225 = sbr.rel (!%p2222_p2) target bundleno = 571 (0x23b), region = 1726 }
 0x249 PF: > { %s10136_s8 = sand.u32 1, %s11549_s22   ;;  %s6884_s1 = sshll.u32 %s10106_s21, 3 }
 0x24a   : > { %s10140_s23 = scalar_lea.vmem %s10098_s5, %s6884_s1   ;;  %s10143_s25 = scalar_lea.vmem %s10103_s28, %s6884_s1 [#allocation10]  }
 0x24b   : > { %p6702_p3 = scmp.le.s32.totalorder %s10136_s8, 0 }
 0x24c   : > { %s11336_s9 = smov (!%p6702_p3), %s10143_s25  ;;  %s9128_s3 = smov (!%p6702_p3), %s10140_s23  }
 0x24d   : > { %6206 = sbr.rel (%p6702_p3) target bundleno = 607 (0x25f), region = 1731  ;;  %s9132_s0 = smov (!%p6702_p3), 0  }
 0x24e   : > { %s9136_s29 = smov (!%p6702_p3), 0  }
 0x254 LB: >> { %v2264_v14 = vld [vmem:[%s9130_s3] sm:$0xf]  ;;  %v2266_v15 = vld [vmem:[%s9130_s3 + $0xc] sm:$0xf]  ;;  %v2268_v16 = vld [vmem:[%s9130_s3 + $0x18] sm:$0xf]  ;;  %s9138_s29 = sphi %s9136_s29, %s2258_s29   ;;  %s9134_s0 = sphi %s9132_s0, %s9133_s0   ;;  %s9130_s3 = sphi %s9128_s3, %s2275_s3   ;;  %s9126_s9 = sphi %s11336_s9, %s2276_s9  }
 0x255   : >> { %2265 = vst [vmem:[%s9126_s9] sm:$0xf] %v2264_v14  ;;  %2267 = vst [vmem:[%s9126_s9 + $0x8] sm:$0xf] %v2266_v15  ;;  %s2270_s22 = sadd.s32 1, %s9134_s0  ;;  %s2258_s29 = sadd.s32 1, %s9138_s29  }
 0x256   : >> { %2269 = vst [vmem:[%s9126_s9 + $0x10] sm:$0xf] %v2268_v16  ;;  %p2271_p5 = scmp.ge.s32.totalorder %s2270_s22, %s10136_s8  ;;  %p2257_p7 = scmp.ge.s32.totalorder %s2258_s29, %s10136_s8 }
 0x258   : >> { %s11553_s22 = smov (%p2271_p5, %s2270_s22), 0  ;;  %2260 = sbr.rel (!%p2257_p7) target bundleno = 596 (0x254), region = 1737 }
 0x259   : >> { %s6703_s5 = sshll.u32 %s11553_s22, 2  ;;  %s9133_s0 = smov %s11553_s22  }
 0x25a   : >> { %s2275_s3 = scalar_lea.vmem %s10140_s23, %s6703_s5   ;;  %s2276_s9 = scalar_lea.vmem %s10143_s25, %s6703_s5 [#allocation10]  }
 0x25f PF: > { %2381 = sbr.rel (!%p9544_p4) target bundleno = 669 (0x29d), region = 578  ;;  %s2383_s28 = sand.u32 (%p9544_p4), 1, %s8846_s6  }
 0x260   : > { %s6705_s21 = sshll.u32 (%p9544_p4), %s8850_s30, 1  ;;  %s7171_s26 = smul.u32 (%p9544_p4), 24, %s2383_s28 }
 0x261   : > { %s2387_s1 = ssub.s32 (%p9544_p4), 3, %s6705_s21  ;;  %s6886_s0 = sshll.u32 (%p9544_p4), %s8850_s30, 3 }
 0x262   : > { %p2388_p8 = scmp.lt.s32.totalorder (%p9544_p4), %s2387_s1, 2  ;;  %s11337_s22 = sld [smem:[#allocation49_spill]] (%p9544_p4) }
 0x263   : > { %s10170_s23 = scalar_lea.vmem (%p9544_p4), [#allocation11], %s7171_s26  }
 0x266   : > { %s11555_s1 = smov (!%p2388_p8, %s2387_s1), 2 }
 0x267   : > { %s2390_s8 = smul.u32 192, %s11555_s1 }
 0x268   : > { %s10165_s29 = scalar_lea.vmem %s11337_s22, %s6886_s0  }
 0x269   : > { %p6708_p9 = scmp.eq.s32.totalorder %s2390_s8, 0 }
 0x26a   : > { %s10173_s25 = sshrl.u32 (!%p6708_p9), %s11555_s1, 1 }
 0x26b   : > { %2396 = sbr.rel (%p6708_p9) target bundleno = 669 (0x29d), region = 582  ;;  %p6709_p10 = scmp.le.s32.totalorder (!%p6708_p9), %s10173_s25, 0 }
 0x272   : > { %6220 = sbr.rel (%p6709_p10) target bundleno = 647 (0x287), region = 1742  ;;  %s11338_s5 = smov (!%p6709_p10), %s10170_s23 }
 0x273   : > { %s11339_s28 = smov (!%p6709_p10), %s10165_s29  ;;  %s10182_s21 = smov (!%p6709_p10), 0  }
 0x274   : > { %s10184_s0 = smov (!%p6709_p10), 0  }
 0x279 LB: >> { %v2412_v17 = vld [vmem:[%s9146_s28] sm:$0xf]  ;;  %v2414_v18 = vld [vmem:[%s9146_s28 + $0x4] sm:$0xf]  ;;  %v2416_v19 = vld [vmem:[%s9146_s28 + $0xc] sm:$0xf]  ;;  %s9154_s0 = sphi %s10184_s0, %s2406_s0   ;;  %s9150_s21 = sphi %s10182_s21, %s11340_s21   ;;  %s9146_s28 = sphi %s11339_s28, %s2429_s28   ;;  %s9142_s5 = sphi %s11338_s5, %s2430_s5  }
 0x27a   : >> { %2413 = vst [vmem:[%s9142_s5] sm:$0xf] %v2412_v17  ;;  %2415 = vst [vmem:[%s9142_s5 + $0x4] sm:$0xf] %v2414_v18  ;;  %v2418_v20 = vld [vmem:[%s9146_s28 + $0x10] sm:$0xf]  ;;  %s2424_s26 = sadd.s32 1, %s9150_s21 }
 0x27b   : >> { %2417 = vst [vmem:[%s9142_s5 + $0x8] sm:$0xf] %v2416_v19  ;;  %v2420_v21 = vld [vmem:[%s9146_s28 + $0x18] sm:$0xf]  ;;  %v2422_v22 = vld [vmem:[%s9146_s28 + $0x1c] sm:$0xf]  ;;  %p2425_p11 = scmp.ge.s32.totalorder %s2424_s26, %s10173_s25 }
 0x27c   : >> { %2419 = vst [vmem:[%s9142_s5 + $0xc] sm:$0xf] %v2418_v20  ;;  %2421 = vst [vmem:[%s9142_s5 + $0x10] sm:$0xf] %v2420_v21  ;;  %s2406_s0 = sadd.s32 1, %s9154_s0  }
 0x27d   : >> { %2423 = vst [vmem:[%s9142_s5 + $0x14] sm:$0xf] %v2422_v22  ;;  %s11557_s26 = smov (%p2425_p11, %s2424_s26), 0  ;;  %p2405_p12 = scmp.ge.s32.totalorder %s2406_s0, %s10173_s25 }
 0x27e   : >> { %s6710_s9 = sshll.u32 %s11557_s26, 3  ;;  %s11340_s21 = smov %s11557_s26 }
 0x27f   : >> { %s2429_s28 = scalar_lea.vmem %s10165_s29, %s6710_s9   ;;  %s2430_s5 = scalar_lea.vmem %s10170_s23, %s6710_s9 [#allocation11]  }
 0x280   : > { %2408 = sbr.rel (!%p2405_p12) target bundleno = 633 (0x279), region = 1748 }
 0x287 PF: > { %s10203_s3 = sand.u32 1, %s11555_s1   ;;  %s6887_s22 = sshll.u32 %s10173_s25, 3 }
 0x288   : > { %s10207_s8 = scalar_lea.vmem %s10165_s29, %s6887_s22   ;;  %s10210_s9 = scalar_lea.vmem %s10170_s23, %s6887_s22 [#allocation11]  }
 0x289   : > { %p6715_p13 = scmp.le.s32.totalorder %s10203_s3, 0 }
 0x28a   : > { %s11341_s0 = smov (!%p6715_p13), %s10210_s9  ;;  %s9160_s26 = smov (!%p6715_p13), %s10207_s8  }
 0x28b   : > { %6234 = sbr.rel (%p6715_p13) target bundleno = 669 (0x29d), region = 1753  ;;  %s9164_s5 = smov (!%p6715_p13), 0  }
 0x28c   : > { %s9168_s28 = smov (!%p6715_p13), 0  }
 0x292 LB: >> { %v2447_v23 = vld [vmem:[%s9162_s26] sm:$0xf]  ;;  %v2449_v24 = vld [vmem:[%s9162_s26 + $0xc] sm:$0xf]  ;;  %v2451_v25 = vld [vmem:[%s9162_s26 + $0x18] sm:$0xf]  ;;  %s9170_s28 = sphi %s9168_s28, %s2441_s28   ;;  %s9166_s5 = sphi %s9164_s5, %s9165_s5   ;;  %s9162_s26 = sphi %s9160_s26, %s2458_s26   ;;  %s9158_s0 = sphi %s11341_s0, %s2459_s0  }
 0x293   : >> { %2448 = vst [vmem:[%s9158_s0] sm:$0xf] %v2447_v23  ;;  %2450 = vst [vmem:[%s9158_s0 + $0x8] sm:$0xf] %v2449_v24  ;;  %s2453_s1 = sadd.s32 1, %s9166_s5  ;;  %s2441_s28 = sadd.s32 1, %s9170_s28  }
 0x294   : >> { %2452 = vst [vmem:[%s9158_s0 + $0x10] sm:$0xf] %v2451_v25  ;;  %p2454_p0 = scmp.ge.s32.totalorder %s2453_s1, %s10203_s3  ;;  %p2440_p1 = scmp.ge.s32.totalorder %s2441_s28, %s10203_s3 }
 0x296   : >> { %s11559_s1 = smov (%p2454_p0, %s2453_s1), 0  ;;  %2443 = sbr.rel (!%p2440_p1) target bundleno = 658 (0x292), region = 1759 }
 0x297   : >> { %s6716_s29 = sshll.u32 %s11559_s1, 2  ;;  %s9165_s5 = smov %s11559_s1  }
 0x298   : >> { %s2458_s26 = scalar_lea.vmem %s10207_s8, %s6716_s29   ;;  %s2459_s0 = scalar_lea.vmem %s10210_s9, %s6716_s29 [#allocation11]  }
 0x29d PF: > { %2564 = sbr.rel (!%p9544_p4) target bundleno = 731 (0x2db), region = 640  ;;  %s2566_s23 = sand.u32 (%p9544_p4), 1, %s8846_s6  }
 0x29e   : > { %s6718_s25 = sshll.u32 (%p9544_p4), %s8850_s30, 1  ;;  %s7172_s21 = smul.u32 (%p9544_p4), 24, %s2566_s23 }
 0x29f   : > { %s2570_s22 = ssub.s32 (%p9544_p4), 3, %s6718_s25  ;;  %s6889_s5 = sshll.u32 (%p9544_p4), %s8850_s30, 3 }
 0x2a0   : > { %p2571_p2 = scmp.lt.s32.totalorder (%p9544_p4), %s2570_s22, 2  ;;  %s11342_s10 = sld [smem:[#allocation50_spill]] (%p9544_p4) }
 0x2a1   : > { %s10237_s8 = scalar_lea.vmem (%p9544_p4), [#allocation12], %s7172_s21  }
 0x2a4   : > { %s11561_s22 = smov (!%p2571_p2, %s2570_s22), 2 }
 0x2a5   : > { %s2573_s3 = smul.u32 192, %s11561_s22 }
 0x2a6   : > { %s10232_s28 = scalar_lea.vmem %s11342_s10, %s6889_s5  }
 0x2a7   : > { %p6721_p3 = scmp.eq.s32.totalorder %s2573_s3, 0 }
 0x2a8   : > { %s10240_s9 = sshrl.u32 (!%p6721_p3), %s11561_s22, 1 }
 0x2a9   : > { %2579 = sbr.rel (%p6721_p3) target bundleno = 731 (0x2db), region = 644  ;;  %p6722_p5 = scmp.le.s32.totalorder (!%p6721_p3), %s10240_s9, 0 }
 0x2b0   : > { %6248 = sbr.rel (%p6722_p5) target bundleno = 709 (0x2c5), region = 1764  ;;  %s11343_s1 = smov (!%p6722_p5), %s10237_s8 }
 0x2b1   : > { %s11344_s29 = smov (!%p6722_p5), %s10232_s28  ;;  %s10249_s23 = smov (!%p6722_p5), 0  }
 0x2b2   : > { %s10251_s25 = smov (!%p6722_p5), 0  }
 0x2b7 LB: >> { %v2595_v26 = vld [vmem:[%s9178_s29] sm:$0xf]  ;;  %v2597_v27 = vld [vmem:[%s9178_s29 + $0x4] sm:$0xf]  ;;  %v2599_v28 = vld [vmem:[%s9178_s29 + $0xc] sm:$0xf]  ;;  %s9186_s25 = sphi %s10251_s25, %s2589_s25   ;;  %s9182_s23 = sphi %s10249_s23, %s11345_s23   ;;  %s9178_s29 = sphi %s11344_s29, %s2612_s29   ;;  %s9174_s1 = sphi %s11343_s1, %s2613_s1  }
 0x2b8   : >> { %2596 = vst [vmem:[%s9174_s1] sm:$0xf] %v2595_v26  ;;  %2598 = vst [vmem:[%s9174_s1 + $0x4] sm:$0xf] %v2597_v27  ;;  %v2601_v29 = vld [vmem:[%s9178_s29 + $0x10] sm:$0xf]  ;;  %s2607_s21 = sadd.s32 1, %s9182_s23 }
 0x2b9   : >> { %2600 = vst [vmem:[%s9174_s1 + $0x8] sm:$0xf] %v2599_v28  ;;  %v2603_v30 = vld [vmem:[%s9178_s29 + $0x18] sm:$0xf]  ;;  %v2605_v31 = vld [vmem:[%s9178_s29 + $0x1c] sm:$0xf]  ;;  %p2608_p7 = scmp.ge.s32.totalorder %s2607_s21, %s10240_s9 }
 0x2ba   : >> { %2602 = vst [vmem:[%s9174_s1 + $0xc] sm:$0xf] %v2601_v29  ;;  %2604 = vst [vmem:[%s9174_s1 + $0x10] sm:$0xf] %v2603_v30  ;;  %s2589_s25 = sadd.s32 1, %s9186_s25  }
 0x2bb   : >> { %2606 = vst [vmem:[%s9174_s1 + $0x14] sm:$0xf] %v2605_v31  ;;  %s11563_s21 = smov (%p2608_p7, %s2607_s21), 0  ;;  %p2588_p8 = scmp.ge.s32.totalorder %s2589_s25, %s10240_s9 }
 0x2bc   : >> { %s6723_s5 = sshll.u32 %s11563_s21, 3  ;;  %s11345_s23 = smov %s11563_s21 }
 0x2bd   : >> { %s2612_s29 = scalar_lea.vmem %s10232_s28, %s6723_s5   ;;  %s2613_s1 = scalar_lea.vmem %s10237_s8, %s6723_s5 [#allocation12]  }
 0x2be   : > { %2591 = sbr.rel (!%p2588_p8) target bundleno = 695 (0x2b7), region = 1770 }
 0x2c5 PF: > { %s10270_s0 = sand.u32 1, %s11561_s22   ;;  %s6890_s26 = sshll.u32 %s10240_s9, 3 }
 0x2c6   : > { %s10274_s3 = scalar_lea.vmem %s10232_s28, %s6890_s26   ;;  %s10277_s5 = scalar_lea.vmem %s10237_s8, %s6890_s26 [#allocation12]  }
 0x2c7   : > { %p6728_p9 = scmp.le.s32.totalorder %s10270_s0, 0 }
 0x2c8   : > { %s11346_s25 = smov (!%p6728_p9), %s10277_s5  ;;  %s9192_s21 = smov (!%p6728_p9), %s10274_s3  }
 0x2c9   : > { %6262 = sbr.rel (%p6728_p9) target bundleno = 731 (0x2db), region = 1775  ;;  %s9196_s1 = smov (!%p6728_p9), 0  }
 0x2ca   : > { %s9200_s29 = smov (!%p6728_p9), 0  }
 0x2d0 LB: >> { %v2630_v32 = vld [vmem:[%s9194_s21] sm:$0xf]  ;;  %v2632_v33 = vld [vmem:[%s9194_s21 + $0xc] sm:$0xf]  ;;  %v2634_v34 = vld [vmem:[%s9194_s21 + $0x18] sm:$0xf]  ;;  %s9202_s29 = sphi %s9200_s29, %s2624_s29   ;;  %s9198_s1 = sphi %s9196_s1, %s9197_s1   ;;  %s9194_s21 = sphi %s9192_s21, %s2641_s21   ;;  %s9190_s25 = sphi %s11346_s25, %s2642_s25  }
 0x2d1   : >> { %2631 = vst [vmem:[%s9190_s25] sm:$0xf] %v2630_v32  ;;  %2633 = vst [vmem:[%s9190_s25 + $0x8] sm:$0xf] %v2632_v33  ;;  %s2636_s22 = sadd.s32 1, %s9198_s1  ;;  %s2624_s29 = sadd.s32 1, %s9202_s29  }
 0x2d2   : >> { %2635 = vst [vmem:[%s9190_s25 + $0x10] sm:$0xf] %v2634_v34  ;;  %p2637_p10 = scmp.ge.s32.totalorder %s2636_s22, %s10270_s0  ;;  %p2623_p11 = scmp.ge.s32.totalorder %s2624_s29, %s10270_s0 }
 0x2d4   : >> { %s11565_s22 = smov (%p2637_p10, %s2636_s22), 0  ;;  %2626 = sbr.rel (!%p2623_p11) target bundleno = 720 (0x2d0), region = 1781 }
 0x2d5   : >> { %s6729_s28 = sshll.u32 %s11565_s22, 2  ;;  %s9197_s1 = smov %s11565_s22  }
 0x2d6   : >> { %s2641_s21 = scalar_lea.vmem %s10274_s3, %s6729_s28   ;;  %s2642_s25 = scalar_lea.vmem %s10277_s5, %s6729_s28 [#allocation12]  }
 0x2db PF: > { %2747 = sbr.rel (!%p9544_p4) target bundleno = 793 (0x319), region = 702  ;;  %s2749_s8 = sand.u32 (%p9544_p4), 1, %s8846_s6  }
 0x2dc   : > { %s6731_s9 = sshll.u32 (%p9544_p4), %s8850_s30, 1  ;;  %s7173_s23 = smul.u32 (%p9544_p4), 24, %s2749_s8 }
 0x2dd   : > { %s2753_s26 = ssub.s32 (%p9544_p4), 3, %s6731_s9  ;;  %s6892_s1 = sshll.u32 (%p9544_p4), %s8850_s30, 3 }
 0x2de   : > { %p2754_p12 = scmp.lt.s32.totalorder (%p9544_p4), %s2753_s26, 2  ;;  %s11347_s11 = sld [smem:[#allocation51_spill]] (%p9544_p4) }
 0x2df   : > { %s10304_s3 = scalar_lea.vmem (%p9544_p4), [#allocation13], %s7173_s23  }
 0x2e2   : > { %s11567_s26 = smov (!%p2754_p12, %s2753_s26), 2 }
 0x2e3   : > { %s2756_s0 = smul.u32 192, %s11567_s26 }
 0x2e4   : > { %s10299_s29 = scalar_lea.vmem %s11347_s11, %s6892_s1  }
 0x2e5   : > { %p6734_p13 = scmp.eq.s32.totalorder %s2756_s0, 0 }
 0x2e6   : > { %s10307_s5 = sshrl.u32 (!%p6734_p13), %s11567_s26, 1 }
 0x2e7   : > { %2762 = sbr.rel (%p6734_p13) target bundleno = 793 (0x319), region = 706  ;;  %p6735_p0 = scmp.le.s32.totalorder (!%p6734_p13), %s10307_s5, 0 }
 0x2ee   : > { %6276 = sbr.rel (%p6735_p0) target bundleno = 771 (0x303), region = 1786  ;;  %s11348_s22 = smov (!%p6735_p0), %s10304_s3 }
 0x2ef   : > { %s11349_s28 = smov (!%p6735_p0), %s10299_s29  ;;  %s10316_s8 = smov (!%p6735_p0), 0  }
 0x2f0   : > { %s10318_s9 = smov (!%p6735_p0), 0  }
 0x2f5 LB: >> { %v2778_v35 = vld [vmem:[%s9210_s28] sm:$0xf]  ;;  %v2780_v36 = vld [vmem:[%s9210_s28 + $0x4] sm:$0xf]  ;;  %v2782_v37 = vld [vmem:[%s9210_s28 + $0xc] sm:$0xf]  ;;  %s9218_s9 = sphi %s10318_s9, %s2772_s9   ;;  %s9214_s8 = sphi %s10316_s8, %s11350_s8   ;;  %s9210_s28 = sphi %s11349_s28, %s2795_s28   ;;  %s9206_s22 = sphi %s11348_s22, %s2796_s22  }
 0x2f6   : >> { %2779 = vst [vmem:[%s9206_s22] sm:$0xf] %v2778_v35  ;;  %2781 = vst [vmem:[%s9206_s22 + $0x4] sm:$0xf] %v2780_v36  ;;  %v2784_v38 = vld [vmem:[%s9210_s28 + $0x10] sm:$0xf]  ;;  %s2790_s23 = sadd.s32 1, %s9214_s8 }
 0x2f7   : >> { %2783 = vst [vmem:[%s9206_s22 + $0x8] sm:$0xf] %v2782_v37  ;;  %v2786_v39 = vld [vmem:[%s9210_s28 + $0x18] sm:$0xf]  ;;  %v2788_v40 = vld [vmem:[%s9210_s28 + $0x1c] sm:$0xf]  ;;  %p2791_p1 = scmp.ge.s32.totalorder %s2790_s23, %s10307_s5 }
 0x2f8   : >> { %2785 = vst [vmem:[%s9206_s22 + $0xc] sm:$0xf] %v2784_v38  ;;  %2787 = vst [vmem:[%s9206_s22 + $0x10] sm:$0xf] %v2786_v39  ;;  %s2772_s9 = sadd.s32 1, %s9218_s9  }
 0x2f9   : >> { %2789 = vst [vmem:[%s9206_s22 + $0x14] sm:$0xf] %v2788_v40  ;;  %s11569_s23 = smov (%p2791_p1, %s2790_s23), 0  ;;  %p2771_p2 = scmp.ge.s32.totalorder %s2772_s9, %s10307_s5 }
 0x2fa   : >> { %s6736_s1 = sshll.u32 %s11569_s23, 3  ;;  %s11350_s8 = smov %s11569_s23 }
 0x2fb   : >> { %s2795_s28 = scalar_lea.vmem %s10299_s29, %s6736_s1   ;;  %s2796_s22 = scalar_lea.vmem %s10304_s3, %s6736_s1 [#allocation13]  }
 0x2fc   : > { %2774 = sbr.rel (!%p2771_p2) target bundleno = 757 (0x2f5), region = 1792 }
 0x303 PF: > { %s10337_s25 = sand.u32 1, %s11567_s26   ;;  %s6893_s21 = sshll.u32 %s10307_s5, 3 }
 0x304   : > { %s10341_s0 = scalar_lea.vmem %s10299_s29, %s6893_s21   ;;  %s10344_s1 = scalar_lea.vmem %s10304_s3, %s6893_s21 [#allocation13]  }
 0x305   : > { %p6741_p3 = scmp.le.s32.totalorder %s10337_s25, 0 }
 0x306   : > { %s11351_s9 = smov (!%p6741_p3), %s10344_s1  ;;  %s9224_s23 = smov (!%p6741_p3), %s10341_s0  }
 0x307   : > { %6290 = sbr.rel (%p6741_p3) target bundleno = 793 (0x319), region = 1797  ;;  %s9228_s22 = smov (!%p6741_p3), 0  }
 0x308   : > { %s9232_s28 = smov (!%p6741_p3), 0  }
 0x30e LB: >> { %v2813_v41 = vld [vmem:[%s9226_s23] sm:$0xf]  ;;  %v2815_v42 = vld [vmem:[%s9226_s23 + $0xc] sm:$0xf]  ;;  %v2817_v43 = vld [vmem:[%s9226_s23 + $0x18] sm:$0xf]  ;;  %s9234_s28 = sphi %s9232_s28, %s2807_s28   ;;  %s9230_s22 = sphi %s9228_s22, %s9229_s22   ;;  %s9226_s23 = sphi %s9224_s23, %s2824_s23   ;;  %s9222_s9 = sphi %s11351_s9, %s2825_s9  }
 0x30f   : >> { %2814 = vst [vmem:[%s9222_s9] sm:$0xf] %v2813_v41  ;;  %2816 = vst [vmem:[%s9222_s9 + $0x8] sm:$0xf] %v2815_v42  ;;  %s2819_s26 = sadd.s32 1, %s9230_s22  ;;  %s2807_s28 = sadd.s32 1, %s9234_s28  }
 0x310   : >> { %2818 = vst [vmem:[%s9222_s9 + $0x10] sm:$0xf] %v2817_v43  ;;  %p2820_p5 = scmp.ge.s32.totalorder %s2819_s26, %s10337_s25  ;;  %p2806_p7 = scmp.ge.s32.totalorder %s2807_s28, %s10337_s25 }
 0x312   : >> { %s11571_s26 = smov (%p2820_p5, %s2819_s26), 0  ;;  %2809 = sbr.rel (!%p2806_p7) target bundleno = 782 (0x30e), region = 1803 }
 0x313   : >> { %s6742_s29 = sshll.u32 %s11571_s26, 2  ;;  %s9229_s22 = smov %s11571_s26  }
 0x314   : >> { %s2824_s23 = scalar_lea.vmem %s10341_s0, %s6742_s29   ;;  %s2825_s9 = scalar_lea.vmem %s10344_s1, %s6742_s29 [#allocation13]  }
 0x319 PF: > { %2930 = sbr.rel (!%p9544_p4) target bundleno = 855 (0x357), region = 764  ;;  %s2932_s3 = sand.u32 (%p9544_p4), 1, %s8846_s6  }
 0x31a   : > { %s6744_s5 = sshll.u32 (%p9544_p4), %s8850_s30, 1  ;;  %s7174_s8 = smul.u32 (%p9544_p4), 24, %s2932_s3 }
 0x31b   : > { %s2936_s21 = ssub.s32 (%p9544_p4), 3, %s6744_s5  ;;  %s6895_s22 = sshll.u32 (%p9544_p4), %s8850_s30, 3 }
 0x31c   : > { %p2937_p8 = scmp.lt.s32.totalorder (%p9544_p4), %s2936_s21, 2  ;;  %s11352_s12 = sld [smem:[#allocation52_spill]] (%p9544_p4) }
 0x31d   : > { %s10371_s0 = scalar_lea.vmem (%p9544_p4), [#allocation14], %s7174_s8  }
 0x320   : > { %s11573_s21 = smov (!%p2937_p8, %s2936_s21), 2 }
 0x321   : > { %s2939_s25 = smul.u32 192, %s11573_s21 }
 0x322   : > { %s10366_s28 = scalar_lea.vmem %s11352_s12, %s6895_s22  }
 0x323   : > { %p6747_p9 = scmp.eq.s32.totalorder %s2939_s25, 0 }
 0x324   : > { %s10374_s1 = sshrl.u32 (!%p6747_p9), %s11573_s21, 1 }
 0x325   : > { %2945 = sbr.rel (%p6747_p9) target bundleno = 855 (0x357), region = 768  ;;  %p6748_p10 = scmp.le.s32.totalorder (!%p6747_p9), %s10374_s1, 0 }
 0x32c   : > { %6304 = sbr.rel (%p6748_p10) target bundleno = 833 (0x341), region = 1808  ;;  %s11353_s26 = smov (!%p6748_p10), %s10371_s0 }
 0x32d   : > { %s11354_s29 = smov (!%p6748_p10), %s10366_s28  ;;  %s10383_s3 = smov (!%p6748_p10), 0  }
 0x32e   : > { %s10385_s5 = smov (!%p6748_p10), 0  }
 0x333 LB: >> { %v2961_v44 = vld [vmem:[%s9242_s29] sm:$0xf]  ;;  %v2963_v45 = vld [vmem:[%s9242_s29 + $0x4] sm:$0xf]  ;;  %v2965_v46 = vld [vmem:[%s9242_s29 + $0xc] sm:$0xf]  ;;  %s9250_s5 = sphi %s10385_s5, %s2955_s5   ;;  %s9246_s3 = sphi %s10383_s3, %s11355_s3   ;;  %s9242_s29 = sphi %s11354_s29, %s2978_s29   ;;  %s9238_s26 = sphi %s11353_s26, %s2979_s26  }
 0x334   : >> { %2962 = vst [vmem:[%s9238_s26] sm:$0xf] %v2961_v44  ;;  %2964 = vst [vmem:[%s9238_s26 + $0x4] sm:$0xf] %v2963_v45  ;;  %v2967_v47 = vld [vmem:[%s9242_s29 + $0x10] sm:$0xf]  ;;  %s2973_s8 = sadd.s32 1, %s9246_s3 }
 0x335   : >> { %2966 = vst [vmem:[%s9238_s26 + $0x8] sm:$0xf] %v2965_v46  ;;  %v2969_v48 = vld [vmem:[%s9242_s29 + $0x18] sm:$0xf]  ;;  %v2971_v49 = vld [vmem:[%s9242_s29 + $0x1c] sm:$0xf]  ;;  %p2974_p11 = scmp.ge.s32.totalorder %s2973_s8, %s10374_s1 }
 0x336   : >> { %2968 = vst [vmem:[%s9238_s26 + $0xc] sm:$0xf] %v2967_v47  ;;  %2970 = vst [vmem:[%s9238_s26 + $0x10] sm:$0xf] %v2969_v48  ;;  %s2955_s5 = sadd.s32 1, %s9250_s5  }
 0x337   : >> { %2972 = vst [vmem:[%s9238_s26 + $0x14] sm:$0xf] %v2971_v49  ;;  %s11575_s8 = smov (%p2974_p11, %s2973_s8), 0  ;;  %p2954_p12 = scmp.ge.s32.totalorder %s2955_s5, %s10374_s1 }
 0x338   : >> { %s6749_s22 = sshll.u32 %s11575_s8, 3  ;;  %s11355_s3 = smov %s11575_s8 }
 0x339   : >> { %s2978_s29 = scalar_lea.vmem %s10366_s28, %s6749_s22   ;;  %s2979_s26 = scalar_lea.vmem %s10371_s0, %s6749_s22 [#allocation14]  }
 0x33a   : > { %2957 = sbr.rel (!%p2954_p12) target bundleno = 819 (0x333), region = 1814 }
 0x341 PF: > { %s10404_s9 = sand.u32 1, %s11573_s21   ;;  %s6896_s23 = sshll.u32 %s10374_s1, 3 }
 0x342   : > { %s10408_s25 = scalar_lea.vmem %s10366_s28, %s6896_s23   ;;  %s10411_s22 = scalar_lea.vmem %s10371_s0, %s6896_s23 [#allocation14]  }
 0x343   : > { %p6754_p13 = scmp.le.s32.totalorder %s10404_s9, 0 }
 0x344   : > { %s11356_s5 = smov (!%p6754_p13), %s10411_s22  ;;  %s9256_s8 = smov (!%p6754_p13), %s10408_s25  }
 0x345   : > { %6318 = sbr.rel (%p6754_p13) target bundleno = 855 (0x357), region = 1819  ;;  %s9260_s26 = smov (!%p6754_p13), 0  }
 0x346   : > { %s9264_s29 = smov (!%p6754_p13), 0  }
 0x34c LB: >> { %v2996_v50 = vld [vmem:[%s9258_s8] sm:$0xf]  ;;  %v2998_v51 = vld [vmem:[%s9258_s8 + $0xc] sm:$0xf]  ;;  %v3000_v52 = vld [vmem:[%s9258_s8 + $0x18] sm:$0xf]  ;;  %s9266_s29 = sphi %s9264_s29, %s2990_s29   ;;  %s9262_s26 = sphi %s9260_s26, %s9261_s26   ;;  %s9258_s8 = sphi %s9256_s8, %s3007_s8   ;;  %s9254_s5 = sphi %s11356_s5, %s3008_s5  }
 0x34d   : >> { %2997 = vst [vmem:[%s9254_s5] sm:$0xf] %v2996_v50  ;;  %2999 = vst [vmem:[%s9254_s5 + $0x8] sm:$0xf] %v2998_v51  ;;  %s3002_s21 = sadd.s32 1, %s9262_s26  ;;  %s2990_s29 = sadd.s32 1, %s9266_s29  }
 0x34e   : >> { %3001 = vst [vmem:[%s9254_s5 + $0x10] sm:$0xf] %v3000_v52  ;;  %p3003_p0 = scmp.ge.s32.totalorder %s3002_s21, %s10404_s9  ;;  %p2989_p1 = scmp.ge.s32.totalorder %s2990_s29, %s10404_s9 }
 0x350   : >> { %s11577_s21 = smov (%p3003_p0, %s3002_s21), 0  ;;  %2992 = sbr.rel (!%p2989_p1) target bundleno = 844 (0x34c), region = 1825 }
 0x351   : >> { %s6755_s28 = sshll.u32 %s11577_s21, 2  ;;  %s9261_s26 = smov %s11577_s21  }
 0x352   : >> { %s3007_s8 = scalar_lea.vmem %s10408_s25, %s6755_s28   ;;  %s3008_s5 = scalar_lea.vmem %s10411_s22, %s6755_s28 [#allocation14]  }
 0x357 PF: > { %3113 = sbr.rel (!%p9544_p4) target bundleno = 917 (0x395), region = 826  ;;  %s3115_s0 = sand.u32 (%p9544_p4), 1, %s8846_s6  }
 0x358   : > { %s6757_s1 = sshll.u32 (%p9544_p4), %s8850_s30, 1  ;;  %s7175_s3 = smul.u32 (%p9544_p4), 24, %s3115_s0 }
 0x359   : > { %s3119_s23 = ssub.s32 (%p9544_p4), 3, %s6757_s1  ;;  %s6898_s26 = sshll.u32 (%p9544_p4), %s8850_s30, 3 }
 0x35a   : > { %p3120_p2 = scmp.lt.s32.totalorder (%p9544_p4), %s3119_s23, 2  ;;  %s11357_s13 = sld [smem:[#allocation53_spill]] (%p9544_p4) }
 0x35b   : > { %s10438_s25 = scalar_lea.vmem (%p9544_p4), [#allocation15], %s7175_s3  }
 0x35e   : > { %s11579_s23 = smov (!%p3120_p2, %s3119_s23), 2 }
 0x35f   : > { %s3122_s9 = smul.u32 192, %s11579_s23 }
 0x360   : > { %s10433_s29 = scalar_lea.vmem %s11357_s13, %s6898_s26  }
 0x361   : > { %p6760_p3 = scmp.eq.s32.totalorder %s3122_s9, 0 }
 0x362   : > { %s10441_s22 = sshrl.u32 (!%p6760_p3), %s11579_s23, 1 }
 0x363   : > { %3128 = sbr.rel (%p6760_p3) target bundleno = 917 (0x395), region = 830  ;;  %p6761_p5 = scmp.le.s32.totalorder (!%p6760_p3), %s10441_s22, 0 }
 0x36a   : > { %6332 = sbr.rel (%p6761_p5) target bundleno = 895 (0x37f), region = 1830  ;;  %s11358_s21 = smov (!%p6761_p5), %s10438_s25 }
 0x36b   : > { %s11359_s28 = smov (!%p6761_p5), %s10433_s29  ;;  %s10450_s0 = smov (!%p6761_p5), 0  }
 0x36c   : > { %s10452_s1 = smov (!%p6761_p5), 0  }
 0x371 LB: >> { %v3144_v53 = vld [vmem:[%s9274_s28] sm:$0xf]  ;;  %v3146_v54 = vld [vmem:[%s9274_s28 + $0x4] sm:$0xf]  ;;  %v3148_v55 = vld [vmem:[%s9274_s28 + $0xc] sm:$0xf]  ;;  %s9282_s1 = sphi %s10452_s1, %s3138_s1   ;;  %s9278_s0 = sphi %s10450_s0, %s11360_s0   ;;  %s9274_s28 = sphi %s11359_s28, %s3161_s28   ;;  %s9270_s21 = sphi %s11358_s21, %s3162_s21  }
 0x372   : >> { %3145 = vst [vmem:[%s9270_s21] sm:$0xf] %v3144_v53  ;;  %3147 = vst [vmem:[%s9270_s21 + $0x4] sm:$0xf] %v3146_v54  ;;  %v3150_v56 = vld [vmem:[%s9274_s28 + $0x10] sm:$0xf]  ;;  %s3156_s3 = sadd.s32 1, %s9278_s0 }
 0x373   : >> { %3149 = vst [vmem:[%s9270_s21 + $0x8] sm:$0xf] %v3148_v55  ;;  %v3152_v57 = vld [vmem:[%s9274_s28 + $0x18] sm:$0xf]  ;;  %v3154_v58 = vld [vmem:[%s9274_s28 + $0x1c] sm:$0xf]  ;;  %p3157_p7 = scmp.ge.s32.totalorder %s3156_s3, %s10441_s22 }
 0x374   : >> { %3151 = vst [vmem:[%s9270_s21 + $0xc] sm:$0xf] %v3150_v56  ;;  %3153 = vst [vmem:[%s9270_s21 + $0x10] sm:$0xf] %v3152_v57  ;;  %s3138_s1 = sadd.s32 1, %s9282_s1  }
 0x375   : >> { %3155 = vst [vmem:[%s9270_s21 + $0x14] sm:$0xf] %v3154_v58  ;;  %s11581_s3 = smov (%p3157_p7, %s3156_s3), 0  ;;  %p3137_p8 = scmp.ge.s32.totalorder %s3138_s1, %s10441_s22 }
 0x376   : >> { %s6762_s26 = sshll.u32 %s11581_s3, 3  ;;  %s11360_s0 = smov %s11581_s3 }
 0x377   : >> { %s3161_s28 = scalar_lea.vmem %s10433_s29, %s6762_s26   ;;  %s3162_s21 = scalar_lea.vmem %s10438_s25, %s6762_s26 [#allocation15]  }
 0x378   : > { %3140 = sbr.rel (!%p3137_p8) target bundleno = 881 (0x371), region = 1836 }
 0x37f PF: > { %s10471_s5 = sand.u32 1, %s11579_s23   ;;  %s6899_s8 = sshll.u32 %s10441_s22, 3 }
 0x380   : > { %s10475_s9 = scalar_lea.vmem %s10433_s29, %s6899_s8   ;;  %s10478_s26 = scalar_lea.vmem %s10438_s25, %s6899_s8 [#allocation15]  }
 0x381   : > { %p6767_p9 = scmp.le.s32.totalorder %s10471_s5, 0 }
 0x382   : > { %s11361_s1 = smov (!%p6767_p9), %s10478_s26  ;;  %s9288_s3 = smov (!%p6767_p9), %s10475_s9  }
 0x383   : > { %6346 = sbr.rel (%p6767_p9) target bundleno = 917 (0x395), region = 1841  ;;  %s9292_s21 = smov (!%p6767_p9), 0  }
 0x384   : > { %s9296_s28 = smov (!%p6767_p9), 0  }
 0x38a LB: >> { %v3179_v59 = vld [vmem:[%s9290_s3] sm:$0xf]  ;;  %v3181_v60 = vld [vmem:[%s9290_s3 + $0xc] sm:$0xf]  ;;  %v3183_v61 = vld [vmem:[%s9290_s3 + $0x18] sm:$0xf]  ;;  %s9298_s28 = sphi %s9296_s28, %s3173_s28   ;;  %s9294_s21 = sphi %s9292_s21, %s9293_s21   ;;  %s9290_s3 = sphi %s9288_s3, %s3190_s3   ;;  %s9286_s1 = sphi %s11361_s1, %s3191_s1  }
 0x38b   : >> { %3180 = vst [vmem:[%s9286_s1] sm:$0xf] %v3179_v59  ;;  %3182 = vst [vmem:[%s9286_s1 + $0x8] sm:$0xf] %v3181_v60  ;;  %s3185_s23 = sadd.s32 1, %s9294_s21  ;;  %s3173_s28 = sadd.s32 1, %s9298_s28  }
 0x38c   : >> { %3184 = vst [vmem:[%s9286_s1 + $0x10] sm:$0xf] %v3183_v61  ;;  %p3186_p10 = scmp.ge.s32.totalorder %s3185_s23, %s10471_s5  ;;  %p3172_p11 = scmp.ge.s32.totalorder %s3173_s28, %s10471_s5 }
 0x38e   : >> { %s11583_s23 = smov (%p3186_p10, %s3185_s23), 0  ;;  %3175 = sbr.rel (!%p3172_p11) target bundleno = 906 (0x38a), region = 1847 }
 0x38f   : >> { %s6768_s29 = sshll.u32 %s11583_s23, 2  ;;  %s9293_s21 = smov %s11583_s23  }
 0x390   : >> { %s3190_s3 = scalar_lea.vmem %s10475_s9, %s6768_s29   ;;  %s3191_s1 = scalar_lea.vmem %s10478_s26, %s6768_s29 [#allocation15]  }
 0x395 PF: > { %3296 = sbr.rel (!%p9544_p4) target bundleno = 979 (0x3d3), region = 888  ;;  %s3298_s25 = sand.u32 (%p9544_p4), 1, %s8846_s6  }
 0x396   : > { %s6770_s22 = sshll.u32 (%p9544_p4), %s8850_s30, 1  ;;  %s7176_s0 = smul.u32 (%p9544_p4), 24, %s3298_s25 }
 0x397   : > { %s3302_s8 = ssub.s32 (%p9544_p4), 3, %s6770_s22  ;;  %s6901_s21 = sshll.u32 (%p9544_p4), %s8850_s30, 3 }
 0x398   : > { %p3303_p12 = scmp.lt.s32.totalorder (%p9544_p4), %s3302_s8, 2  ;;  %s11362_s14 = sld [smem:[#allocation54_spill]] (%p9544_p4) }
 0x399   : > { %s10505_s9 = scalar_lea.vmem (%p9544_p4), [#allocation16], %s7176_s0  }
 0x39c   : > { %s11585_s8 = smov (!%p3303_p12, %s3302_s8), 2 }
 0x39d   : > { %s3305_s5 = smul.u32 192, %s11585_s8 }
 0x39e   : > { %s10500_s28 = scalar_lea.vmem %s11362_s14, %s6901_s21  }
 0x39f   : > { %p6773_p13 = scmp.eq.s32.totalorder %s3305_s5, 0 }
 0x3a0   : > { %s10508_s26 = sshrl.u32 (!%p6773_p13), %s11585_s8, 1 }
 0x3a1   : > { %3311 = sbr.rel (%p6773_p13) target bundleno = 979 (0x3d3), region = 892  ;;  %p6774_p0 = scmp.le.s32.totalorder (!%p6773_p13), %s10508_s26, 0 }
 0x3a8   : > { %6360 = sbr.rel (%p6774_p0) target bundleno = 957 (0x3bd), region = 1852  ;;  %s11363_s23 = smov (!%p6774_p0), %s10505_s9 }
 0x3a9   : > { %s11364_s29 = smov (!%p6774_p0), %s10500_s28  ;;  %s10517_s25 = smov (!%p6774_p0), 0  }
 0x3aa   : > { %s10519_s22 = smov (!%p6774_p0), 0  }
 0x3af LB: >> { %v3327_v62 = vld [vmem:[%s9306_s29] sm:$0xf]  ;;  %v3329_v63 = vld [vmem:[%s9306_s29 + $0x4] sm:$0xf]  ;;  %v3331_v0 = vld [vmem:[%s9306_s29 + $0xc] sm:$0xf]  ;;  %s9314_s22 = sphi %s10519_s22, %s3321_s22   ;;  %s9310_s25 = sphi %s10517_s25, %s11365_s25   ;;  %s9306_s29 = sphi %s11364_s29, %s3344_s29   ;;  %s9302_s23 = sphi %s11363_s23, %s3345_s23  }
 0x3b0   : >> { %3328 = vst [vmem:[%s9302_s23] sm:$0xf] %v3327_v62  ;;  %3330 = vst [vmem:[%s9302_s23 + $0x4] sm:$0xf] %v3329_v63  ;;  %v3333_v1 = vld [vmem:[%s9306_s29 + $0x10] sm:$0xf]  ;;  %s3339_s0 = sadd.s32 1, %s9310_s25 }
 0x3b1   : >> { %3332 = vst [vmem:[%s9302_s23 + $0x8] sm:$0xf] %v3331_v0  ;;  %v3335_v2 = vld [vmem:[%s9306_s29 + $0x18] sm:$0xf]  ;;  %v3337_v3 = vld [vmem:[%s9306_s29 + $0x1c] sm:$0xf]  ;;  %p3340_p1 = scmp.ge.s32.totalorder %s3339_s0, %s10508_s26 }
 0x3b2   : >> { %3334 = vst [vmem:[%s9302_s23 + $0xc] sm:$0xf] %v3333_v1  ;;  %3336 = vst [vmem:[%s9302_s23 + $0x10] sm:$0xf] %v3335_v2  ;;  %s3321_s22 = sadd.s32 1, %s9314_s22  }
 0x3b3   : >> { %3338 = vst [vmem:[%s9302_s23 + $0x14] sm:$0xf] %v3337_v3  ;;  %s11587_s0 = smov (%p3340_p1, %s3339_s0), 0  ;;  %p3320_p2 = scmp.ge.s32.totalorder %s3321_s22, %s10508_s26 }
 0x3b4   : >> { %s6775_s21 = sshll.u32 %s11587_s0, 3  ;;  %s11365_s25 = smov %s11587_s0 }
 0x3b5   : >> { %s3344_s29 = scalar_lea.vmem %s10500_s28, %s6775_s21   ;;  %s3345_s23 = scalar_lea.vmem %s10505_s9, %s6775_s21 [#allocation16]  }
 0x3b6   : > { %3323 = sbr.rel (!%p3320_p2) target bundleno = 943 (0x3af), region = 1858 }
 0x3bd PF: > { %s10538_s1 = sand.u32 1, %s11585_s8   ;;  %s6902_s3 = sshll.u32 %s10508_s26, 3 }
 0x3be   : > { %s10542_s5 = scalar_lea.vmem %s10500_s28, %s6902_s3   ;;  %s10545_s21 = scalar_lea.vmem %s10505_s9, %s6902_s3 [#allocation16]  }
 0x3bf   : > { %p6780_p3 = scmp.le.s32.totalorder %s10538_s1, 0 }
 0x3c0   : > { %s11366_s22 = smov (!%p6780_p3), %s10545_s21  ;;  %s9320_s0 = smov (!%p6780_p3), %s10542_s5  }
 0x3c1   : > { %6374 = sbr.rel (%p6780_p3) target bundleno = 979 (0x3d3), region = 1863  ;;  %s9324_s23 = smov (!%p6780_p3), 0  }
 0x3c2   : > { %s9328_s29 = smov (!%p6780_p3), 0  }
 0x3c8 LB: >> { %v3362_v4 = vld [vmem:[%s9322_s0] sm:$0xf]  ;;  %v3364_v5 = vld [vmem:[%s9322_s0 + $0xc] sm:$0xf]  ;;  %v3366_v6 = vld [vmem:[%s9322_s0 + $0x18] sm:$0xf]  ;;  %s9330_s29 = sphi %s9328_s29, %s3356_s29   ;;  %s9326_s23 = sphi %s9324_s23, %s9325_s23   ;;  %s9322_s0 = sphi %s9320_s0, %s3373_s0   ;;  %s9318_s22 = sphi %s11366_s22, %s3374_s22  }
 0x3c9   : >> { %3363 = vst [vmem:[%s9318_s22] sm:$0xf] %v3362_v4  ;;  %3365 = vst [vmem:[%s9318_s22 + $0x8] sm:$0xf] %v3364_v5  ;;  %s3368_s8 = sadd.s32 1, %s9326_s23  ;;  %s3356_s29 = sadd.s32 1, %s9330_s29  }
 0x3ca   : >> { %3367 = vst [vmem:[%s9318_s22 + $0x10] sm:$0xf] %v3366_v6  ;;  %p3369_p5 = scmp.ge.s32.totalorder %s3368_s8, %s10538_s1  ;;  %p3355_p7 = scmp.ge.s32.totalorder %s3356_s29, %s10538_s1 }
 0x3cc   : >> { %s11589_s8 = smov (%p3369_p5, %s3368_s8), 0  ;;  %3358 = sbr.rel (!%p3355_p7) target bundleno = 968 (0x3c8), region = 1869 }
 0x3cd   : >> { %s6781_s28 = sshll.u32 %s11589_s8, 2  ;;  %s9325_s23 = smov %s11589_s8  }
 0x3ce   : >> { %s3373_s0 = scalar_lea.vmem %s10542_s5, %s6781_s28   ;;  %s3374_s22 = scalar_lea.vmem %s10545_s21, %s6781_s28 [#allocation16]  }
 0x3d3 PF: > { %3479 = sbr.rel (!%p9544_p4) target bundleno = 1005 (0x3ed), region = 950 }
 0x3da   : > { %s3480_s9 = sand.u32 1, %s8846_s6   ;;  %s6783_s26 = sshll.u32 %s8850_s30, 1 }
 0x3db   : > { %s7177_s25 = smul.u32 24, %s3480_s9  ;;  %s3486_s3 = ssub.s32 3, %s6783_s26 }
 0x3dc   : > { %p3487_p8 = scmp.lt.s32.totalorder %s3486_s3, 2  ;;  %s3481_s0 = scalar_lea.sflag [#allocation18], %s3480_s9 }
 0x3dd   : > { %s3484_s8 = scalar_lea.vmem [#allocation17], %s7177_s25 }
 0x3de   : > { %s11591_s3 = smov (!%p3487_p8, %s3486_s3), 2 }
 0x3df   : > { %s3489_s23 = smul.u32 192, %s11591_s3 }
 0x3e1   : > { %s3491_s22 = ssub.s32 384, %s3489_s23 }
 0x3e2   : > { %3492 = vsyncadd %s3481_s0, %s3491_s22  ;;  %p6784_p9 = scmp.ne.s32.totalorder %s3489_s23, 0  ;;  %s6904_s1 = sshll.u32 %s8850_s30, 7 }
 0x3e3   : > { %s11367_s15 = sld [smem:[#allocation55_spill]]  ;;  %s3502_s28 = sld [smem:[#allocation0]]  }
 0x3e4   : > { %s3510_s10 = sshll.u32 %s3484_s8, 4  ;;  %s9364_s11 = smov 192   ;;  %s3511_s10 = int_to_ptr.vmem [resolvable:$true] %s3510_s10 }
 0x3e5   : > { %3517 = sst [smem:[#allocation24]] %s9364_s11  ;;  %s9365_s26 = smov 128  }
 0x3e6   : > { %3521 = sst [smem:[#allocation24 + $0x2]] %s11591_s3  ;;  %s9366_s12 = smov 64  }
 0x3e7   : > { %3519 = sst [smem:[#allocation24 + $0x1]] %s9365_s26  ;;  %s9367_s22 = smov 4  }
 0x3e8   : > { %3523 = sst [smem:[#allocation24 + $0x3]] %s9366_s12  ;;  %s9368_s13 = smov [#allocation23]  }
 0x3e9   : > { %s3495_s29 = scalar_lea.hbm %s11367_s15, %s6904_s1  ;;  %s6788_s9 = sshll.u32 %s3502_s28, 26 }
 0x3ea   : > { %3525 = sst [smem:[#allocation24 + $0x4]] %s9366_s12  ;;  %s6789_s25 = sadd.s32 134217728, %s6788_s9 }
 0x3eb   : > { %3527 = sst [smem:[#allocation24 + $0x5]] %s9367_s22 }
 0x3ec   : > { %3529 = dma.general (%p6784_p9), %s3495_s29, %s3489_s23, %s3511_s10, %s3481_s0, %s9368_s13, [#allocation24], %s6789_s25, 0  }
 0x3ed PF: > { %3532 = sbr.rel (!%p9544_p4) target bundleno = 1032 (0x408), region = 954 }
 0x3f4   : > { %s3533_s11 = sand.u32 1, %s8850_s30   ;;  %s3535_s3 = sand.u32 1, %s8846_s6  }
 0x3f5   : > { %s7178_s8 = smul.u32 24, %s3535_s3  ;;  %s6791_s1 = sshll.u32 %s8850_s30, 1 }
 0x3f6   : > { %s3539_s5 = ssub.s32 3, %s6791_s1  ;;  %s3534_s28 = scalar_lea.sflag [#allocation20], %s3533_s11 }
 0x3f7   : > { %p3540_p10 = scmp.lt.s32.totalorder %s3539_s5, 2  ;;  %s3537_s26 = scalar_lea.vmem [#allocation19], %s7178_s8 }
 0x3f9   : > { %s11593_s5 = smov (!%p3540_p10, %s3539_s5), 2 }
 0x3fa   : > { %s3542_s12 = smul.u32 192, %s11593_s5 }
 0x3fc   : > { %s3544_s21 = ssub.s32 384, %s3542_s12 }
 0x3fd   : > { %3545 = vsyncadd %s3534_s28, %s3544_s21  ;;  %p6792_p11 = scmp.ne.s32.totalorder %s3542_s12, 0  ;;  %s6905_s10 = sshll.u32 %s8850_s30, 7 }
 0x3fe   : > { %s11368_s16 = sld [smem:[#allocation56_spill]]  ;;  %s3555_s29 = sld [smem:[#allocation0]]  }
 0x3ff   : > { %s3563_s9 = sshll.u32 %s3537_s26, 4  ;;  %s9369_s25 = smov 192   ;;  %s3564_s9 = int_to_ptr.vmem [resolvable:$true] %s3563_s9 }
 0x400   : > { %3570 = sst [smem:[#allocation26]] %s9369_s25  ;;  %s9370_s22 = smov 128  }
 0x401   : > { %3574 = sst [smem:[#allocation26 + $0x2]] %s11593_s5  ;;  %s9371_s3 = smov 64  }
 0x402   : > { %3572 = sst [smem:[#allocation26 + $0x1]] %s9370_s22  ;;  %s9372_s1 = smov 4  }
 0x403   : > { %3576 = sst [smem:[#allocation26 + $0x3]] %s9371_s3  ;;  %s9373_s21 = smov [#allocation25]  }
 0x404   : > { %s3548_s0 = scalar_lea.hbm %s11368_s16, %s6905_s10  ;;  %s6796_s11 = sshll.u32 %s3555_s29, 26 }
 0x405   : > { %3578 = sst [smem:[#allocation26 + $0x4]] %s9371_s3  ;;  %s6797_s8 = sadd.s32 134217728, %s6796_s11 }
 0x406   : > { %3580 = sst [smem:[#allocation26 + $0x5]] %s9372_s1 }
 0x407   : > { %3582 = dma.general (%p6792_p11), %s3548_s0, %s3542_s12, %s3564_s9, %s3534_s28, %s9373_s21, [#allocation26], %s6797_s8, 0  }
 0x408 PF: > { %3585 = sbr.rel (!%p9544_p4) target bundleno = 1059 (0x423), region = 958 }
 0x40f   : > { %s3586_s5 = sand.u32 1, %s8850_s30   ;;  %s3588_s26 = sand.u32 1, %s8846_s6  }
 0x410   : > { %s7179_s10 = smul.u32 24, %s3588_s26  ;;  %s6799_s13 = sshll.u32 %s8850_s30, 1 }
 0x411   : > { %s3592_s23 = ssub.s32 3, %s6799_s13  ;;  %s3587_s22 = scalar_lea.sflag [#allocation20], %s3586_s5 }
 0x412   : > { %p3593_p12 = scmp.lt.s32.totalorder %s3592_s23, 2  ;;  %s3590_s3 = scalar_lea.vmem [#allocation21], %s7179_s10 }
 0x414   : > { %s11595_s23 = smov (!%p3593_p12, %s3592_s23), 2 }
 0x415   : > { %s3595_s29 = smul.u32 192, %s11595_s23 }
 0x417   : > { %s3597_s25 = ssub.s32 384, %s3595_s29 }
 0x418   : > { %3598 = vsyncadd %s3587_s22, %s3597_s25  ;;  %p6800_p13 = scmp.ne.s32.totalorder %s3595_s29, 0  ;;  %s6906_s12 = sshll.u32 %s8850_s30, 7 }
 0x419   : > { %s11369_s17 = sld [smem:[#allocation57_spill]]  ;;  %s3616_s8 = sshll.u32 %s3590_s3, 4  ;;  %s3617_s8 = int_to_ptr.vmem [resolvable:$true] %s3616_s8 }
 0x41a   : > { %s3608_s11 = sld [smem:[#allocation0]]   ;;  %s9374_s1 = smov 192  }
 0x41b   : > { %3623 = sst [smem:[#allocation28]] %s9374_s1  ;;  %s9375_s21 = smov 128  }
 0x41c   : > { %3627 = sst [smem:[#allocation28 + $0x2]] %s11595_s23  ;;  %s9376_s26 = smov 64  }
 0x41d   : > { %3625 = sst [smem:[#allocation28 + $0x1]] %s9375_s21  ;;  %s9377_s13 = smov 4  }
 0x41e   : > { %3629 = sst [smem:[#allocation28 + $0x3]] %s9376_s26  ;;  %s9378_s25 = smov [#allocation27]  }
 0x41f   : > { %s3601_s9 = scalar_lea.hbm %s11369_s17, %s6906_s12  ;;  %3631 = sst [smem:[#allocation28 + $0x4]] %s9376_s26 }
 0x420   : > { %s6804_s5 = sshll.u32 %s3608_s11, 26  ;;  %3633 = sst [smem:[#allocation28 + $0x5]] %s9377_s13 }
 0x421   : > { %s6805_s10 = sadd.s32 134217728, %s6804_s5 }
 0x422   : > { %3635 = dma.general (%p6800_p13), %s3601_s9, %s3595_s29, %s3617_s8, %s3587_s22, %s9378_s25, [#allocation28], %s6805_s10, 0  }
 0x423 PF: > { %3740 = sbr.rel (!%p9544_p4) target bundleno = 1116 (0x45c), region = 986  ;;  %s3742_s23 = sand.u32 (%p9544_p4), 1, %s8846_s6  }
 0x424   : > { %s6807_s3 = sshll.u32 (%p9544_p4), %s8850_s30, 1  ;;  %s7180_s12 = smul.u32 (%p9544_p4), 96, %s3742_s23 }
 0x425   : > { %s3746_s28 = ssub.s32 (%p9544_p4), 3, %s6807_s3  ;;  %s6907_s0 = sshll.u32 (%p9544_p4), %s8850_s30, 4 }
 0x426   : > { %p3747_p0 = scmp.lt.s32.totalorder (%p9544_p4), %s3746_s28, 2  ;;  %s11370_s24 = sld [smem:[#allocation64_spill]] (%p9544_p4) }
 0x427   : > { %s10601_s27 = scalar_lea.vmem (%p9544_p4), [#allocation22], %s7180_s12  }
 0x42a   : > { %s11597_s28 = smov (!%p3747_p0, %s3746_s28), 2 }
 0x42b   : > { %s3749_s29 = smul.u32 768, %s11597_s28 }
 0x42c   : > { %s10596_s21 = scalar_lea.vmem %s11370_s24, %s6907_s0  }
 0x42d   : > { %p6810_p4 = scmp.eq.s32.totalorder %s3749_s29, 0 }
 0x42e   : > { %s10604_s22 = sshrl.u32 (!%p6810_p4), %s11597_s28, 1 }
 0x42f   : > { %3755 = sbr.rel (%p6810_p4) target bundleno = 1116 (0x45c), region = 990  ;;  %p6811_p1 = scmp.le.s32.totalorder (!%p6810_p4), %s10604_s22, 0 }
 0x436   : > { %6388 = sbr.rel (%p6811_p1) target bundleno = 1095 (0x447), region = 1874  ;;  %s11371_s9 = smov (!%p6811_p1), %s10601_s27 }
 0x437   : > { %s11372_s8 = smov (!%p6811_p1), %s10596_s21  ;;  %s10613_s26 = smov (!%p6811_p1), 0  }
 0x438   : > { %s10615_s5 = smov (!%p6811_p1), 0  }
 0x43d LB: >> { %v3849_v7 = vld [vmem:[%s9338_s8] sm:$0xff]  ;;  %v3851_v8 = vld [vmem:[%s9338_s8 + $0x8] sm:$0xff]  ;;  %v3853_v9 = vld [vmem:[%s9338_s8 + $0x18] sm:$0xff]  ;;  %s3873_s10 = sadd.s32 1, %s9342_s26  ;;  %s3843_s5 = sadd.s32 1, %s9346_s5   ;;  %s9346_s5 = sphi %s10615_s5, %s3843_s5   ;;  %s9342_s26 = sphi %s10613_s26, %s11373_s26   ;;  %s9338_s8 = sphi %s11372_s8, %s3878_s8   ;;  %s9334_s9 = sphi %s11371_s9, %s3879_s9  }
 0x43e   : >> { %3850 = vst [vmem:[%s9334_s9] sm:$0xff] %v3849_v7  ;;  %3852 = vst [vmem:[%s9334_s9 + $0x8] sm:$0xff] %v3851_v8  ;;  %v3855_v10 = vld [vmem:[%s9338_s8 + $0x20] sm:$0xff]  ;;  %v3857_v11 = vld [vmem:[%s9338_s8 + $0x30] sm:$0xff]  ;;  %p3874_p2 = scmp.ge.s32.totalorder %s3873_s10, %s10604_s22  ;;  %p3842_p3 = scmp.ge.s32.totalorder %s3843_s5, %s10604_s22 }
 0x43f   : >> { %3854 = vst [vmem:[%s9334_s9 + $0x10] sm:$0xff] %v3853_v9  ;;  %v3859_v12 = vld [vmem:[%s9338_s8 + $0x38] sm:$0xff]  ;;  %3856 = vst [vmem:[%s9334_s9 + $0x18] sm:$0xff] %v3855_v10  ;;  %v3861_v13 = vld [vmem:[%s9338_s8 + $0x48] sm:$0xff] }
 0x440   : >> { %3858 = vst [vmem:[%s9334_s9 + $0x20] sm:$0xff] %v3857_v11  ;;  %3860 = vst [vmem:[%s9334_s9 + $0x28] sm:$0xff] %v3859_v12  ;;  %v3863_v14 = vld [vmem:[%s9338_s8 + $0x50] sm:$0xff]  ;;  %v3865_v15 = vld [vmem:[%s9338_s8 + $0x60] sm:$0xff]  ;;  %s11599_s10 = smov (%p3874_p2, %s3873_s10), 0  ;;  %3845 = sbr.rel (!%p3842_p3) target bundleno = 1085 (0x43d), region = 1880 }
 0x441   : >> { %3862 = vst [vmem:[%s9334_s9 + $0x30] sm:$0xff] %v3861_v13  ;;  %3864 = vst [vmem:[%s9334_s9 + $0x38] sm:$0xff] %v3863_v14  ;;  %v3867_v16 = vld [vmem:[%s9338_s8 + $0x68] sm:$0xff]  ;;  %v3869_v17 = vld [vmem:[%s9338_s8 + $0x78] sm:$0xff]  ;;  %s6812_s13 = sshll.u32 %s11599_s10, 4  ;;  %s11373_s26 = smov %s11599_s10 }
 0x442   : >> { %3866 = vst [vmem:[%s9334_s9 + $0x40] sm:$0xff] %v3865_v15  ;;  %v3871_v18 = vld [vmem:[%s9338_s8 + $0x80] sm:$0xff]  ;;  %3868 = vst [vmem:[%s9334_s9 + $0x48] sm:$0xff] %v3867_v16  ;;  %s3878_s8 = scalar_lea.vmem %s10596_s21, %s6812_s13  }
 0x443   : >> { %3870 = vst [vmem:[%s9334_s9 + $0x50] sm:$0xff] %v3869_v17  ;;  %3872 = vst [vmem:[%s9334_s9 + $0x58] sm:$0xff] %v3871_v18  ;;  %s3879_s9 = scalar_lea.vmem %s10601_s27, %s6812_s13 [#allocation22]  }
 0x447 PF: > { %s10637_s25 = sand.u32 1, %s11597_s28   ;;  %s6908_s23 = sshll.u32 %s10604_s22, 4 }
 0x448   : > { %s10641_s3 = scalar_lea.vmem %s10596_s21, %s6908_s23   ;;  %s10644_s12 = scalar_lea.vmem %s10601_s27, %s6908_s23 [#allocation22]  }
 0x449   : > { %p6817_p5 = scmp.le.s32.totalorder %s10637_s25, 0 }
 0x44a   : > { %s11374_s0 = smov (!%p6817_p5), %s10644_s12  ;;  %s11375_s11 = smov (!%p6817_p5), %s10641_s3 }
 0x44b   : > { %6402 = sbr.rel (%p6817_p5) target bundleno = 1116 (0x45c), region = 1885  ;;  %s10653_s1 = smov (!%p6817_p5), 0  }
 0x44c   : > { %s10655_s29 = smov (!%p6817_p5), 0  }
 0x452 LB: >> { %v3896_v19 = vld [vmem:[%s9354_s11] sm:$0xff]  ;;  %v3898_v20 = vld [vmem:[%s9354_s11 + $0x18] sm:$0xff]  ;;  %v3900_v21 = vld [vmem:[%s9354_s11 + $0x30] sm:$0xff]  ;;  %s3908_s28 = sadd.s32 1, %s9358_s1  ;;  %s3890_s29 = sadd.s32 1, %s9362_s29   ;;  %s9362_s29 = sphi %s10655_s29, %s3890_s29   ;;  %s9358_s1 = sphi %s10653_s1, %s11376_s1   ;;  %s9354_s11 = sphi %s11375_s11, %s3913_s11   ;;  %s9350_s0 = sphi %s11374_s0, %s3914_s0  }
 0x453   : >> { %3897 = vst [vmem:[%s9350_s0] sm:$0xff] %v3896_v19  ;;  %3899 = vst [vmem:[%s9350_s0 + $0x10] sm:$0xff] %v3898_v20  ;;  %v3902_v22 = vld [vmem:[%s9354_s11 + $0x48] sm:$0xff]  ;;  %v3904_v23 = vld [vmem:[%s9354_s11 + $0x60] sm:$0xff]  ;;  %p3909_p7 = scmp.ge.s32.totalorder %s3908_s28, %s10637_s25  ;;  %p3889_p8 = scmp.ge.s32.totalorder %s3890_s29, %s10637_s25 }
 0x454   : >> { %3901 = vst [vmem:[%s9350_s0 + $0x20] sm:$0xff] %v3900_v21  ;;  %v3906_v24 = vld [vmem:[%s9354_s11 + $0x78] sm:$0xff]  ;;  %3903 = vst [vmem:[%s9350_s0 + $0x30] sm:$0xff] %v3902_v22 }
 0x455   : >> { %3905 = vst [vmem:[%s9350_s0 + $0x40] sm:$0xff] %v3904_v23  ;;  %3907 = vst [vmem:[%s9350_s0 + $0x50] sm:$0xff] %v3906_v24  ;;  %s11601_s28 = smov (%p3909_p7, %s3908_s28), 0  ;;  %3892 = sbr.rel (!%p3889_p8) target bundleno = 1106 (0x452), region = 1891 }
 0x456   : >> { %s6818_s21 = sshll.u32 %s11601_s28, 3  ;;  %s11376_s1 = smov %s11601_s28 }
 0x457   : >> { %s3913_s11 = scalar_lea.vmem %s10641_s3, %s6818_s21   ;;  %s3914_s0 = scalar_lea.vmem %s10644_s12, %s6818_s21 [#allocation22]  }
 0x45c PF: > { %p6820_p9 = scmp.ge.s32.totalorder %s8850_s30, 1  ;;  %p3919_p10 = scmp.lt.s32.totalorder %s8850_s30, 3 }
 0x45e   : > { %p3920_p11 = pnand %p6820_p9, %p3919_p10 }
 0x460   : > { %3923 = sbr.rel (%p3920_p11) target bundleno = 1505 (0x5e1), region = 1038 }
 0x467   : > { %s10676_s27 = sand.u32 1, %s8842_s2  }
 0x468   : > { %11377 = sst [smem:[#allocation36_spill]] %s10676_s27  ;;  %s10679_s22 = smul.u32 24, %s10676_s27 }
 0x469   : > { %s4031_s28 = scalar_lea.sflag [#allocation18], %s10676_s27 }
 0x46a   : > { %11378 = sst [smem:[#allocation37_spill]] %s10679_s22  ;;  %s10682_s30 = scalar_lea.vmem [#allocation2], %s10679_s22 }
 0x46b   : > { %s10685_s9 = scalar_lea.vmem [#allocation3], %s10679_s22  ;;  %s10688_s8 = scalar_lea.vmem [#allocation4], %s10679_s22 }
 0x46c   : > { %s10691_s26 = scalar_lea.vmem [#allocation5], %s10679_s22  ;;  %s10694_s5 = scalar_lea.vmem [#allocation6], %s10679_s22 }
 0x46d   : > { %s10697_s10 = scalar_lea.vmem [#allocation7], %s10679_s22  ;;  %s10700_s13 = scalar_lea.vmem [#allocation8], %s10679_s22 }
 0x46e   : > { %11379 = sst [smem:[#allocation38_spill]] %s10697_s10  ;;  %s10703_s25 = scalar_lea.vmem [#allocation9], %s10679_s22 }
 0x46f   : > { %s10706_s23 = scalar_lea.vmem [#allocation10], %s10679_s22  ;;  %s10709_s3 = scalar_lea.vmem [#allocation11], %s10679_s22 }
 0x470   : > { %s10712_s12 = scalar_lea.vmem [#allocation12], %s10679_s22  ;;  %s10715_s0 = scalar_lea.vmem [#allocation13], %s10679_s22 }
 0x471   : > { %11380 = sst [smem:[#allocation39_spill]] %s10715_s0  ;;  %s10718_s11 = scalar_lea.vmem [#allocation14], %s10679_s22 }
 0x472   : > { %s10721_s1 = scalar_lea.vmem [#allocation15], %s10679_s22  ;;  %s10724_s29 = scalar_lea.vmem [#allocation16], %s10679_s22 }
 0x473   : > { %s10728_s21 = scalar_lea.vmem [#allocation17], %s10679_s22 }
 0x474   : > { %8829 = dma.done.wait (%p9549_p6), %s4031_s28, 384  }
 0x475   : > { %8831 = vsyncadd (%p9549_p6), %s4031_s28, 4294966912  ;;  %s4039_s14 = sand.u32 1, %s9529_s7   ;;  %s10736_s16 = scalar_lea.vmem [#allocation19], %s10679_s22 }
 0x476   : > { %s4040_s15 = scalar_lea.sflag [#allocation20], %s4039_s14 }
 0x477   : > { %8833 = dma.done.wait (%p9549_p6), %s4040_s15, 768  }
 0x478   : > { %8835 = vsyncadd (%p9549_p6), %s4040_s15, 4294966528  ;;  %s6821_s17 = sshll.u32 %s9529_s7, 1  ;;  %s6834_s24 = sshll.u32 %s9529_s7, 4  ;;  %v4437_v25 = vlaneseq  ;;  %v9379_v40 = vmov 0.0   ;;  %v10831_v51 = vld [vmem:[%s10700_s13] sm:$0xff]   ;;  %v10845_v56 = vld [vmem:[%s10700_s13 + $0x8] sm:$0xff]  }
 0x479   : > { %p4348_p12 = scmp.lt.s32.totalorder %s6821_s17, 2  ;;  %v4440_v26 = vstv %s6834_s24  ;;  %s11381_s18 = sld [smem:[#allocation58_spill]]  ;;  %v6912_v55 = vunpack.c.l.bf16 %v10831_v51  ;;  %v10848_v57 = vld [vmem:[%s10700_s13 + $0x10] sm:$0xff]   ;;  %v6913_v61 = vunpack.c.h.bf16 %v10831_v51  ;;  %v6916_v62 = vunpack.c.l.bf16 %v10845_v56  ;;  %v6923_v63 = vld [vmem:[%s10682_s30] sm:$0xff]   ;;  %v7128_v0 = vld [vmem:[%s10682_s30 + $0x8] sm:$0xff]  }
 0x47a   : > { %v10744_v27 = vshrl.u32 %v4437_v25, 7  ;;  %s11382_s19 = sld [smem:[#allocation59_spill]]  ;;  %s11383_s20 = sld [smem:[#allocation60_spill]]  ;;  %v6917_v4 = vunpack.c.h.bf16 %v10845_v56  ;;  %v6920_v5 = vunpack.c.l.bf16 %v10848_v57  ;;  %v7129_v6 = vld [vmem:[%s10682_s30 + $0x10] sm:$0xff]   ;;  %v6921_v10 = vunpack.c.h.bf16 %v10848_v57  ;;  %v6935_v12 = vld [vmem:[%s10718_s11] sm:$0xff]   ;;  %v7130_v18 = vld [vmem:[%s10718_s11 + $0x8] sm:$0xff]  }
 0x47b   : > { %s11603_s17 = smov (!%p4348_p12, %s6821_s17), 2  ;;  %s11385_s22 = sld [smem:[#allocation62_spill]]  ;;  %v6924_v11 = vunpack.c.l.bf16 %v6923_v63  ;;  %v6925_v16 = vunpack.c.h.bf16 %v6923_v63  ;;  %v6928_v17 = vunpack.c.l.bf16 %v7128_v0  ;;  %v6929_v22 = vunpack.c.h.bf16 %v7128_v0  ;;  %v7131_v24 = vld [vmem:[%s10718_s11 + $0x10] sm:$0xff]  }
 0x47c   : > { %v4439_v28 = vadd.s32 8, %v10744_v27  ;;  %v10748_v29 = vadd.s32 %v4440_v26, %v10744_v27  ;;  %s6822_s14 = sshll.u32 %s11603_s17, 3  ;;  %s11386_s17 = sld [smem:[#allocation63_spill]]  ;;  %v6932_v23 = vunpack.c.l.bf16 %v7129_v6 }
 0x47d   : > { %s11474_s30 = sld [smem:[#allocation36_spill]] }
 0x47e   : > { %v10760_v30 = vadd.s32 %v4440_v26, %v4439_v28  ;;  %vm11256_vm0 = vcmp.lt.s32.totalorder %v10748_v29, 20  ;;  %v11408_v28 = vmov 0 }
 0x47f   : > { %s10753_s15 = scalar_lea.vmem %s11381_s18, %s6822_s14  ;;  %s11384_s18 = sld [smem:[#allocation61_spill]] }
 0x480   : > { %s10758_s24 = scalar_lea.vmem %s11382_s19, %s6822_s14  ;;  %s10766_s27 = scalar_lea.vmem %s11383_s20, %s6822_s14  ;;  %v4532_v31 = vld [vmem:[%s10753_s15] sm:$0xff]  ;;  %v4533_v32 = vld [vmem:[%s10753_s15 + $0x8] sm:$0xff]  ;;  %vm11255_vm1 = vcmp.lt.s32.totalorder %v10760_v30, 20 }
 0x481   : > { %v4644_v33 = vld [vmem:[%s10758_s24] sm:$0xff]  ;;  %s10779_s10 = scalar_lea.vmem %s11385_s22, %s6822_s14  ;;  %vm4540_vm2 = vcmp.gt.f32.partialorder %v4532_v31, 0.0  ;;  %vm4541_vm3 = vcmp.gt.f32.partialorder %v4533_v32, 0.0  ;;  %v4645_v34 = vld [vmem:[%s10758_s24 + $0x8] sm:$0xff]  ;;  %v6933_v31 = vunpack.c.h.bf16 %v7129_v6  ;;  %v6936_v32 = vunpack.c.l.bf16 %v6935_v12  ;;  %s11471_s19 = sld [smem:[#allocation37_spill]] }
 0x482   : > { %s10784_s20 = scalar_lea.vmem %s11386_s17, %s6822_s14  ;;  %vm4653_vm4 = vcmp.gt.f32.partialorder %v4644_v33, 0.0  ;;  %v4757_v35 = vld [vmem:[%s10766_s27] sm:$0xff]  ;;  %vm10791_vm5 = vmand %vm4540_vm2, %vm11256_vm0  ;;  %vm4654_vm6 = vcmp.gt.f32.partialorder %v4645_v34, 0.0  ;;  %v4758_v37 = vld [vmem:[%s10766_s27 + $0x8] sm:$0xff]  ;;  %v11410_v34 = vmov 0 }
 0x483   : > { %vm10799_vm7 = vmand %vm4541_vm3, %vm11255_vm1  ;;  %v6835_v41 = vsel %vm10791_vm5, 1.0, %v9379_v40  ;;  %vm4766_vm8 = vcmp.gt.f32.partialorder %v4757_v35, 0.0  ;;  %v4983_v43 = vld [vmem:[%s10779_s10] sm:$0xff]  ;;  %vm4767_vm10 = vcmp.gt.f32.partialorder %v4758_v37, 0.0  ;;  %v4984_v46 = vld [vmem:[%s10779_s10 + $0x8] sm:$0xff]  ;;  %v6937_v37 = vunpack.c.h.bf16 %v6935_v12 }
 0x484   : > { %v6836_v44 = vsel %vm10799_vm7, 1.0, %v9379_v40  ;;  %vm10813_vm9 = vmand %vm4653_vm4, %vm11256_vm0  ;;  %v5096_v47 = vld [vmem:[%s10784_s20] sm:$0xff]  ;;  %vm4992_vm14 = vcmp.gt.f32.partialorder %v4983_v43, 0.0  ;;  %vm4993_vm15 = vcmp.gt.f32.partialorder %v4984_v46, 0.0  ;;  %v5097_v50 = vld [vmem:[%s10784_s20 + $0x8] sm:$0xff]  ;;  %v6941_v43 = vunpack.c.h.bf16 %v7130_v18 }
 0x485   : > { %s10771_s2 = scalar_lea.vmem %s11384_s18, %s6822_s14  ;;  %vm10822_vm13 = vmand %vm4654_vm6, %vm11255_vm1  ;;  %v6839_v49 = vsel %vm10813_vm9, 1.0, %v9379_v40  ;;  %vm5106_vm4 = vcmp.gt.f32.partialorder %v5097_v50, 0.0  ;;  %v4482_v50 = vsub.f32 %v6925_v16, %v6913_v61  ;;  %v4486_v63 = vsub.f32 %v6933_v31, %v6921_v10  ;;  %s11466_s18 = sld [smem:[#allocation38_spill]]  ;;  %v8298_v54 = vld [vmem:[%s10784_s20] sm:$0xff] }
 0x486   : > { %v4870_v38 = vld [vmem:[%s10771_s2] sm:$0xff]  ;;  %v4871_v42 = vld [vmem:[%s10771_s2 + $0x8] sm:$0xff]  ;;  %v6840_v52 = vsel %vm10822_vm13, 1.0, %v9379_v40  ;;  %v4669_v53 = vadd.f32 %v6839_v49, %v6835_v41  ;;  %vm10839_vm3 = vmand %vm4766_vm8, %vm11256_vm0  ;;  %v4481_v49 = vsub.f32 %v6924_v11, %v6912_v55 }
 0x487   : > { %vm4879_vm11 = vcmp.gt.f32.partialorder %v4870_v38, 0.0  ;;  %vm4880_vm12 = vcmp.gt.f32.partialorder %v4871_v42, 0.0  ;;  %v4670_v58 = vadd.f32 %v6840_v52, %v6836_v44  ;;  %vm10853_vm2 = vmand %vm4767_vm10, %vm11255_vm1  ;;  %v6843_v60 = vsel %vm10839_vm3, 1.0, %v9379_v40  ;;  %s4052_s22 = scalar_lea.vmem [#allocation21], %s11471_s19  ;;  %v8295_v39 = vld [vmem:[%s10771_s2 + $0x8] sm:$0xff] }
 0x488   : > { %v6844_v1 = vsel %vm10853_vm2, 1.0, %v9379_v40  ;;  %v4782_v2 = vadd.f32 %v6843_v60, %v4669_v53  ;;  %vm10870_vm8 = vmand %vm4879_vm11, %vm11256_vm0  ;;  %v6940_v38 = vunpack.c.l.bf16 %v7130_v18  ;;  %v6944_v44 = vunpack.c.l.bf16 %v7131_v24 }
 0x489   : > { %v4783_v7 = vadd.f32 %v6844_v1, %v4670_v58  ;;  %vm10880_vm10 = vmand %vm4880_vm12, %vm11255_vm1  ;;  %v6847_v9 = vsel %vm10870_vm8, 1.0, %v9379_v40  ;;  %v4483_v53 = vsub.f32 %v6928_v17, %v6916_v62  ;;  %v4484_v58 = vsub.f32 %v6929_v22, %v6917_v4 }
 0x48a   : > { %v6848_v13 = vsel %vm10880_vm10, 1.0, %v9379_v40  ;;  %v4895_v14 = vadd.f32 %v6847_v9, %v4782_v2  ;;  %vm10895_vm11 = vmand %vm4992_vm14, %vm11256_vm0  ;;  %vm11407_vm14 = vcmp.gt.f32.partialorder %v5096_v47, 0.0  ;;  %v6945_v47 = vunpack.c.h.bf16 %v7131_v24 }
 0x48b   : > { %v4896_v19 = vadd.f32 %v6848_v13, %v4783_v7  ;;  %vm10903_vm12 = vmand %vm4993_vm15, %vm11255_vm1  ;;  %v6851_v21 = vsel %vm10895_vm11, 1.0, %v9379_v40  ;;  %v4487_v0 = vand.u32 2147483647, %v4481_v49  ;;  %v4488_v1 = vand.u32 2147483647, %v4482_v50  ;;  %v7134_v49 = vld [vmem:[%s10685_s9 + $0x8] sm:$0xff]  }
 0x48c   : > { %v6852_v25 = vsel %vm10903_vm12, 1.0, %v9379_v40  ;;  %v5008_v26 = vadd.f32 %v6851_v21, %v4895_v14  ;;  %vm10917_vm6 = vmand %vm11407_vm14, %vm11256_vm0  ;;  %v4489_v6 = vand.u32 2147483647, %v4483_v53  ;;  %v4490_v7 = vand.u32 2147483647, %v4484_v58  ;;  %v7135_v50 = vld [vmem:[%s10685_s9 + $0x10] sm:$0xff]  }
 0x48d   : > { %v11409_v28 = vsel %vm10917_vm6, 4294967295, %v11408_v28  ;;  %v5009_v33 = vadd.f32 %v6852_v25, %v4896_v19  ;;  %vm10924_vm15 = vmand %vm5106_vm4, %vm11255_vm1  ;;  %v6855_v35 = vsel %vm10917_vm6, 1.0, %v9379_v40  ;;  %vm11412_vm4 = vcmask 261120  }
 0x48e   : > { %v11411_v34 = vsel %vm10924_vm15, 4294967295, %v11410_v34  ;;  %v6856_v41 = vsel %vm10924_vm15, 1.0, %v9379_v40  ;;  %v5121_v42 = vadd.f32 %v6855_v35, %v5008_v26  ;;  %v4485_v40 = vsub.f32 %v6932_v23, %v6920_v5  ;;  %vm11413_vm14 = vmmov %vm11412_vm4  ;;  %v10966_v35 = vld [vmem:[%s10703_s25 + $0x8] sm:$0xff]  }
 0x48f   : > { %v5122_v46 = vadd.f32 %v6856_v41, %v5009_v33  ;;  %v4492_v11 = vand.u32 2147483647, %v4486_v63  ;;  %v4494_v12 = vsel %vm11412_vm4, %v4487_v0, 0.0  ;;  %vm11414_vm1 = vmmov %vm11412_vm4  ;;  %v4504_v14 = vsub.f32 %v6936_v32, %v6912_v55  ;;  %v6947_v32 = vld [vmem:[%s10703_s25] sm:$0xff]   ;;  %v7133_v41 = vld [vmem:[%s10703_s25 + $0x10] sm:$0xff]  }
 0x490   : > { %v5147_v52 = vsel %vm11412_vm4, %v5121_v42, 0.0  ;;  %v4491_v9 = vand.u32 2147483647, %v4485_v40  ;;  %v4499_v13 = vsel %vm11414_vm1, %v4488_v1, 0.0  ;;  %vm11415_vm0 = vmmov %vm11414_vm1  ;;  %v4505_v19 = vsub.f32 %v6937_v37, %v6913_v61  ;;  %v6959_v42 = vld [vmem:[%s10685_s9] sm:$0xff]   ;;  %s7182_s9 = smul.u32 96, %s11474_s30 }
 0x491   : > { %v5148_v60 = vsel %vm11413_vm14, %v5122_v46, 0.0  ;;  %v4495_v16 = vsel %vm11415_vm0, %v4489_v6, 0.0  ;;  %vm11416_vm14 = vmmov %vm11415_vm0  ;;  %v4506_v24 = vsub.f32 %v6940_v38, %v6916_v62  ;;  %v4507_v55 = vsub.f32 %v6941_v43, %v6917_v4  ;;  %v7136_v6 = vld [vmem:[%s10721_s1 + $0x8] sm:$0xff]  }
 0x492   : > { %v5149_v2 = vadd.f32 %v5148_v60, %v5147_v52  ;;  %v4497_v17 = vsel %vm11416_vm14, %v4491_v9, 0.0  ;;  %vm11417_vm15 = vmmov %vm11415_vm0  ;;  %v4496_v21 = vadd.f32 %v4495_v16, %v4494_v12  ;;  %v4508_v25 = vsub.f32 %v6944_v44, %v6920_v5  ;;  %v6971_v60 = vld [vmem:[%s10721_s1] sm:$0xff]  }
 0x493   : > { %v4500_v18 = vsel %vm11417_vm15, %v4490_v7, 0.0  ;;  %vm11418_vm4 = vmmov %vm11415_vm0  ;;  %v4509_v26 = vsub.f32 %v6945_v47, %v6921_v10  ;;  %v4510_v31 = vand.u32 2147483647, %v4504_v14  ;;  %v4511_v61 = vand.u32 2147483647, %v4505_v19 }
 0x494   : > { %5150 = vadd.xlane.f32.xlu1 %v5149_v2  ;;  %v4501_v22 = vadd.f32 %v4500_v18, %v4499_v13  ;;  %v4502_v23 = vsel %vm11418_vm4, %v4492_v11, 0.0  ;;  %v10963_v51 = vadd.f32 %v4497_v17, %v4496_v21  ;;  %v4512_v33 = vand.u32 2147483647, %v4506_v24  ;;  %vm11419_vm1 = vmmov %vm11415_vm0  ;;  %v7137_v13 = vld [vmem:[%s10721_s1 + $0x10] sm:$0xff]  }
 0x495   : > { %v4513_v56 = vand.u32 2147483647, %v4507_v55  ;;  %v4514_v4 = vand.u32 2147483647, %v4508_v25  ;;  %v4515_v37 = vand.u32 2147483647, %v4509_v26  ;;  %vm11420_vm15 = vmmov %vm11415_vm0  ;;  %v6948_v38 = vunpack.c.l.bf16 %v6947_v32 }
 0x496   : > { %v10968_v62 = vadd.f32 %v4502_v23, %v4501_v22  ;;  %v4516_v57 = vsel %vm11415_vm0, %v4510_v31, 0.0  ;;  %v4517_v5 = vsel %vm11419_vm1, %v4512_v33, 0.0  ;;  %v4521_v10 = vsel %vm11420_vm15, %v4511_v61, 0.0  ;;  %vm11421_vm14 = vmmov %vm11415_vm0 }
 0x497   : > { %v4518_v43 = vadd.f32 %v4517_v5, %v4516_v57  ;;  %v4519_v44 = vsel %vm11421_vm14, %v4514_v4, 0.0  ;;  %vm11422_vm4 = vmmov %vm11415_vm0  ;;  %v6949_v53 = vunpack.c.h.bf16 %v6947_v32  ;;  %v6952_v58 = vunpack.c.l.bf16 %v10966_v35 }
 0x498   : > { %v4522_v46 = vsel %vm11422_vm4, %v4513_v56, 0.0  ;;  %vm11423_vm6 = vmmov %vm11415_vm0  ;;  %v6953_v40 = vunpack.c.h.bf16 %v10966_v35  ;;  %v6956_v0 = vunpack.c.l.bf16 %v7133_v41  ;;  %v6960_v1 = vunpack.c.l.bf16 %v6959_v42 }
 0x499   : > { %v4524_v47 = vsel %vm11423_vm6, %v4515_v37, 0.0  ;;  %v4523_v52 = vadd.f32 %v4522_v46, %v4521_v10  ;;  %v4520_v63 = vadd.f32 %v4519_v44, %v4518_v43  ;;  %v6961_v2 = vunpack.c.h.bf16 %v6959_v42  ;;  %vm11424_vm6 = vmmov %vm11415_vm0 }
 0x49a   : > { %v6964_v9 = vunpack.c.l.bf16 %v7134_v49  ;;  %v6965_v11 = vunpack.c.h.bf16 %v7134_v49  ;;  %v6968_v12 = vunpack.c.l.bf16 %v7135_v50  ;;  %v6957_v14 = vunpack.c.h.bf16 %v7133_v41  ;;  %vm11426_vm15 = vmmov %vm11415_vm0 }
 0x49b   : > { %v4525_v7 = vadd.f32 %v4524_v47, %v4523_v52  ;;  %v6969_v16 = vunpack.c.h.bf16 %v7135_v50  ;;  %v6972_v17 = vunpack.c.l.bf16 %v6971_v60  ;;  %v4526_v18 = vmin.f32 %v10963_v51, %v4520_v63  ;;  %vm11427_vm14 = vmmov %vm11415_vm0 }
 0x49c   : > { %v6973_v21 = vunpack.c.h.bf16 %v6971_v60  ;;  %v6976_v22 = vunpack.c.l.bf16 %v7136_v6  ;;  %v6977_v23 = vunpack.c.h.bf16 %v7136_v6  ;;  %v6980_v24 = vunpack.c.l.bf16 %v7137_v13  ;;  %vm11428_vm4 = vmmov %vm11415_vm0 }
 0x49d   : > { %v4527_v19 = vmin.f32 %v10968_v62, %v4525_v7  ;;  %v4594_v55 = vsub.f32 %v6960_v1, %v6948_v38  ;;  %v4595_v25 = vsub.f32 %v6961_v2, %v6949_v53  ;;  %v6981_v26 = vunpack.c.h.bf16 %v7137_v13  ;;  %v7138_v13 = vld [vmem:[%s10706_s23 + $0x8] sm:$0xff]  }
 0x49e   : > { %v4596_v31 = vsub.f32 %v6964_v9, %v6952_v58  ;;  %v4597_v32 = vsub.f32 %v6965_v11, %v6953_v40  ;;  %v4598_v61 = vsub.f32 %v6968_v12, %v6956_v0  ;;  %v4599_v33 = vsub.f32 %v6969_v16, %v6957_v14 }
 0x49f   : > { %v4600_v35 = vand.u32 2147483647, %v4594_v55  ;;  %v4601_v56 = vand.u32 2147483647, %v4595_v25  ;;  %v4616_v4 = vsub.f32 %v6972_v17, %v6948_v38  ;;  %v4617_v5 = vsub.f32 %v6973_v21, %v6949_v53  ;;  %v10997_v53 = vld [vmem:[%s10706_s23] sm:$0xff]   ;;  %v7140_v25 = vld [vmem:[%s10688_s8 + $0x8] sm:$0xff]  }
 0x4a0   : > { %v4602_v37 = vand.u32 2147483647, %v4596_v31  ;;  %v4603_v57 = vand.u32 2147483647, %v4597_v32  ;;  %v4604_v51 = vand.u32 2147483647, %v4598_v61  ;;  %v4618_v42 = vsub.f32 %v6976_v22, %v6952_v58 }
 0x4a1   : > { %v4605_v62 = vand.u32 2147483647, %v4599_v33  ;;  %v4606_v10 = vsel %vm11424_vm6, %v4600_v35, 0.0  ;;  %v4611_v41 = vsel %vm11415_vm0, %v4601_v56, 0.0  ;;  %vm11425_vm1 = vcmp.lt.s32.totalorder %v10748_v29, 20  ;;  %v6995_v21 = vld [vmem:[%s10688_s8] sm:$0xff]  }
 0x4a2   : > { %v10991_v43 = vsel %vm11425_vm1, %v4526_v18, 0.0  ;;  %v4607_v44 = vsel %vm11426_vm15, %v4602_v37, 0.0  ;;  %v4612_v46 = vsel %vm11427_vm14, %v4603_v57, 0.0  ;;  %v4619_v38 = vsub.f32 %v6977_v23, %v6953_v40  ;;  %vm11430_vm1 = vmmov %vm11415_vm0  ;;  %v7007_v35 = vld [vmem:[%s10724_s29] sm:$0xff]  }
 0x4a3   : > { %v4608_v47 = vadd.f32 %v4607_v44, %v4606_v10  ;;  %v4609_v49 = vsel %vm11428_vm4, %v4604_v51, 0.0  ;;  %v4613_v50 = vadd.f32 %v4612_v46, %v4611_v41  ;;  %v4620_v52 = vsub.f32 %v6980_v24, %v6956_v0  ;;  %vm11431_vm15 = vmmov %vm11415_vm0  ;;  %v7142_v51 = vld [vmem:[%s10724_s29 + $0x8] sm:$0xff]  }
 0x4a4   : > { %v4621_v60 = vsub.f32 %v6981_v26, %v6957_v14  ;;  %v4622_v63 = vand.u32 2147483647, %v4616_v4  ;;  %v4623_v58 = vand.u32 2147483647, %v4617_v5  ;;  %v4624_v1 = vand.u32 2147483647, %v4618_v42  ;;  %vm11432_vm14 = vmmov %vm11415_vm0 }
 0x4a5   : > { %vm11429_vm6 = vcmp.lt.s32.totalorder %v10760_v30, 20  ;;  %v4614_v40 = vsel %vm11415_vm0, %v4605_v62, 0.0  ;;  %v4625_v6 = vand.u32 2147483647, %v4619_v38  ;;  %v4626_v7 = vand.u32 2147483647, %v4620_v52  ;;  %vm11433_vm4 = vmmov %vm11415_vm0 }
 0x4a6   : > { %v11001_v2 = vsel %vm11429_vm6, %v4527_v19, 0.0  ;;  %v4627_v9 = vand.u32 2147483647, %v4621_v60  ;;  %v4628_v0 = vsel %vm11430_vm1, %v4622_v63, 0.0  ;;  %v4629_v11 = vsel %vm11431_vm15, %v4624_v1, 0.0  ;;  %vm11434_vm6 = vmmov %vm11415_vm0  ;;  %v7139_v19 = vld [vmem:[%s10706_s23 + $0x10] sm:$0xff]  }
 0x4a7   : > { %v4633_v12 = vsel %vm11432_vm14, %v4623_v58, 0.0  ;;  %v4610_v14 = vadd.f32 %v4609_v49, %v4608_v47  ;;  %v4630_v16 = vadd.f32 %v4629_v11, %v4628_v0  ;;  %v4631_v17 = vsel %vm11433_vm4, %v4626_v7, 0.0  ;;  %v7141_v26 = vld [vmem:[%s10688_s8 + $0x10] sm:$0xff]   ;;  %vm11437_vm14 = vmmov %vm11415_vm0  ;;  %s11130_s8 = scalar_lea.vmem [#allocation22], %s7182_s9  ;;  %s11495_s23 = sld [smem:[#allocation65_spill]] }
 0x4a8   : > { %v4634_v18 = vsel %vm11434_vm6, %v4625_v6, 0.0  ;;  %v4615_v22 = vadd.f32 %v4614_v40, %v4613_v50  ;;  %v4636_v24 = vsel %vm11415_vm0, %v4627_v9, 0.0  ;;  %v6984_v55 = vunpack.c.l.bf16 %v10997_v53  ;;  %v7143_v42 = vld [vmem:[%s10724_s29 + $0x10] sm:$0xff]   ;;  %vm11438_vm4 = vmmov %vm11415_vm0 }
 0x4a9   : > { %v4635_v23 = vadd.f32 %v4634_v18, %v4633_v12  ;;  %v4632_v31 = vadd.f32 %v4631_v17, %v4630_v16  ;;  %v6985_v32 = vunpack.c.h.bf16 %v10997_v53  ;;  %v6988_v61 = vunpack.c.l.bf16 %v7138_v13  ;;  %vm11439_vm6 = vmmov %vm11415_vm0 }
 0x4aa   : > { %v6989_v33 = vunpack.c.h.bf16 %v7138_v13  ;;  %v6992_v4 = vunpack.c.l.bf16 %v7139_v19  ;;  %v6996_v37 = vunpack.c.l.bf16 %v6995_v21  ;;  %v6997_v57 = vunpack.c.h.bf16 %v6995_v21 }
 0x4ab   : > { %v4637_v56 = vadd.f32 %v4636_v24, %v4635_v23  ;;  %v4638_v5 = vmin.f32 %v4610_v14, %v4632_v31  ;;  %v7000_v62 = vunpack.c.l.bf16 %v7140_v25  ;;  %v7001_v10 = vunpack.c.h.bf16 %v7140_v25 }
 0x4ac   : > { %v7004_v41 = vunpack.c.l.bf16 %v7141_v26  ;;  %v6993_v46 = vunpack.c.h.bf16 %v7139_v19  ;;  %v7005_v38 = vunpack.c.h.bf16 %v7141_v26  ;;  %v7008_v47 = vunpack.c.l.bf16 %v7007_v35 }
 0x4ad   : > { %v4639_v44 = vmin.f32 %v4615_v22, %v4637_v56  ;;  %vm11435_vm1 = vcmp.lt.s32.totalorder %v10748_v29, 20  ;;  %v7009_v50 = vunpack.c.h.bf16 %v7007_v35  ;;  %v7012_v52 = vunpack.c.l.bf16 %v7142_v51 }
 0x4ae   : > { %v4640_v49 = vsel %vm11435_vm1, %v4638_v5, 0.0  ;;  %v7013_v53 = vunpack.c.h.bf16 %v7142_v51  ;;  %v7016_v60 = vunpack.c.l.bf16 %v7143_v42  ;;  %v7017_v63 = vunpack.c.h.bf16 %v7143_v42  ;;  %vm11440_vm1 = vmmov %vm11415_vm0 }
 0x4af   : > { %v4707_v58 = vsub.f32 %v6996_v37, %v6984_v55  ;;  %v4708_v1 = vsub.f32 %v6997_v57, %v6985_v32  ;;  %vm11436_vm15 = vcmp.lt.s32.totalorder %v10760_v30, 20  ;;  %v4709_v6 = vsub.f32 %v7000_v62, %v6988_v61 }
 0x4b0   : > { %v4641_v40 = vsel %vm11436_vm15, %v4639_v44, 0.0  ;;  %v4710_v7 = vsub.f32 %v7001_v10, %v6989_v33  ;;  %v4711_v9 = vsub.f32 %v7004_v41, %v6992_v4  ;;  %v4712_v0 = vsub.f32 %v7005_v38, %v6993_v46  ;;  %vm11441_vm15 = vmmov %vm11415_vm0 }
 0x4b1   : > { %v4713_v11 = vand.u32 2147483647, %v4707_v58  ;;  %v4714_v12 = vand.u32 2147483647, %v4708_v1  ;;  %v4729_v13 = vsub.f32 %v7008_v47, %v6984_v55  ;;  %v4715_v14 = vand.u32 2147483647, %v4709_v6 }
 0x4b2   : > { %v4716_v16 = vand.u32 2147483647, %v4710_v7  ;;  %v4717_v17 = vand.u32 2147483647, %v4711_v9  ;;  %v4730_v18 = vsub.f32 %v7009_v50, %v6985_v32  ;;  %v4718_v19 = vand.u32 2147483647, %v4712_v0 }
 0x4b3   : > { %v4719_v21 = vsel %vm11437_vm14, %v4713_v11, 0.0  ;;  %v4724_v22 = vsel %vm11438_vm4, %v4714_v12, 0.0  ;;  %v4731_v23 = vsub.f32 %v7012_v52, %v6988_v61  ;;  %v11027_v24 = vadd.f32 %v4640_v49, %v10991_v43  ;;  %vm11442_vm14 = vmmov %vm11415_vm0  ;;  %v7145_v50 = vld [vmem:[%s10709_s3 + $0x10] sm:$0xff]   ;;  %v7031_v52 = vld [vmem:[%s10691_s26] sm:$0xff]  }
 0x4b4   : > { %v4720_v25 = vsel %vm11439_vm6, %v4715_v14, 0.0  ;;  %v4725_v26 = vsel %vm11415_vm0, %v4716_v16, 0.0  ;;  %v4732_v31 = vsub.f32 %v7013_v53, %v6989_v33  ;;  %v4722_v35 = vsel %vm11440_vm1, %v4717_v17, 0.0  ;;  %v7019_v33 = vld [vmem:[%s10709_s3] sm:$0xff]   ;;  %vm11443_vm4 = vmmov %vm11415_vm0  ;;  %v7146_v1 = vld [vmem:[%s10691_s26 + $0x8] sm:$0xff]  }
 0x4b5   : > { %v4721_v55 = vadd.f32 %v4720_v25, %v4719_v21  ;;  %v4726_v32 = vadd.f32 %v4725_v26, %v4724_v22  ;;  %v4733_v56 = vsub.f32 %v7016_v60, %v6992_v4  ;;  %v4734_v37 = vsub.f32 %v7017_v63, %v6993_v46  ;;  %vm11444_vm6 = vmmov %vm11415_vm0  ;;  %v7144_v46 = vld [vmem:[%s10709_s3 + $0x8] sm:$0xff]   ;;  %v7043_v11 = vld [vmem:[%s10728_s21] sm:$0xff]  }
 0x4b6   : > { %v4735_v57 = vand.u32 2147483647, %v4729_v13  ;;  %v4736_v51 = vand.u32 2147483647, %v4730_v18  ;;  %v4737_v61 = vand.u32 2147483647, %v4731_v23  ;;  %v11033_v43 = vadd.f32 %v4641_v40, %v11001_v2  ;;  %vm11445_vm1 = vmmov %vm11415_vm0 }
 0x4b7   : > { %v4727_v5 = vsel %vm11441_vm15, %v4718_v19, 0.0  ;;  %v4738_v62 = vand.u32 2147483647, %v4732_v31  ;;  %v4739_v10 = vand.u32 2147483647, %v4733_v56  ;;  %v4723_v38 = vadd.f32 %v4722_v35, %v4721_v55  ;;  %vm11446_vm15 = vmmov %vm11415_vm0  ;;  %v7147_v40 = vld [vmem:[%s10691_s26 + $0x10] sm:$0xff]  }
 0x4b8   : > { %v4740_v41 = vand.u32 2147483647, %v4734_v37  ;;  %v4741_v42 = vsel %vm11442_vm14, %v4735_v57, 0.0  ;;  %v4742_v4 = vsel %vm11443_vm4, %v4737_v61, 0.0  ;;  %v4746_v44 = vsel %vm11444_vm6, %v4736_v51, 0.0  ;;  %v7148_v17 = vld [vmem:[%s10728_s21 + $0x8] sm:$0xff]   ;;  %vm11449_vm6 = vmmov %vm11415_vm0 }
 0x4b9   : > { %v4743_v47 = vadd.f32 %v4742_v4, %v4741_v42  ;;  %v4744_v2 = vsel %vm11415_vm0, %v4739_v10, 0.0  ;;  %v4747_v49 = vsel %vm11445_vm1, %v4738_v62, 0.0  ;;  %v4728_v53 = vadd.f32 %v4727_v5, %v4726_v32  ;;  %v7149_v23 = vld [vmem:[%s10728_s21 + $0x10] sm:$0xff]   ;;  %vm11450_vm1 = vmmov %vm11415_vm0 }
 0x4ba   : > { %v4748_v60 = vadd.f32 %v4747_v49, %v4746_v44  ;;  %v4749_v63 = vsel %vm11446_vm15, %v4740_v41, 0.0  ;;  %v7020_v58 = vunpack.c.l.bf16 %v7019_v33  ;;  %v7021_v7 = vunpack.c.h.bf16 %v7019_v33  ;;  %vm11451_vm15 = vmmov %vm11415_vm0 }
 0x4bb   : > { %v4745_v6 = vadd.f32 %v4744_v2, %v4743_v47  ;;  %v7024_v9 = vunpack.c.l.bf16 %v7144_v46  ;;  %v7025_v0 = vunpack.c.h.bf16 %v7144_v46  ;;  %v7028_v13 = vunpack.c.l.bf16 %v7145_v50 }
 0x4bc   : > { %v4750_v12 = vadd.f32 %v4749_v63, %v4748_v60  ;;  %v7032_v14 = vunpack.c.l.bf16 %v7031_v52  ;;  %v7033_v16 = vunpack.c.h.bf16 %v7031_v52  ;;  %v7036_v19 = vunpack.c.l.bf16 %v7146_v1 }
 0x4bd   : > { %v4751_v18 = vmin.f32 %v4723_v38, %v4745_v6  ;;  %v7037_v21 = vunpack.c.h.bf16 %v7146_v1  ;;  %v7040_v22 = vunpack.c.l.bf16 %v7147_v40  ;;  %v7029_v26 = vunpack.c.h.bf16 %v7145_v50 }
 0x4be   : > { %v4752_v25 = vmin.f32 %v4728_v53, %v4750_v12  ;;  %v7041_v31 = vunpack.c.h.bf16 %v7147_v40  ;;  %v7044_v55 = vunpack.c.l.bf16 %v7043_v11  ;;  %vm11447_vm14 = vcmp.lt.s32.totalorder %v10748_v29, 20 }
 0x4bf   : > { %v4753_v35 = vsel %vm11447_vm14, %v4751_v18, 0.0  ;;  %v7045_v32 = vunpack.c.h.bf16 %v7043_v11  ;;  %v7048_v56 = vunpack.c.l.bf16 %v7148_v17  ;;  %v7049_v37 = vunpack.c.h.bf16 %v7148_v17  ;;  %vm11452_vm14 = vmmov %vm11415_vm0 }
 0x4c0   : > { %v7052_v57 = vunpack.c.l.bf16 %v7149_v23  ;;  %v7053_v51 = vunpack.c.h.bf16 %v7149_v23  ;;  %v4820_v61 = vsub.f32 %v7032_v14, %v7020_v58  ;;  %v4821_v5 = vsub.f32 %v7033_v16, %v7021_v7 }
 0x4c1   : > { %vm11448_vm4 = vcmp.lt.s32.totalorder %v10760_v30, 20  ;;  %v4822_v10 = vsub.f32 %v7036_v19, %v7024_v9  ;;  %v4823_v33 = vsub.f32 %v7037_v21, %v7025_v0  ;;  %v4824_v41 = vsub.f32 %v7040_v22, %v7028_v13 }
 0x4c2   : > { %v4754_v62 = vsel %vm11448_vm4, %v4752_v25, 0.0  ;;  %v4825_v42 = vsub.f32 %v7041_v31, %v7029_v26  ;;  %v4826_v4 = vand.u32 2147483647, %v4820_v61  ;;  %v4827_v44 = vand.u32 2147483647, %v4821_v5  ;;  %vm11453_vm4 = vmmov %vm11415_vm0  ;;  %v7152_v5 = vld [vmem:[%s10694_s5 + $0x8] sm:$0xff]  }
 0x4c3   : > { %v4842_v46 = vsub.f32 %v7044_v55, %v7020_v58  ;;  %v4828_v38 = vand.u32 2147483647, %v4822_v10  ;;  %v4829_v47 = vand.u32 2147483647, %v4823_v33  ;;  %v4830_v2 = vand.u32 2147483647, %v4824_v41 }
 0x4c4   : > { %v4843_v49 = vsub.f32 %v7045_v32, %v7021_v7  ;;  %v4831_v50 = vand.u32 2147483647, %v4825_v42  ;;  %v4832_v52 = vsel %vm11449_vm6, %v4826_v4, 0.0  ;;  %v4837_v53 = vsel %vm11415_vm0, %v4827_v44, 0.0  ;;  %vm11454_vm6 = vmmov %vm11415_vm0  ;;  %v7151_v32 = vld [vmem:[%s10712_s12 + $0x10] sm:$0xff]   ;;  %v7079_v4 = vld [vmem:[%s10736_s16] sm:$0xff]  }
 0x4c5   : > { %v4844_v60 = vsub.f32 %v7048_v56, %v7024_v9  ;;  %v11058_v63 = vadd.f32 %v4753_v35, %v11027_v24  ;;  %v4833_v1 = vsel %vm11450_vm1, %v4828_v38, 0.0  ;;  %v4838_v40 = vsel %vm11451_vm15, %v4829_v47, 0.0  ;;  %vm11455_vm1 = vmmov %vm11415_vm0  ;;  %v7067_v56 = vld [vmem:[%s10694_s5] sm:$0xff]  }
 0x4c6   : > { %v4845_v6 = vsub.f32 %v7049_v37, %v7025_v0  ;;  %v4834_v58 = vadd.f32 %v4833_v1, %v4832_v52  ;;  %v4835_v11 = vsel %vm11452_vm14, %v4830_v2, 0.0  ;;  %v4839_v7 = vadd.f32 %v4838_v40, %v4837_v53  ;;  %v7055_v0 = vld [vmem:[%s10712_s12] sm:$0xff]   ;;  %vm11456_vm15 = vmmov %vm11415_vm0  ;;  %v7154_v2 = vld [vmem:[%s10736_s16 + $0x8] sm:$0xff]  }
 0x4c7   : > { %v4846_v12 = vsub.f32 %v7052_v57, %v7028_v13  ;;  %v4847_v14 = vsub.f32 %v7053_v51, %v7029_v26  ;;  %v4848_v16 = vand.u32 2147483647, %v4842_v46  ;;  %v4849_v17 = vand.u32 2147483647, %v4843_v49  ;;  %v7150_v26 = vld [vmem:[%s10712_s12 + $0x8] sm:$0xff]   ;;  %vm11457_vm14 = vmmov %vm11415_vm0 }
 0x4c8   : > { %v4850_v9 = vand.u32 2147483647, %v4844_v60  ;;  %v11064_v24 = vadd.f32 %v4754_v62, %v11033_v43  ;;  %v4840_v18 = vsel %vm11453_vm4, %v4831_v50, 0.0  ;;  %v4851_v19 = vand.u32 2147483647, %v4845_v6  ;;  %vm11458_vm4 = vmmov %vm11415_vm0  ;;  %v7153_v62 = vld [vmem:[%s10694_s5 + $0x10] sm:$0xff]  }
 0x4c9   : > { %v4852_v21 = vand.u32 2147483647, %v4846_v12  ;;  %v4853_v22 = vand.u32 2147483647, %v4847_v14  ;;  %v4854_v23 = vsel %vm11454_vm6, %v4848_v16, 0.0  ;;  %v4859_v25 = vsel %vm11455_vm1, %v4849_v17, 0.0 }
 0x4ca   : > { %v4855_v13 = vsel %vm11415_vm0, %v4850_v9, 0.0  ;;  %v4836_v31 = vadd.f32 %v4835_v11, %v4834_v58  ;;  %v4860_v35 = vsel %vm11457_vm14, %v4851_v19, 0.0  ;;  %v4841_v37 = vadd.f32 %v4840_v18, %v4839_v7  ;;  %v7155_v60 = vld [vmem:[%s10736_s16 + $0x10] sm:$0xff]   ;;  %vm11462_vm14 = vmmov %vm11455_vm1  ;;  %s11463_s16 = sld [smem:[#allocation39_spill]] }
 0x4cb   : > { %v4856_v55 = vadd.f32 %v4855_v13, %v4854_v23  ;;  %v4857_v43 = vsel %vm11456_vm15, %v4852_v21, 0.0  ;;  %v4861_v57 = vadd.f32 %v4860_v35, %v4859_v25  ;;  %v4862_v51 = vsel %vm11458_vm4, %v4853_v22, 0.0  ;;  %vm11461_vm15 = vmmov %vm11455_vm1 }
 0x4cc   : > { %v7056_v61 = vunpack.c.l.bf16 %v7055_v0  ;;  %v7057_v33 = vunpack.c.h.bf16 %v7055_v0  ;;  %v7060_v41 = vunpack.c.l.bf16 %v7150_v26  ;;  %v7061_v42 = vunpack.c.h.bf16 %v7150_v26  ;;  %vm11464_vm4 = vmmov %vm11455_vm1 }
 0x4cd   : > { %v4858_v10 = vadd.f32 %v4857_v43, %v4856_v55  ;;  %v4863_v44 = vadd.f32 %v4862_v51, %v4861_v57  ;;  %v7064_v46 = vunpack.c.l.bf16 %v7151_v32  ;;  %v7068_v38 = vunpack.c.l.bf16 %v7067_v56 }
 0x4ce   : > { %v7069_v47 = vunpack.c.h.bf16 %v7067_v56  ;;  %v7072_v50 = vunpack.c.l.bf16 %v7152_v5  ;;  %v7073_v52 = vunpack.c.h.bf16 %v7152_v5  ;;  %v7076_v53 = vunpack.c.l.bf16 %v7153_v62 }
 0x4cf   : > { %v4864_v49 = vmin.f32 %v4836_v31, %v4858_v10  ;;  %v4865_v1 = vmin.f32 %v4841_v37, %v4863_v44  ;;  %v7065_v40 = vunpack.c.h.bf16 %v7151_v32  ;;  %v7077_v6 = vunpack.c.h.bf16 %v7153_v62 }
 0x4d0   : > { %v7080_v58 = vunpack.c.l.bf16 %v7079_v4  ;;  %vm11459_vm6 = vcmp.lt.s32.totalorder %v10748_v29, 20  ;;  %v7081_v7 = vunpack.c.h.bf16 %v7079_v4  ;;  %v7084_v12 = vunpack.c.l.bf16 %v7154_v2 }
 0x4d1   : > { %v4866_v11 = vsel %vm11459_vm6, %v4864_v49, 0.0  ;;  %v7085_v14 = vunpack.c.h.bf16 %v7154_v2  ;;  %v7088_v16 = vunpack.c.l.bf16 %v7155_v60  ;;  %v7089_v17 = vunpack.c.h.bf16 %v7155_v60  ;;  %vm11465_vm6 = vmmov %vm11455_vm1 }
 0x4d2   : > { %v4933_v9 = vsub.f32 %v7068_v38, %v7056_v61  ;;  %v4934_v18 = vsub.f32 %v7069_v47, %v7057_v33  ;;  %vm11460_vm0 = vcmp.lt.s32.totalorder %v10760_v30, 20  ;;  %v4935_v21 = vsub.f32 %v7072_v50, %v7060_v41 }
 0x4d3   : > { %v4867_v19 = vsel %vm11460_vm0, %v4865_v1, 0.0  ;;  %v4936_v0 = vsub.f32 %v7073_v52, %v7061_v42  ;;  %v4937_v22 = vsub.f32 %v7076_v53, %v7064_v46  ;;  %v4938_v23 = vsub.f32 %v7077_v6, %v7065_v40  ;;  %vm11467_vm0 = vmmov %vm11455_vm1 }
 0x4d4   : > { %v4939_v13 = vand.u32 2147483647, %v4933_v9  ;;  %v4940_v25 = vand.u32 2147483647, %v4934_v18  ;;  %v4955_v26 = vsub.f32 %v7080_v58, %v7056_v61  ;;  %v4941_v31 = vand.u32 2147483647, %v4935_v21 }
 0x4d5   : > { %v4942_v55 = vand.u32 2147483647, %v4936_v0  ;;  %v4943_v43 = vand.u32 2147483647, %v4937_v22  ;;  %v4956_v35 = vsub.f32 %v7081_v7, %v7057_v33  ;;  %v4944_v32 = vand.u32 2147483647, %v4938_v23 }
 0x4d6   : > { %v4945_v56 = vsel %vm11455_vm1, %v4939_v13, 0.0  ;;  %v4950_v37 = vsel %vm11461_vm15, %v4940_v25, 0.0  ;;  %v4957_v57 = vsub.f32 %v7084_v12, %v7060_v41  ;;  %v11089_v51 = vadd.f32 %v4866_v11, %v11058_v63  ;;  %vm11468_vm1 = vmmov %vm11467_vm0  ;;  %v11106_v7 = vld [vmem:[%s11463_s16 + $0x10] sm:$0xff]   ;;  %v7103_v12 = vld [vmem:[%s11466_s18] sm:$0xff]  }
 0x4d7   : > { %v4946_v5 = vsel %vm11462_vm14, %v4941_v31, 0.0  ;;  %v4951_v62 = vsel %vm11464_vm4, %v4942_v55, 0.0  ;;  %v4958_v10 = vsub.f32 %v7085_v14, %v7061_v42  ;;  %v4948_v4 = vsel %vm11465_vm6, %v4943_v43, 0.0  ;;  %v7091_v42 = vld [vmem:[%s11463_s16] sm:$0xff]   ;;  %vm11469_vm15 = vmmov %vm11467_vm0  ;;  %v7158_v18 = vld [vmem:[%s11466_s18 + $0x8] sm:$0xff]  }
 0x4d8   : > { %v4947_v61 = vadd.f32 %v4946_v5, %v4945_v56  ;;  %v4952_v33 = vadd.f32 %v4951_v62, %v4950_v37  ;;  %v4959_v44 = vsub.f32 %v7088_v16, %v7064_v46  ;;  %v4960_v38 = vsub.f32 %v7089_v17, %v7065_v40  ;;  %vm11470_vm14 = vmmov %vm11467_vm0  ;;  %v7156_v40 = vld [vmem:[%s11463_s16 + $0x8] sm:$0xff]   ;;  %v7115_v13 = vld [vmem:[%s4052_s22] sm:$0xff]  }
 0x4d9   : > { %v4961_v47 = vand.u32 2147483647, %v4955_v26  ;;  %v4962_v2 = vand.u32 2147483647, %v4956_v35  ;;  %v4963_v41 = vand.u32 2147483647, %v4957_v57  ;;  %v11095_v63 = vadd.f32 %v4867_v19, %v11064_v24  ;;  %vm11472_vm4 = vmmov %vm11467_vm0 }
 0x4da   : > { %v4953_v49 = vsel %vm11467_vm0, %v4944_v32, 0.0  ;;  %v4964_v50 = vand.u32 2147483647, %v4958_v10  ;;  %v4965_v52 = vand.u32 2147483647, %v4959_v44  ;;  %v4949_v6 = vadd.f32 %v4948_v4, %v4947_v61  ;;  %vm11473_vm6 = vmmov %vm11467_vm0  ;;  %v7159_v19 = vld [vmem:[%s11466_s18 + $0x10] sm:$0xff]  }
 0x4db   : > { %v4966_v53 = vand.u32 2147483647, %v4960_v38  ;;  %v4967_v60 = vsel %vm11468_vm1, %v4961_v47, 0.0  ;;  %v4968_v46 = vsel %vm11469_vm15, %v4963_v41, 0.0  ;;  %v4972_v1 = vsel %vm11470_vm14, %v4962_v2, 0.0  ;;  %v7160_v43 = vld [vmem:[%s4052_s22 + $0x8] sm:$0xff]   ;;  %vm11477_vm14 = vmmov %vm11467_vm0 }
 0x4dc   : > { %v4969_v58 = vadd.f32 %v4968_v46, %v4967_v60  ;;  %v4970_v24 = vsel %vm11472_vm4, %v4965_v52, 0.0  ;;  %v4973_v11 = vsel %vm11473_vm6, %v4964_v50, 0.0  ;;  %v4954_v14 = vadd.f32 %v4953_v49, %v4952_v33  ;;  %v7161_v57 = vld [vmem:[%s4052_s22 + $0x10] sm:$0xff]   ;;  %vm11478_vm4 = vmmov %vm11467_vm0 }
 0x4dd   : > { %v4974_v16 = vadd.f32 %v4973_v11, %v4972_v1  ;;  %v4975_v17 = vsel %vm11467_vm0, %v4966_v53, 0.0  ;;  %v7092_v9 = vunpack.c.l.bf16 %v7091_v42  ;;  %v7093_v0 = vunpack.c.h.bf16 %v7091_v42  ;;  %vm11479_vm6 = vmmov %vm11467_vm0 }
 0x4de   : > { %v4971_v21 = vadd.f32 %v4970_v24, %v4969_v58  ;;  %v7096_v22 = vunpack.c.l.bf16 %v7156_v40  ;;  %v7097_v23 = vunpack.c.h.bf16 %v7156_v40  ;;  %v7100_v26 = vunpack.c.l.bf16 %v11106_v7 }
 0x4df   : > { %v4976_v25 = vadd.f32 %v4975_v17, %v4974_v16  ;;  %v7104_v31 = vunpack.c.l.bf16 %v7103_v12  ;;  %v7105_v55 = vunpack.c.h.bf16 %v7103_v12  ;;  %v7108_v32 = vunpack.c.l.bf16 %v7158_v18 }
 0x4e0   : > { %v4977_v35 = vmin.f32 %v4949_v6, %v4971_v21  ;;  %v7109_v56 = vunpack.c.h.bf16 %v7158_v18  ;;  %v7112_v37 = vunpack.c.l.bf16 %v7159_v19  ;;  %v7101_v62 = vunpack.c.h.bf16 %v11106_v7 }
 0x4e1   : > { %v4978_v5 = vmin.f32 %v4954_v14, %v4976_v25  ;;  %v7113_v10 = vunpack.c.h.bf16 %v7159_v19  ;;  %v7116_v61 = vunpack.c.l.bf16 %v7115_v13  ;;  %vm11475_vm1 = vcmp.lt.s32.totalorder %v10748_v29, 20 }
 0x4e2   : > { %v11118_v4 = vsel %vm11475_vm1, %v4977_v35, 0.0  ;;  %v7117_v33 = vunpack.c.h.bf16 %v7115_v13  ;;  %v7120_v44 = vunpack.c.l.bf16 %v7160_v43  ;;  %v7121_v38 = vunpack.c.h.bf16 %v7160_v43  ;;  %vm11480_vm1 = vmmov %vm11467_vm0 }
 0x4e3   : > { %v7124_v47 = vunpack.c.l.bf16 %v7161_v57  ;;  %v7125_v2 = vunpack.c.h.bf16 %v7161_v57  ;;  %v5046_v41 = vsub.f32 %v7104_v31, %v7092_v9  ;;  %v5047_v49 = vsub.f32 %v7105_v55, %v7093_v0 }
 0x4e4   : > { %vm11476_vm15 = vcmp.lt.s32.totalorder %v10760_v30, 20  ;;  %v5048_v52 = vsub.f32 %v7108_v32, %v7096_v22  ;;  %v5049_v42 = vsub.f32 %v7109_v56, %v7097_v23  ;;  %v5050_v53 = vsub.f32 %v7112_v37, %v7100_v26 }
 0x4e5   : > { %v4980_v50 = vsel %vm11476_vm15, %v4978_v5, 0.0  ;;  %v5051_v60 = vsub.f32 %v7113_v10, %v7101_v62  ;;  %v5052_v46 = vand.u32 2147483647, %v5046_v41  ;;  %v5053_v1 = vand.u32 2147483647, %v5047_v49  ;;  %vm11481_vm15 = vmmov %vm11467_vm0  ;;  %v6838_v5 = vld [vmem:[%s11130_s8 + $0x18] sm:$0xff] }
 0x4e6   : > { %v5068_v40 = vsub.f32 %v7116_v61, %v7092_v9  ;;  %v5054_v6 = vand.u32 2147483647, %v5048_v52  ;;  %v5055_v58 = vand.u32 2147483647, %v5049_v42  ;;  %v5056_v24 = vand.u32 2147483647, %v5050_v53 }
 0x4e7   : > { %v5069_v11 = vsub.f32 %v7117_v33, %v7093_v0  ;;  %v5057_v7 = vand.u32 2147483647, %v5051_v60  ;;  %v5058_v12 = vsel %vm11477_vm14, %v5052_v46, 0.0  ;;  %v5063_v14 = vsel %vm11478_vm4, %v5053_v1, 0.0  ;;  %v4534_v0 = vld [vmem:[%s11130_s8] sm:$0xff]  ;;  %vm11482_vm14 = vmmov %vm11467_vm0  ;;  %v6842_v49 = vld [vmem:[%s11130_s8 + $0x28] sm:$0xff] }
 0x4e8   : > { %v5070_v16 = vsub.f32 %v7120_v44, %v7096_v22  ;;  %v5059_v17 = vsel %vm11479_vm6, %v5054_v6, 0.0  ;;  %v5061_v18 = vsel %vm11467_vm0, %v5056_v24, 0.0  ;;  %v5064_v19 = vsel %vm11480_vm1, %v5055_v58, 0.0  ;;  %v4535_v22 = vld [vmem:[%s11130_s8 + $0x8] sm:$0xff]  ;;  %vm11483_vm4 = vmmov %vm11467_vm0  ;;  %v6845_v46 = vld [vmem:[%s11130_s8 + $0x30] sm:$0xff] }
 0x4e9   : > { %v5071_v21 = vsub.f32 %v7121_v38, %v7097_v23  ;;  %v5060_v13 = vadd.f32 %v5059_v17, %v5058_v12  ;;  %v5065_v9 = vadd.f32 %v5064_v19, %v5063_v14  ;;  %v5066_v25 = vsel %vm11481_vm15, %v5057_v7, 0.0  ;;  %vm11484_vm6 = vmmov %vm11467_vm0  ;;  %v6846_v58 = vld [vmem:[%s11130_s8 + $0x38] sm:$0xff]  ;;  %v6849_v12 = vld [vmem:[%s11130_s8 + $0x40] sm:$0xff] }
 0x4ea   : > { %v5072_v31 = vsub.f32 %v7124_v47, %v7100_v26  ;;  %v5073_v55 = vsub.f32 %v7125_v2, %v7101_v62  ;;  %v5074_v43 = vand.u32 2147483647, %v5068_v40  ;;  %v5075_v35 = vand.u32 2147483647, %v5069_v11  ;;  %v6837_v26 = vld [vmem:[%s11130_s8 + $0x10] sm:$0xff]  ;;  %v6841_v62 = vld [vmem:[%s11130_s8 + $0x20] sm:$0xff]  ;;  %vm11485_vm1 = vmmov %vm11467_vm0 }
 0x4eb   : > { %v5076_v32 = vand.u32 2147483647, %v5070_v16  ;;  %v5062_v23 = vadd.f32 %v5061_v18, %v5060_v13  ;;  %v5067_v56 = vadd.f32 %v5066_v25, %v5065_v9  ;;  %v5077_v37 = vand.u32 2147483647, %v5071_v21  ;;  %vm11486_vm15 = vmmov %vm11467_vm0  ;;  %v6850_v18 = vld [vmem:[%s11130_s8 + $0x48] sm:$0xff]  ;;  %v6853_v13 = vld [vmem:[%s11130_s8 + $0x50] sm:$0xff] }
 0x4ec   : > { %v5078_v57 = vand.u32 2147483647, %v5072_v31  ;;  %v5079_v10 = vand.u32 2147483647, %v5073_v55  ;;  %v5080_v61 = vsel %vm11482_vm14, %v5074_v43, 0.0  ;;  %v5085_v44 = vsel %vm11484_vm6, %v5075_v35, 0.0  ;;  %vm11489_vm6 = vmmov %vm11467_vm0 }
 0x4ed   : > { %v5081_v33 = vsel %vm11483_vm4, %v5076_v32, 0.0  ;;  %v5086_v2 = vsel %vm11485_vm1, %v5077_v37, 0.0  ;;  %v4536_v41 = vmax.f32 %v4534_v0, 1e-06  ;;  %v4537_v53 = vmax.f32 %v4535_v22, 1e-06 }
 0x4ee   : > { %v5082_v38 = vadd.f32 %v5081_v33, %v5080_v61  ;;  %v5083_v47 = vsel %vm11467_vm0, %v5078_v57, 0.0  ;;  %v5087_v52 = vadd.f32 %v5086_v2, %v5085_v44  ;;  %v5088_v42 = vsel %vm11486_vm15, %v5079_v10, 0.0  ;;  %v8288_v32 = vld [vmem:[%s10753_s15] sm:$0xff]  ;;  %v8289_v37 = vld [vmem:[%s10753_s15 + $0x8] sm:$0xff] }
 0x4ef   : > { %v4649_v60 = vmax.f32 %v6837_v26, 1e-06  ;;  %8264 = vrcp.f32 %v4536_v41  ;;  %v4650_v40 = vmax.f32 %v6838_v5, 1e-06  ;;  %v4762_v6 = vmax.f32 %v6841_v62, 1e-06 }
 0x4f0   : > { %v5084_v1 = vadd.f32 %v5083_v47, %v5082_v38  ;;  %v4981_v24 = vadd.f32 %v11118_v4, %v11089_v51  ;;  %v5089_v11 = vadd.f32 %v5088_v42, %v5087_v52  ;;  %8266 = vrcp.f32 %v4537_v53  ;;  %v6854_v4 = vld [vmem:[%s11130_s8 + $0x58] sm:$0xff]  ;;  %v8290_v10 = vld [vmem:[%s10758_s24] sm:$0xff]  ;;  %v8291_v62 = vld [vmem:[%s10758_s24 + $0x8] sm:$0xff] }
 0x4f1   : > { %v4763_v7 = vmax.f32 %v6842_v49, 1e-06  ;;  %v4982_v14 = vadd.f32 %v4980_v50, %v11095_v63  ;;  %8268 = vrcp.f32 %v4649_v60  ;;  %v4875_v17 = vmax.f32 %v6845_v46, 1e-06  ;;  %v8292_v49 = vld [vmem:[%s10766_s27] sm:$0xff]  ;;  %v8293_v46 = vld [vmem:[%s10766_s27 + $0x8] sm:$0xff] }
 0x4f2   : > { %v5090_v16 = vmin.f32 %v5062_v23, %v5084_v1  ;;  %v5091_v19 = vmin.f32 %v5067_v56, %v5089_v11  ;;  %8270 = vrcp.f32 %v4650_v40  ;;  %v4876_v21 = vmax.f32 %v6846_v58, 1e-06 }
 0x4f3   : > { %vm11487_vm14 = vcmp.lt.s32.totalorder %v10748_v29, 20  ;;  %8272 = vrcp.f32 %v4762_v6  ;;  %v4988_v51 = vmax.f32 %v6849_v12, 1e-06  ;;  %vm11488_vm4 = vcmp.lt.s32.totalorder %v10760_v30, 20 }
 0x4f4   : > { %v5092_v9 = vsel %vm11487_vm14, %v5090_v16, 0.0  ;;  %v5093_v25 = vsel %vm11488_vm4, %v5091_v19, 0.0  ;;  %8274 = vrcp.f32 %v4763_v7  ;;  %v4989_v63 = vmax.f32 %v6850_v18, 1e-06 }
 0x4f5   : > { %v5094_v31 = vadd.f32 %v5092_v9, %v4981_v24  ;;  %v5095_v50 = vadd.f32 %v5093_v25, %v4982_v14  ;;  %8276 = vrcp.f32 %v4875_v17  ;;  %v5101_v0 = vmax.f32 %v6853_v13, 1e-06  ;;  %v8294_v24 = vld [vmem:[%s10771_s2] sm:$0xff]  ;;  %v8297_v25 = vld [vmem:[%s10779_s10 + $0x8] sm:$0xff] }
 0x4f6   : > { %8278 = vrcp.f32 %v4876_v21  ;;  %v5102_v55 = vmax.f32 %v6854_v4, 1e-06  ;;  %v8296_v21 = vld [vmem:[%s10779_s10] sm:$0xff] }
 0x4f7   : > { %v5123_v22 = vsel %vm11489_vm6, %v5094_v31, 0.0  ;;  %v5124_v29 = vsel %vm11467_vm0, %v5095_v50, 0.0  ;;  %8280 = vrcp.f32 %v4988_v51 }
 0x4f8   : > { %v5125_v43 = vadd.f32 %v5124_v29, %v5123_v22  ;;  %8282 = vrcp.f32 %v4989_v63 }
 0x4f9   : > { %v8265_v30 = vpop.eup %8264  ;;  %8284 = vrcp.f32 %v5101_v0 }
 0x4fa   : > { %v8267_v35 = vpop.eup %8266  ;;  %5126 = vadd.xlane.f32.xlu0 %v5125_v43  ;;  %v4548_v23 = vsub.f32 %v8288_v32, %v8265_v30  ;;  %8286 = vrcp.f32 %v5102_v55 }
 0x4fb   : > { %v8269_v56 = vpop.eup %8268  ;;  %v4549_v57 = vsub.f32 %v8289_v37, %v8267_v35  ;;  %v8299_v35 = vld [vmem:[%s10784_s20 + $0x8] sm:$0xff]  ;;  %s11494_s20 = sld [smem:[#allocation33_spill]] }
 0x4fc   : > { %v8271_v26 = vpop.eup %8270  ;;  %v4550_v5 = vand.u32 2147483647, %v4548_v23  ;;  %v4661_v61 = vsub.f32 %v8290_v10, %v8269_v56 }
 0x4fd   : > { %v8273_v33 = vpop.eup %8272  ;;  %v4551_v44 = vand.u32 2147483647, %v4549_v57  ;;  %v4662_v38 = vsub.f32 %v8291_v62, %v8271_v26 }
 0x4fe   : > { %v8275_v47 = vpop.eup %8274  ;;  %v4552_v2 = vsel %vm10791_vm5, %v4550_v5, 0.0  ;;  %v4663_v41 = vand.u32 2147483647, %v4661_v61  ;;  %v4774_v52 = vsub.f32 %v8292_v49, %v8273_v33  ;;  %vm11490_vm5 = vnez %v11409_v28 }
 0x4ff   : > { %v8277_v42 = vpop.eup %8276  ;;  %v4553_v53 = vsel %vm10799_vm7, %v4551_v44, 0.0  ;;  %v4664_v60 = vand.u32 2147483647, %v4662_v38  ;;  %v4775_v1 = vsub.f32 %v8293_v46, %v8275_v47  ;;  %vm11491_vm7 = vnez %v11411_v34 }
 0x500   : > { %v8279_v40 = vpop.eup %8278  ;;  %v4665_v6 = vsel %vm10813_vm9, %v4663_v41, 0.0  ;;  %v4776_v58 = vand.u32 2147483647, %v4774_v52  ;;  %v4887_v36 = vsub.f32 %v8294_v24, %v8277_v42  ;;  %vm11492_vm9 = vmmov %vm11467_vm0 }
 0x501   : > { %v8281_v11 = vpop.eup %8280  ;;  %v4666_v7 = vsel %vm10822_vm13, %v4664_v60, 0.0  ;;  %v4667_v12 = vadd.f32 %v4665_v6, %v4552_v2  ;;  %v4777_v14 = vand.u32 2147483647, %v4775_v1  ;;  %v4888_v16 = vsub.f32 %v8295_v39, %v8279_v40  ;;  %vm11493_vm13 = vmmov %vm11467_vm0  ;;  %p4432_p6 = scmp.lt.s32.totalorder %s11494_s20, 1 }
 0x502   : > { %v8283_v17 = vpop.eup %8282  ;;  %v4668_v18 = vadd.f32 %v4666_v7, %v4553_v53  ;;  %v4778_v19 = vsel %vm10839_vm3, %v4776_v58, 0.0  ;;  %v4889_v45 = vand.u32 2147483647, %v4887_v36  ;;  %v5000_v13 = vsub.f32 %v8296_v21, %v8281_v11 }
 0x503   : > { %v8285_v9 = vpop.eup %8284  ;;  %v4779_v48 = vsel %vm10853_vm2, %v4777_v14, 0.0  ;;  %v4780_v51 = vadd.f32 %v4778_v19, %v4667_v12  ;;  %v4890_v4 = vand.u32 2147483647, %v4888_v16  ;;  %v5001_v31 = vsub.f32 %v8297_v25, %v8283_v17  ;;  %s11605_s20 = smov (!%p4432_p6, %s11494_s20), 1 }
 0x504   : > { %v8287_v63 = vpop.eup %8286  ;;  %v4781_v50 = vadd.f32 %v4779_v48, %v4668_v18  ;;  %v4891_v0 = vsel %vm10870_vm8, %v4889_v45, 0.0  ;;  %v5002_v22 = vand.u32 2147483647, %v5000_v13  ;;  %v5113_v55 = vsub.f32 %v8298_v54, %v8285_v9  ;;  %s6833_s5 = sshll.u32 %s11605_s20, 3 }
 0x505   : > { %v4892_v29 = vsel %vm10880_vm10, %v4890_v4, 0.0  ;;  %v4893_v43 = vadd.f32 %v4891_v0, %v4780_v51  ;;  %v5003_v30 = vand.u32 2147483647, %v5001_v31  ;;  %v5114_v59 = vsub.f32 %v8299_v35, %v8287_v63  ;;  %s4435_s3 = scalar_lea.vmem %s11495_s23, %s6833_s5 }
 0x506   : > { %v4894_v32 = vadd.f32 %v4892_v29, %v4781_v50  ;;  %v5004_v23 = vsel %vm10895_vm11, %v5002_v22, 0.0  ;;  %v5115_v56 = vand.u32 2147483647, %v5113_v55  ;;  %vm5161_vm2 = vcmp.eq.s32.totalorder %v10744_v27, 2 }
 0x507   : > { %v5005_v37 = vsel %vm10903_vm12, %v5003_v30, 0.0  ;;  %v5006_v3 = vadd.f32 %v5004_v23, %v4893_v43  ;;  %v5116_v57 = vand.u32 2147483647, %v5114_v59  ;;  %vm5160_vm3 = vcmp.eq.s32.totalorder %v10744_v27, 1 }
 0x508   : > { %v5007_v26 = vadd.f32 %v5005_v37, %v4894_v32  ;;  %v5117_v5 = vsel %vm11490_vm5, %v5115_v56, 0.0  ;;  %vm5159_vm8 = vcmp.eq.s32.totalorder %v10744_v27, 0 }
 0x509   : > { %v5118_v8 = vsel %vm11491_vm7, %v5116_v57, 0.0  ;;  %v5119_v10 = vadd.f32 %v5117_v5, %v5006_v3 }
 0x50a   : > { %v5120_v61 = vadd.f32 %v5118_v8, %v5007_v26 }
 0x50b   : > { %v5135_v33 = vsel %vm11492_vm9, %v5119_v10, 0.0 }
 0x50c   : > { %v5136_v15 = vsel %vm11493_vm13, %v5120_v61, 0.0 }
 0x50d   : > { %v5137_v44 = vadd.f32 %v5136_v15, %v5135_v33 }
 0x50f   : > { %5138 = vadd.xlane.f32.xlu0 %v5137_v44 }
 0x521   : > { %v5151_v49 = vpop.xlane.xlu1 %5150 }
 0x522   : > { %v5152_v52 = vrot.slane %v5151_v49, 4 }
 0x524   : > { %v5153_v34 = vadd.f32 %v5152_v52, %v5151_v49 }
 0x526   : > { %v5154_v42 = vrot.slane %v5153_v34, 2 }
 0x528   : > { %v5155_v1 = vadd.f32 %v5154_v42, %v5153_v34 }
 0x52a   : > { %v5156_v58 = vrot.slane %v5155_v1, 1 }
 0x52c   : > { %v5157_v11 = vadd.f32 %v5156_v58, %v5155_v1 }
 0x587   : > { %v5127_v62 = vpop.xlane.xlu0 %5126 }
 0x588   : > { %v5128_v20 = vrot.slane %v5127_v62, 4 }
 0x58a   : > { %v5129_v38 = vadd.f32 %v5128_v20, %v5127_v62 }
 0x58c   : > { %v5130_v47 = vrot.slane %v5129_v38, 2 }
 0x58e   : > { %v5131_v2 = vadd.f32 %v5130_v47, %v5129_v38 }
 0x590   : > { %v5132_v41 = vrot.slane %v5131_v2, 1 }
 0x592   : > { %v5133_v28 = vadd.f32 %v5132_v41, %v5131_v2 }
 0x594   : > { %7183 = vpush %v5133_v28 }
 0x59c   : > { %v5139_v53 = vpop.xlane.xlu0 %5138 }
 0x59d   : > { %v5140_v60 = vrot.slane %v5139_v53, 4 }
 0x59f   : > { %v5141_v46 = vadd.f32 %v5140_v60, %v5139_v53 }
 0x5a1   : > { %v5142_v40 = vrot.slane %v5141_v46, 2 }
 0x5a3   : > { %v5143_v6 = vadd.f32 %v5142_v40, %v5141_v46 }
 0x5a5   : > { %v5144_v24 = vrot.slane %v5143_v6, 1 }
 0x5a7   : > { %v5145_v36 = vadd.f32 %v5144_v24, %v5143_v6 }
 0x5a9   : > { %7185 = vpush %v5145_v36 }
 0x5aa   : > { %7187 = vpush %v5157_v11 }
 0x5c5   : > { %s7184_s27 = spop %7183 }
 0x5c6   : > { %v5166_v39 = vstv %s7184_s27 }
 0x5da   : > { %s7186_s26 = spop %7185 }
 0x5db   : > { %v5164_v7 = vstv %s7186_s26  ;;  %s7188_s10 = spop %7187 }
 0x5dc   : > { %v5162_v12 = vstv %s7188_s10 }
 0x5dd   : > { %v5163_v14 = vsel %vm5161_vm2, %v5162_v12, 0.0 }
 0x5de   : > { %v5165_v16 = vsel %vm5160_vm3, %v5164_v7, %v5163_v14 }
 0x5df   : > { %v5167_v17 = vsel %vm5159_vm8, %v5166_v39, %v5165_v16 }
 0x5e0   : > { %5168 = vst [vmem:[%s4435_s3] sm:$0xff] %v5167_v17 }
 0x5e1 PF: > { %s11496_s30 = sld [smem:[#allocation34_spill]]  ;;  %s11497_s29 = sld [smem:[#allocation31_spill]] }
 0x5e2   : > { %s11498_s2 = sld [smem:[#allocation32_spill]]  ;;  %s11499_s6 = sld [smem:[#allocation35_spill]] }
 0x5e7   : > { %p38_p13 = scmp.ge.s32.totalorder %s11496_s30, 4  }
 0x5e9   :  { %40 = sbr.rel (!%p38_p13) target bundleno = 32 (0x20), region = 1902 }
 0x5f0   :  { %5188 = vsyncpa [#allocation18], 1 }
 0x5f1   :  { %5190 = vsyncpa [#allocation18 + $0x1], 1 }
 0x5f2   :  { %5191 = vsyncpa [#allocation20], 1 }
 0x5f3   :  { %5193 = vsyncpa [#allocation20 + $0x1], 1 }

</bundles_post_ra>
